<compile_context>
chip_gen: v7x
topology: tpu7x:2x2x1
jax: 0.10.0
libtpu: 0.0.40
codegen_flags: <defaults>
</compile_context>

<pallas_src>
import jax
import jax.numpy as jnp
from jax.experimental import pallas as pl
from jax.experimental.pallas import tpu as pltpu

EPS = 1e-5                        # nn.InstanceNorm2d default eps
MXU_DTYPE = jnp.bfloat16          # matmul-operand dtype (accumulation is f32)
VMEM_LIMIT_BYTES = 48 * 1024 * 1024   # below v7x's 64 MiB physical VMEM


# --------------------------------------------------------------------------
# tiling helper
# --------------------------------------------------------------------------
def _row_tile(ho, wo, cmax):
    """Output-row tile height: divides ho, ~1 MiB f32 tile, (rows*wo) % 8 == 0,
    and >= 2 tiles when possible so the cross-tile stats accumulation and the
    parallel batch/tile grid are actually exercised."""
    budget = max(1, (1 << 20) // (4 * wo * max(cmax, 1)))
    cap = max(1, min(budget, ho // 2)) if ho >= 2 else 1
    best = None
    for d in range(1, ho + 1):
        if ho % d == 0 and d <= cap and (d * wo) % 8 == 0:
            best = d
    return best if best is not None else ho


# --------------------------------------------------------------------------
# Kernel A: 3x3 conv (padding=1) from halo'd row slabs + per-channel sum/sumsq
# --------------------------------------------------------------------------
def _conv3x3_stats(x_nhwc, w_hwio, stride, th, ho, wo):
    """Returns (raw conv output (N, ho*wo, Cout) f32, sum (N,1,Cout), sumsq)."""
    n, h, w, cin = x_nhwc.shape
    cout = w_hwio.shape[-1]
    assert ho == (h - 1) // stride + 1 and wo == (w - 1) // stride + 1
    assert ho % th == 0
    n_tiles = ho // th
    tm = th * wo
    rh = (th - 1) * stride + 3          # padded-input rows needed per row tile
    wp = w + 2

    xp = jnp.pad(x_nhwc, ((0, 0), (1, 1), (1, 1), (0, 0)))
    # Overlapping row slabs (2-row halo) -> clean, non-overlapping BlockSpecs.
    slabs = jnp.stack(
        [xp[:, t * th * stride: t * th * stride + rh] for t in range(n_tiles)],
        axis=1)                                           # (N, n_tiles, rh, wp, cin)
    w9 = w_hwio.reshape(9, cin, cout)

    def kernel(xh_ref, w_ref, y_ref, s_ref, q_ref):
        t = pl.program_id(1)
        acc = jnp.zeros((tm, cout), jnp.float32)
        for kh in range(3):
            for kw in range(3):
                if stride == 1:
                    tap = xh_ref[kh:kh + th, kw:kw + wo, :]
                else:
                    tap = xh_ref[pl.ds(kh, th, stride=stride),
                                 pl.ds(kw, wo, stride=stride), :]
                acc = acc + jnp.dot(tap.reshape(tm, cin), w_ref[kh * 3 + kw],
                                    preferred_element_type=jnp.float32)
        y_ref[...] = acc

        @pl.when(t == 0)
        def _init():
            s_ref[...] = jnp.zeros_like(s_ref)
            q_ref[...] = jnp.zeros_like(q_ref)

        s_ref[...] += jnp.sum(acc, axis=0, keepdims=True)
        q_ref[...] += jnp.sum(acc * acc, axis=0, keepdims=True)

    return pl.pallas_call(
        kernel,
        out_shape=(jax.ShapeDtypeStruct((n, ho * wo, cout), jnp.float32),
                   jax.ShapeDtypeStruct((n, 1, cout), jnp.float32),
                   jax.ShapeDtypeStruct((n, 1, cout), jnp.float32)),
        grid=(n, n_tiles),
        in_specs=[
            pl.BlockSpec((None, None, rh, wp, cin), lambda b, t: (b, t, 0, 0, 0)),
            pl.BlockSpec((9, cin, cout), lambda b, t: (0, 0, 0)),
        ],
        out_specs=(
            pl.BlockSpec((None, tm, cout), lambda b, t: (b, t, 0)),
            pl.BlockSpec((None, 1, cout), lambda b, t: (b, 0, 0)),
            pl.BlockSpec((None, 1, cout), lambda b, t: (b, 0, 0)),
        ),
        compiler_params=pltpu.CompilerParams(
            dimension_semantics=("parallel", "arbitrary"),
            vmem_limit_bytes=VMEM_LIMIT_BYTES),
    )(slabs, w9)


# --------------------------------------------------------------------------
# Kernel B: InstanceNorm (from accumulated stats) + ReLU
# --------------------------------------------------------------------------
def _instance_norm_relu(y, s, q, count, tm, out_dtype):
    n, hw, c = y.shape
    assert hw % tm == 0
    n_tiles = hw // tm
    inv_cnt = 1.0 / float(count)

    def kernel(y_ref, s_ref, q_ref, o_ref):
        mean = s_ref[...] * inv_cnt
        var = q_ref[...] * inv_cnt - mean * mean
        o_ref[...] = jnp.maximum(
            (y_ref[...] - mean) * jax.lax.rsqrt(var + EPS), 0.0).astype(o_ref.dtype)

    return pl.pallas_call(
        kernel,
        out_shape=jax.ShapeDtypeStruct((n, hw, c), out_dtype),
        grid=(n, n_tiles),
        in_specs=[
            pl.BlockSpec((None, tm, c), lambda b, t: (b, t, 0)),
            pl.BlockSpec((None, 1, c), lambda b, t: (b, 0, 0)),
            pl.BlockSpec((None, 1, c), lambda b, t: (b, 0, 0)),
        ],
        out_specs=pl.BlockSpec((None, tm, c), lambda b, t: (b, t, 0)),
        compiler_params=pltpu.CompilerParams(
            dimension_semantics=("parallel", "parallel"),
            vmem_limit_bytes=VMEM_LIMIT_BYTES),
    )(y, s, q)


# --------------------------------------------------------------------------
# Kernel C: IN(h2)+ReLU fused with 1x1 main conv, 1x1 downsample conv + stats
# --------------------------------------------------------------------------
def _final_matmuls(y2, s2, q2, xs, w3, wd, count, tm):
    n, hw, c = y2.shape
    cin = xs.shape[-1]
    cout = w3.shape[-1]
    assert hw % tm == 0
    n_tiles = hw // tm
    inv_cnt = 1.0 / float(count)

    def kernel(y_ref, s_ref, q_ref, xs_ref, w3_ref, wd_ref,
               main_ref, ds_ref, dsum_ref, dssq_ref):
        t = pl.program_id(1)
        # finish stage-2 InstanceNorm + ReLU (stats accumulated by the conv pass)
        mean = s_ref[...] * inv_cnt
        var = q_ref[...] * inv_cnt - mean * mean
        h2 = jnp.maximum((y_ref[...] - mean) * jax.lax.rsqrt(var + EPS), 0.0)

        main = jnp.dot(h2.astype(w3_ref.dtype), w3_ref[...],
                       preferred_element_type=jnp.float32)
        ds = jnp.dot(xs_ref[...], wd_ref[...], preferred_element_type=jnp.float32)
        main_ref[...] = main
        ds_ref[...] = ds

        @pl.when(t == 0)
        def _init():
            dsum_ref[...] = jnp.zeros_like(dsum_ref)
            dssq_ref[...] = jnp.zeros_like(dssq_ref)

        dsum_ref[...] += jnp.sum(ds, axis=0, keepdims=True)
        dssq_ref[...] += jnp.sum(ds * ds, axis=0, keepdims=True)

    return pl.pallas_call(
        kernel,
        out_shape=(jax.ShapeDtypeStruct((n, hw, cout), jnp.float32),
                   jax.ShapeDtypeStruct((n, hw, cout), jnp.float32),
                   jax.ShapeDtypeStruct((n, 1, cout), jnp.float32),
                   jax.ShapeDtypeStruct((n, 1, cout), jnp.float32)),
        grid=(n, n_tiles),
        in_specs=[
            pl.BlockSpec((None, tm, c), lambda b, t: (b, t, 0)),
            pl.BlockSpec((None, 1, c), lambda b, t: (b, 0, 0)),
            pl.BlockSpec((None, 1, c), lambda b, t: (b, 0, 0)),
            pl.BlockSpec((None, tm, cin), lambda b, t: (b, t, 0)),
            pl.BlockSpec((c, cout), lambda b, t: (0, 0)),
            pl.BlockSpec((cin, cout), lambda b, t: (0, 0)),
        ],
        out_specs=(
            pl.BlockSpec((None, tm, cout), lambda b, t: (b, t, 0)),
            pl.BlockSpec((None, tm, cout), lambda b, t: (b, t, 0)),
            pl.BlockSpec((None, 1, cout), lambda b, t: (b, 0, 0)),
            pl.BlockSpec((None, 1, cout), lambda b, t: (b, 0, 0)),
        ),
        compiler_params=pltpu.CompilerParams(
            dimension_semantics=("parallel", "arbitrary"),
            vmem_limit_bytes=VMEM_LIMIT_BYTES),
    )(y2, s2, q2, xs, w3, wd)


# --------------------------------------------------------------------------
# Kernel D: normalize downsample branch + residual add + ReLU
# --------------------------------------------------------------------------
def _residual_add_relu(main, ds, dsum, dssq, count, tm, out_dtype):
    n, hw, cout = main.shape
    assert hw % tm == 0
    n_tiles = hw // tm
    inv_cnt = 1.0 / float(count)

    def kernel(m_ref, d_ref, s_ref, q_ref, o_ref):
        mean = s_ref[...] * inv_cnt
        var = q_ref[...] * inv_cnt - mean * mean
        dsn = (d_ref[...] - mean) * jax.lax.rsqrt(var + EPS)
        o_ref[...] = jnp.maximum(m_ref[...] + dsn, 0.0).astype(o_ref.dtype)

    return pl.pallas_call(
        kernel,
        out_shape=jax.ShapeDtypeStruct((n, hw, cout), out_dtype),
        grid=(n, n_tiles),
        in_specs=[
            pl.BlockSpec((None, tm, cout), lambda b, t: (b, t, 0)),
            pl.BlockSpec((None, tm, cout), lambda b, t: (b, t, 0)),
            pl.BlockSpec((None, 1, cout), lambda b, t: (b, 0, 0)),
            pl.BlockSpec((None, 1, cout), lambda b, t: (b, 0, 0)),
        ],
        out_specs=pl.BlockSpec((None, tm, cout), lambda b, t: (b, t, 0)),
        compiler_params=pltpu.CompilerParams(
            dimension_semantics=("parallel", "parallel"),
            vmem_limit_bytes=VMEM_LIMIT_BYTES),
    )(main, ds, dsum, dssq)


# --------------------------------------------------------------------------
# ResidualBlock forward (first=True): net(x) + downsample(x), then ReLU
# --------------------------------------------------------------------------
def residual_block_forward(x_nchw, params, stride=1):
    x = jnp.transpose(x_nchw, (0, 2, 3, 1)).astype(jnp.float32)   # NCHW -> NHWC
    n, h, w, cin = x.shape
    c = params["w1"].shape[-1]
    cout = params["w3"].shape[-1]

    ho = (h - 1) // stride + 1
    wo = (w - 1) // stride + 1
    th = _row_tile(ho, wo, max(cin, c, cout))
    tm = th * wo
    count = ho * wo

    x_mx = x.astype(MXU_DTYPE)
    w1 = params["w1"].astype(MXU_DTYPE)
    w2 = params["w2"].astype(MXU_DTYPE)
    w3 = params["w3"].astype(MXU_DTYPE)
    wd = params["wd"].astype(MXU_DTYPE)

    # stage 1: conv3x3(stride) -> IN -> ReLU
    y1, s1, q1 = _conv3x3_stats(x_mx, w1, stride, th, ho, wo)
    h1 = _instance_norm_relu(y1, s1, q1, count, tm, MXU_DTYPE)    # (N, ho*wo, C) bf16

    # stage 2: conv3x3(1) -> stats (its IN+ReLU is fused into the final matmuls)
    y2, s2, q2 = _conv3x3_stats(h1.reshape(n, ho, wo, c), w2, 1, th, ho, wo)

    # final: 1x1 conv (main) + [1x1 conv + IN] (downsample) + add + ReLU
    xs = x_mx[:, ::stride, ::stride, :].reshape(n, ho * wo, cin)
    main, ds, dsum, dssq = _final_matmuls(y2, s2, q2, xs, w3, wd, count, tm)
    out = _residual_add_relu(main, ds, dsum, dssq, count, tm, x_nchw.dtype)

    return jnp.transpose(out.reshape(n, ho, wo, cout), (0, 3, 1, 2))   # -> NCHW


# --------------------------------------------------------------------------
# Deterministic parameter init (bias-free convs, InstanceNorm has no params)
# --------------------------------------------------------------------------
def init_params(key, in_channels, out_channels, channels):
    k1, k2, k3, k4 = jax.random.split(key, 4)
    return dict(
        w1=0.1 * jax.random.normal(k1, (3, 3, in_channels, channels), jnp.float32),
        w2=0.1 * jax.random.normal(k2, (3, 3, channels, channels), jnp.float32),
        w3=0.1 * jax.random.normal(k3, (channels, out_channels), jnp.float32),
        wd=0.1 * jax.random.normal(k4, (in_channels, out_channels), jnp.float32),
    )


# --------------------------------------------------------------------------
# Pure-JAX reference (same bf16 matmul-operand policy, f32 accumulation/IN)
# --------------------------------------------------------------------------
def _ref_in(x):  # instance norm over H,W per (N, C), NHWC
    mean = jnp.mean(x, axis=(1, 2), keepdims=True)
    var = jnp.mean((x - mean) ** 2, axis=(1, 2), keepdims=True)
    return (x - mean) * jax.lax.rsqrt(var + EPS)


def _ref_conv(x, w, stride, pad):
    return jax.lax.conv_general_dilated(
        x, w, window_strides=(stride, stride),
        padding=[(pad, pad), (pad, pad)],
        dimension_numbers=("NHWC", "HWIO", "NHWC"),
        preferred_element_type=jnp.float32,
        precision=jax.lax.Precision.HIGHEST)


def reference_forward(x_nchw, params, stride=1):
    mx = MXU_DTYPE
    x = jnp.transpose(x_nchw, (0, 2, 3, 1)).astype(jnp.float32)
    h = _ref_conv(x.astype(mx), params["w1"].astype(mx), stride, 1)
    h = jax.nn.relu(_ref_in(h))
    h = _ref_conv(h.astype(mx), params["w2"].astype(mx), 1, 1)
    h = jax.nn.relu(_ref_in(h))
    main = _ref_conv(h.astype(mx), params["w3"].astype(mx)[None, None], 1, 0)
    ds = _ref_in(_ref_conv(x.astype(mx), params["wd"].astype(mx)[None, None],
                           stride, 0))
    out = jax.nn.relu(main + ds)
    return jnp.transpose(out, (0, 3, 1, 2))


if __name__ == "__main__":
    key = jax.random.PRNGKey(0)
    k_x, k_p = jax.random.split(key)

    N, Cin, H, W = 2, 4, 16, 16
    channels, Cout, stride = 8, 8, 1          # first=True block

    x = jax.random.normal(k_x, (N, Cin, H, W), jnp.float32)   # NCHW like PyTorch
    params = init_params(k_p, Cin, Cout, channels)

    fwd = jax.jit(residual_block_forward, static_argnames=("stride",))
    out = jax.block_until_ready(fwd(x, params, stride=stride))

    ref = jax.block_until_ready(reference_forward(x, params, stride=stride))
    assert out.shape == ref.shape, (out.shape, ref.shape)
    max_err = float(jnp.max(jnp.abs(out - ref)))
    assert jnp.allclose(out, ref, atol=1e-2, rtol=1e-2), max_err

    print("KERNEL_OK")
</pallas_src>

<mosaic_0001>
module attributes {stable_mosaic.version = 11 : i64} {
  func.func @kernel(%arg0: i32, %arg1: i32, %arg2: memref<1x1x10x18x4xbf16, #tpu.memory_space<vmem>>, %arg3: memref<9x4x8xbf16, #tpu.memory_space<vmem>>, %arg4: memref<1x128x8xf32, #tpu.memory_space<vmem>>, %arg5: memref<1x1x8xf32, #tpu.memory_space<vmem>>, %arg6: memref<1x1x8xf32, #tpu.memory_space<vmem>>) attributes {dimension_semantics = [#tpu.dimension_semantics<parallel>, #tpu.dimension_semantics<arbitrary>], iteration_bounds = array<i64: 2, 2>, scalar_prefetch = 0 : i64, scratch_operands = 0 : i64, tpu.core_type = #tpu.core_type<tc>, window_params = [{transform_indices = @transform_0, window_bounds = array<i64: 1, 1, 10, 18, 4>}, {pipeline_mode = #tpu.pipeline_mode<synchronous>, transform_indices = @transform_1, window_bounds = array<i64: 9, 4, 8>}, {transform_indices = @transform_2, window_bounds = array<i64: 1, 128, 8>}, {transform_indices = @transform_3, window_bounds = array<i64: 1, 1, 8>}, {transform_indices = @transform_4, window_bounds = array<i64: 1, 1, 8>}]} {
    %cst = arith.constant 0.000000e+00 : f32
    %0 = vector.broadcast %cst : f32 to vector<128x8xf32>
    %c0 = arith.constant 0 : index
    %c0_0 = arith.constant 0 : index
    %c0_1 = arith.constant 0 : index
    %c0_2 = arith.constant 0 : index
    %c0_3 = arith.constant 0 : index
    %1 = vector.load %arg2[%c0, %c0_0, %c0_1, %c0_2, %c0_3] : memref<1x1x10x18x4xbf16, #tpu.memory_space<vmem>>, vector<1x1x8x16x4xbf16>
    %2 = vector.shape_cast %1 : vector<1x1x8x16x4xbf16> to vector<8x16x4xbf16>
    %3 = vector.shape_cast %2 : vector<8x16x4xbf16> to vector<128x4xbf16>
    %c0_4 = arith.constant 0 : index
    %c0_5 = arith.constant 0 : index
    %c0_6 = arith.constant 0 : index
    %4 = vector.load %arg3[%c0_4, %c0_5, %c0_6] : memref<9x4x8xbf16, #tpu.memory_space<vmem>>, vector<1x4x8xbf16>
    %5 = vector.shape_cast %4 : vector<1x4x8xbf16> to vector<4x8xbf16>
    %cst_7 = arith.constant dense<0.000000e+00> : vector<128x8xf32>
    %6 = tpu.matmul %3, %5, %cst_7 {dimension_numbers = #tpu.dot_dimension_numbers<[1], [0], [0], [1], [0, 0, 1, 1], [], []>} : vector<128x4xbf16>, vector<4x8xbf16>, vector<128x8xf32> -> vector<128x8xf32>
    %7 = arith.addf %0, %6 : vector<128x8xf32>
    %c0_8 = arith.constant 0 : index
    %c0_9 = arith.constant 0 : index
    %c0_10 = arith.constant 0 : index
    %c1 = arith.constant 1 : index
    %c0_11 = arith.constant 0 : index
    %8 = vector.load %arg2[%c0_8, %c0_9, %c0_10, %c1, %c0_11] : memref<1x1x10x18x4xbf16, #tpu.memory_space<vmem>>, vector<1x1x8x16x4xbf16>
    %9 = vector.shape_cast %8 : vector<1x1x8x16x4xbf16> to vector<8x16x4xbf16>
    %10 = vector.shape_cast %9 : vector<8x16x4xbf16> to vector<128x4xbf16>
    %c1_12 = arith.constant 1 : index
    %c0_13 = arith.constant 0 : index
    %c0_14 = arith.constant 0 : index
    %11 = vector.load %arg3[%c1_12, %c0_13, %c0_14] : memref<9x4x8xbf16, #tpu.memory_space<vmem>>, vector<1x4x8xbf16>
    %12 = vector.shape_cast %11 : vector<1x4x8xbf16> to vector<4x8xbf16>
    %cst_15 = arith.constant dense<0.000000e+00> : vector<128x8xf32>
    %13 = tpu.matmul %10, %12, %cst_15 {dimension_numbers = #tpu.dot_dimension_numbers<[1], [0], [0], [1], [0, 0, 1, 1], [], []>} : vector<128x4xbf16>, vector<4x8xbf16>, vector<128x8xf32> -> vector<128x8xf32>
    %14 = arith.addf %7, %13 : vector<128x8xf32>
    %c0_16 = arith.constant 0 : index
    %c0_17 = arith.constant 0 : index
    %c0_18 = arith.constant 0 : index
    %c2 = arith.constant 2 : index
    %c0_19 = arith.constant 0 : index
    %15 = vector.load %arg2[%c0_16, %c0_17, %c0_18, %c2, %c0_19] : memref<1x1x10x18x4xbf16, #tpu.memory_space<vmem>>, vector<1x1x8x16x4xbf16>
    %16 = vector.shape_cast %15 : vector<1x1x8x16x4xbf16> to vector<8x16x4xbf16>
    %17 = vector.shape_cast %16 : vector<8x16x4xbf16> to vector<128x4xbf16>
    %c2_20 = arith.constant 2 : index
    %c0_21 = arith.constant 0 : index
    %c0_22 = arith.constant 0 : index
    %18 = vector.load %arg3[%c2_20, %c0_21, %c0_22] : memref<9x4x8xbf16, #tpu.memory_space<vmem>>, vector<1x4x8xbf16>
    %19 = vector.shape_cast %18 : vector<1x4x8xbf16> to vector<4x8xbf16>
    %cst_23 = arith.constant dense<0.000000e+00> : vector<128x8xf32>
    %20 = tpu.matmul %17, %19, %cst_23 {dimension_numbers = #tpu.dot_dimension_numbers<[1], [0], [0], [1], [0, 0, 1, 1], [], []>} : vector<128x4xbf16>, vector<4x8xbf16>, vector<128x8xf32> -> vector<128x8xf32>
    %21 = arith.addf %14, %20 : vector<128x8xf32>
    %c0_24 = arith.constant 0 : index
    %c0_25 = arith.constant 0 : index
    %c1_26 = arith.constant 1 : index
    %c0_27 = arith.constant 0 : index
    %c0_28 = arith.constant 0 : index
    %22 = vector.load %arg2[%c0_24, %c0_25, %c1_26, %c0_27, %c0_28] : memref<1x1x10x18x4xbf16, #tpu.memory_space<vmem>>, vector<1x1x8x16x4xbf16>
    %23 = vector.shape_cast %22 : vector<1x1x8x16x4xbf16> to vector<8x16x4xbf16>
    %24 = vector.shape_cast %23 : vector<8x16x4xbf16> to vector<128x4xbf16>
    %c3 = arith.constant 3 : index
    %c0_29 = arith.constant 0 : index
    %c0_30 = arith.constant 0 : index
    %25 = vector.load %arg3[%c3, %c0_29, %c0_30] : memref<9x4x8xbf16, #tpu.memory_space<vmem>>, vector<1x4x8xbf16>
    %26 = vector.shape_cast %25 : vector<1x4x8xbf16> to vector<4x8xbf16>
    %cst_31 = arith.constant dense<0.000000e+00> : vector<128x8xf32>
    %27 = tpu.matmul %24, %26, %cst_31 {dimension_numbers = #tpu.dot_dimension_numbers<[1], [0], [0], [1], [0, 0, 1, 1], [], []>} : vector<128x4xbf16>, vector<4x8xbf16>, vector<128x8xf32> -> vector<128x8xf32>
    %28 = arith.addf %21, %27 : vector<128x8xf32>
    %c0_32 = arith.constant 0 : index
    %c0_33 = arith.constant 0 : index
    %c1_34 = arith.constant 1 : index
    %c1_35 = arith.constant 1 : index
    %c0_36 = arith.constant 0 : index
    %29 = vector.load %arg2[%c0_32, %c0_33, %c1_34, %c1_35, %c0_36] : memref<1x1x10x18x4xbf16, #tpu.memory_space<vmem>>, vector<1x1x8x16x4xbf16>
    %30 = vector.shape_cast %29 : vector<1x1x8x16x4xbf16> to vector<8x16x4xbf16>
    %31 = vector.shape_cast %30 : vector<8x16x4xbf16> to vector<128x4xbf16>
    %c4 = arith.constant 4 : index
    %c0_37 = arith.constant 0 : index
    %c0_38 = arith.constant 0 : index
    %32 = vector.load %arg3[%c4, %c0_37, %c0_38] : memref<9x4x8xbf16, #tpu.memory_space<vmem>>, vector<1x4x8xbf16>
    %33 = vector.shape_cast %32 : vector<1x4x8xbf16> to vector<4x8xbf16>
    %cst_39 = arith.constant dense<0.000000e+00> : vector<128x8xf32>
    %34 = tpu.matmul %31, %33, %cst_39 {dimension_numbers = #tpu.dot_dimension_numbers<[1], [0], [0], [1], [0, 0, 1, 1], [], []>} : vector<128x4xbf16>, vector<4x8xbf16>, vector<128x8xf32> -> vector<128x8xf32>
    %35 = arith.addf %28, %34 : vector<128x8xf32>
    %c0_40 = arith.constant 0 : index
    %c0_41 = arith.constant 0 : index
    %c1_42 = arith.constant 1 : index
    %c2_43 = arith.constant 2 : index
    %c0_44 = arith.constant 0 : index
    %36 = vector.load %arg2[%c0_40, %c0_41, %c1_42, %c2_43, %c0_44] : memref<1x1x10x18x4xbf16, #tpu.memory_space<vmem>>, vector<1x1x8x16x4xbf16>
    %37 = vector.shape_cast %36 : vector<1x1x8x16x4xbf16> to vector<8x16x4xbf16>
    %38 = vector.shape_cast %37 : vector<8x16x4xbf16> to vector<128x4xbf16>
    %c5 = arith.constant 5 : index
    %c0_45 = arith.constant 0 : index
    %c0_46 = arith.constant 0 : index
    %39 = vector.load %arg3[%c5, %c0_45, %c0_46] : memref<9x4x8xbf16, #tpu.memory_space<vmem>>, vector<1x4x8xbf16>
    %40 = vector.shape_cast %39 : vector<1x4x8xbf16> to vector<4x8xbf16>
    %cst_47 = arith.constant dense<0.000000e+00> : vector<128x8xf32>
    %41 = tpu.matmul %38, %40, %cst_47 {dimension_numbers = #tpu.dot_dimension_numbers<[1], [0], [0], [1], [0, 0, 1, 1], [], []>} : vector<128x4xbf16>, vector<4x8xbf16>, vector<128x8xf32> -> vector<128x8xf32>
    %42 = arith.addf %35, %41 : vector<128x8xf32>
    %c0_48 = arith.constant 0 : index
    %c0_49 = arith.constant 0 : index
    %c2_50 = arith.constant 2 : index
    %c0_51 = arith.constant 0 : index
    %c0_52 = arith.constant 0 : index
    %43 = vector.load %arg2[%c0_48, %c0_49, %c2_50, %c0_51, %c0_52] : memref<1x1x10x18x4xbf16, #tpu.memory_space<vmem>>, vector<1x1x8x16x4xbf16>
    %44 = vector.shape_cast %43 : vector<1x1x8x16x4xbf16> to vector<8x16x4xbf16>
    %45 = vector.shape_cast %44 : vector<8x16x4xbf16> to vector<128x4xbf16>
    %c6 = arith.constant 6 : index
    %c0_53 = arith.constant 0 : index
    %c0_54 = arith.constant 0 : index
    %46 = vector.load %arg3[%c6, %c0_53, %c0_54] : memref<9x4x8xbf16, #tpu.memory_space<vmem>>, vector<1x4x8xbf16>
    %47 = vector.shape_cast %46 : vector<1x4x8xbf16> to vector<4x8xbf16>
    %cst_55 = arith.constant dense<0.000000e+00> : vector<128x8xf32>
    %48 = tpu.matmul %45, %47, %cst_55 {dimension_numbers = #tpu.dot_dimension_numbers<[1], [0], [0], [1], [0, 0, 1, 1], [], []>} : vector<128x4xbf16>, vector<4x8xbf16>, vector<128x8xf32> -> vector<128x8xf32>
    %49 = arith.addf %42, %48 : vector<128x8xf32>
    %c0_56 = arith.constant 0 : index
    %c0_57 = arith.constant 0 : index
    %c2_58 = arith.constant 2 : index
    %c1_59 = arith.constant 1 : index
    %c0_60 = arith.constant 0 : index
    %50 = vector.load %arg2[%c0_56, %c0_57, %c2_58, %c1_59, %c0_60] : memref<1x1x10x18x4xbf16, #tpu.memory_space<vmem>>, vector<1x1x8x16x4xbf16>
    %51 = vector.shape_cast %50 : vector<1x1x8x16x4xbf16> to vector<8x16x4xbf16>
    %52 = vector.shape_cast %51 : vector<8x16x4xbf16> to vector<128x4xbf16>
    %c7 = arith.constant 7 : index
    %c0_61 = arith.constant 0 : index
    %c0_62 = arith.constant 0 : index
    %53 = vector.load %arg3[%c7, %c0_61, %c0_62] : memref<9x4x8xbf16, #tpu.memory_space<vmem>>, vector<1x4x8xbf16>
    %54 = vector.shape_cast %53 : vector<1x4x8xbf16> to vector<4x8xbf16>
    %cst_63 = arith.constant dense<0.000000e+00> : vector<128x8xf32>
    %55 = tpu.matmul %52, %54, %cst_63 {dimension_numbers = #tpu.dot_dimension_numbers<[1], [0], [0], [1], [0, 0, 1, 1], [], []>} : vector<128x4xbf16>, vector<4x8xbf16>, vector<128x8xf32> -> vector<128x8xf32>
    %56 = arith.addf %49, %55 : vector<128x8xf32>
    %c0_64 = arith.constant 0 : index
    %c0_65 = arith.constant 0 : index
    %c2_66 = arith.constant 2 : index
    %c2_67 = arith.constant 2 : index
    %c0_68 = arith.constant 0 : index
    %57 = vector.load %arg2[%c0_64, %c0_65, %c2_66, %c2_67, %c0_68] : memref<1x1x10x18x4xbf16, #tpu.memory_space<vmem>>, vector<1x1x8x16x4xbf16>
    %58 = vector.shape_cast %57 : vector<1x1x8x16x4xbf16> to vector<8x16x4xbf16>
    %59 = vector.shape_cast %58 : vector<8x16x4xbf16> to vector<128x4xbf16>
    %c8 = arith.constant 8 : index
    %c0_69 = arith.constant 0 : index
    %c0_70 = arith.constant 0 : index
    %60 = vector.load %arg3[%c8, %c0_69, %c0_70] : memref<9x4x8xbf16, #tpu.memory_space<vmem>>, vector<1x4x8xbf16>
    %61 = vector.shape_cast %60 : vector<1x4x8xbf16> to vector<4x8xbf16>
    %cst_71 = arith.constant dense<0.000000e+00> : vector<128x8xf32>
    %62 = tpu.matmul %59, %61, %cst_71 {dimension_numbers = #tpu.dot_dimension_numbers<[1], [0], [0], [1], [0, 0, 1, 1], [], []>} : vector<128x4xbf16>, vector<4x8xbf16>, vector<128x8xf32> -> vector<128x8xf32>
    %63 = arith.addf %56, %62 : vector<128x8xf32>
    %c0_72 = arith.constant 0 : index
    %c0_73 = arith.constant 0 : index
    %c0_74 = arith.constant 0 : index
    %64 = vector.load %arg4[%c0_72, %c0_73, %c0_74] : memref<1x128x8xf32, #tpu.memory_space<vmem>>, vector<1x128x8xf32>
    %65 = vector.shape_cast %64 : vector<1x128x8xf32> to vector<128x8xf32>
    %66 = vector.shape_cast %63 : vector<128x8xf32> to vector<1x128x8xf32>
    tpu.vector_store %arg4[%c0_72, %c0_73, %c0_74], %66 {strides = array<i32>} : memref<1x128x8xf32, #tpu.memory_space<vmem>>, vector<1x128x8xf32>,
    %c0_i32 = arith.constant 0 : i32
    %67 = arith.cmpi eq, %arg1, %c0_i32 : i32
    %68 = arith.extui %67 : i1 to i32
    %c0_i32_75 = arith.constant 0 : i32
    %69 = arith.cmpi ne, %68, %c0_i32_75 : i32
    scf.if %69 {
      %cst_90 = arith.constant 0.000000e+00 : f32
      %87 = vector.broadcast %cst_90 : f32 to vector<1x8xf32>
      %c0_91 = arith.constant 0 : index
      %c0_92 = arith.constant 0 : index
      %c0_93 = arith.constant 0 : index
      %88 = vector.load %arg5[%c0_91, %c0_92, %c0_93] : memref<1x1x8xf32, #tpu.memory_space<vmem>>, vector<1x1x8xf32>
      %89 = vector.shape_cast %88 : vector<1x1x8xf32> to vector<1x8xf32>
      %90 = vector.shape_cast %87 : vector<1x8xf32> to vector<1x1x8xf32>
      tpu.vector_store %arg5[%c0_91, %c0_92, %c0_93], %90 {strides = array<i32>} : memref<1x1x8xf32, #tpu.memory_space<vmem>>, vector<1x1x8xf32>,
      %cst_94 = arith.constant 0.000000e+00 : f32
      %91 = vector.broadcast %cst_94 : f32 to vector<1x8xf32>
      %c0_95 = arith.constant 0 : index
      %c0_96 = arith.constant 0 : index
      %c0_97 = arith.constant 0 : index
      %92 = vector.load %arg6[%c0_95, %c0_96, %c0_97] : memref<1x1x8xf32, #tpu.memory_space<vmem>>, vector<1x1x8xf32>
      %93 = vector.shape_cast %92 : vector<1x1x8xf32> to vector<1x8xf32>
      %94 = vector.shape_cast %91 : vector<1x8xf32> to vector<1x1x8xf32>
      tpu.vector_store %arg6[%c0_95, %c0_96, %c0_97], %94 {strides = array<i32>} : memref<1x1x8xf32, #tpu.memory_space<vmem>>, vector<1x1x8xf32>,
    } else {
    }
    %c0_76 = arith.constant 0 : index
    %c0_77 = arith.constant 0 : index
    %c0_78 = arith.constant 0 : index
    %70 = vector.load %arg5[%c0_76, %c0_77, %c0_78] : memref<1x1x8xf32, #tpu.memory_space<vmem>>, vector<1x1x8xf32>
    %71 = vector.shape_cast %70 : vector<1x1x8xf32> to vector<1x8xf32>
    %cst_79 = arith.constant dense<0.000000e+00> : vector<8xf32>
    %72 = vector.multi_reduction <add>, %63, %cst_79 [0] : vector<128x8xf32> to vector<8xf32>
    %73 = vector.shape_cast %72 : vector<8xf32> to vector<1x8xf32>
    %74 = arith.addf %71, %73 : vector<1x8xf32>
    %c0_80 = arith.constant 0 : index
    %c0_81 = arith.constant 0 : index
    %c0_82 = arith.constant 0 : index
    %75 = vector.load %arg5[%c0_80, %c0_81, %c0_82] : memref<1x1x8xf32, #tpu.memory_space<vmem>>, vector<1x1x8xf32>
    %76 = vector.shape_cast %75 : vector<1x1x8xf32> to vector<1x8xf32>
    %77 = vector.shape_cast %74 : vector<1x8xf32> to vector<1x1x8xf32>
    tpu.vector_store %arg5[%c0_80, %c0_81, %c0_82], %77 {strides = array<i32>} : memref<1x1x8xf32, #tpu.memory_space<vmem>>, vector<1x1x8xf32>,
    %c0_83 = arith.constant 0 : index
    %c0_84 = arith.constant 0 : index
    %c0_85 = arith.constant 0 : index
    %78 = vector.load %arg6[%c0_83, %c0_84, %c0_85] : memref<1x1x8xf32, #tpu.memory_space<vmem>>, vector<1x1x8xf32>
    %79 = vector.shape_cast %78 : vector<1x1x8xf32> to vector<1x8xf32>
    %80 = arith.mulf %63, %63 : vector<128x8xf32>
    %cst_86 = arith.constant dense<0.000000e+00> : vector<8xf32>
    %81 = vector.multi_reduction <add>, %80, %cst_86 [0] : vector<128x8xf32> to vector<8xf32>
    %82 = vector.shape_cast %81 : vector<8xf32> to vector<1x8xf32>
    %83 = arith.addf %79, %82 : vector<1x8xf32>
    %c0_87 = arith.constant 0 : index
    %c0_88 = arith.constant 0 : index
    %c0_89 = arith.constant 0 : index
    %84 = vector.load %arg6[%c0_87, %c0_88, %c0_89] : memref<1x1x8xf32, #tpu.memory_space<vmem>>, vector<1x1x8xf32>
    %85 = vector.shape_cast %84 : vector<1x1x8xf32> to vector<1x8xf32>
    %86 = vector.shape_cast %83 : vector<1x8xf32> to vector<1x1x8xf32>
    tpu.vector_store %arg6[%c0_87, %c0_88, %c0_89], %86 {strides = array<i32>} : memref<1x1x8xf32, #tpu.memory_space<vmem>>, vector<1x1x8xf32>,
    return
  }
  func.func @transform_0(%arg0: i32, %arg1: i32) -> (i32, i32, i32, i32, i32) {
    %c0_i32 = arith.constant 0 : i32
    %c0_i32_0 = arith.constant 0 : i32
    %c0_i32_1 = arith.constant 0 : i32
    %c0_i32_2 = arith.constant 0 : i32
    return %arg0, %arg1, %c0_i32, %c0_i32_0, %c0_i32_1 : i32, i32, i32, i32, i32
  }
  func.func @transform_1(%arg0: i32, %arg1: i32) -> (i32, i32, i32) {
    %c0_i32 = arith.constant 0 : i32
    %c0_i32_0 = arith.constant 0 : i32
    %c0_i32_1 = arith.constant 0 : i32
    %c0_i32_2 = arith.constant 0 : i32
    return %c0_i32, %c0_i32_0, %c0_i32_1 : i32, i32, i32
  }
  func.func @transform_2(%arg0: i32, %arg1: i32) -> (i32, i32, i32) {
    %c0_i32 = arith.constant 0 : i32
    %c0_i32_0 = arith.constant 0 : i32
    return %arg0, %arg1, %c0_i32 : i32, i32, i32
  }
  func.func @transform_3(%arg0: i32, %arg1: i32) -> (i32, i32, i32) {
    %c0_i32 = arith.constant 0 : i32
    %c0_i32_0 = arith.constant 0 : i32
    %c0_i32_1 = arith.constant 0 : i32
    return %arg0, %c0_i32, %c0_i32_0 : i32, i32, i32
  }
  func.func @transform_4(%arg0: i32, %arg1: i32) -> (i32, i32, i32) {
    %c0_i32 = arith.constant 0 : i32
    %c0_i32_0 = arith.constant 0 : i32
    %c0_i32_1 = arith.constant 0 : i32
    return %arg0, %c0_i32, %c0_i32_0 : i32, i32, i32
  }
}

module attributes {stable_mosaic.version = 11 : i64} {
  func.func @kernel(%arg0: i32, %arg1: i32, %arg2: memref<1x128x8xf32, #tpu.memory_space<vmem>>, %arg3: memref<1x1x8xf32, #tpu.memory_space<vmem>>, %arg4: memref<1x1x8xf32, #tpu.memory_space<vmem>>, %arg5: memref<1x128x8xbf16, #tpu.memory_space<vmem>>) attributes {dimension_semantics = [#tpu.dimension_semantics<parallel>, #tpu.dimension_semantics<parallel>], iteration_bounds = array<i64: 2, 2>, scalar_prefetch = 0 : i64, scratch_operands = 0 : i64, tpu.core_type = #tpu.core_type<tc>, window_params = [{transform_indices = @transform_0, window_bounds = array<i64: 1, 128, 8>}, {transform_indices = @transform_1, window_bounds = array<i64: 1, 1, 8>}, {transform_indices = @transform_2, window_bounds = array<i64: 1, 1, 8>}, {transform_indices = @transform_3, window_bounds = array<i64: 1, 128, 8>}]} {
    %c0 = arith.constant 0 : index
    %c0_0 = arith.constant 0 : index
    %c0_1 = arith.constant 0 : index
    %0 = vector.load %arg3[%c0, %c0_0, %c0_1] : memref<1x1x8xf32, #tpu.memory_space<vmem>>, vector<1x1x8xf32>
    %1 = vector.shape_cast %0 : vector<1x1x8xf32> to vector<1x8xf32>
    %cst = arith.constant 3.906250e-03 : f32
    %2 = vector.broadcast %cst : f32 to vector<1x8xf32>
    %3 = arith.mulf %1, %2 : vector<1x8xf32>
    %c0_2 = arith.constant 0 : index
    %c0_3 = arith.constant 0 : index
    %c0_4 = arith.constant 0 : index
    %4 = vector.load %arg4[%c0_2, %c0_3, %c0_4] : memref<1x1x8xf32, #tpu.memory_space<vmem>>, vector<1x1x8xf32>
    %5 = vector.shape_cast %4 : vector<1x1x8xf32> to vector<1x8xf32>
    %cst_5 = arith.constant 3.906250e-03 : f32
    %6 = vector.broadcast %cst_5 : f32 to vector<1x8xf32>
    %7 = arith.mulf %5, %6 : vector<1x8xf32>
    %8 = arith.mulf %3, %3 : vector<1x8xf32>
    %9 = arith.subf %7, %8 : vector<1x8xf32>
    %c0_6 = arith.constant 0 : index
    %c0_7 = arith.constant 0 : index
    %c0_8 = arith.constant 0 : index
    %10 = vector.load %arg2[%c0_6, %c0_7, %c0_8] : memref<1x128x8xf32, #tpu.memory_space<vmem>>, vector<1x128x8xf32>
    %11 = vector.shape_cast %10 : vector<1x128x8xf32> to vector<128x8xf32>
    %12 = vector.broadcast %3 : vector<1x8xf32> to vector<128x8xf32>
    %13 = arith.subf %11, %12 : vector<128x8xf32>
    %cst_9 = arith.constant 9.99999974E-6 : f32
    %14 = vector.broadcast %cst_9 : f32 to vector<1x8xf32>
    %15 = arith.addf %9, %14 : vector<1x8xf32>
    %16 = math.rsqrt %15 : vector<1x8xf32>
    %17 = vector.broadcast %16 : vector<1x8xf32> to vector<128x8xf32>
    %18 = arith.mulf %13, %17 : vector<128x8xf32>
    %cst_10 = arith.constant 0.000000e+00 : f32
    %19 = vector.broadcast %cst_10 : f32 to vector<128x8xf32>
    %20 = arith.maximumf %18, %19 : vector<128x8xf32>
    %21 = arith.truncf %20 : vector<128x8xf32> to vector<128x8xbf16>
    %c0_11 = arith.constant 0 : index
    %c0_12 = arith.constant 0 : index
    %c0_13 = arith.constant 0 : index
    %22 = vector.load %arg5[%c0_11, %c0_12, %c0_13] : memref<1x128x8xbf16, #tpu.memory_space<vmem>>, vector<1x128x8xbf16>
    %23 = vector.shape_cast %22 : vector<1x128x8xbf16> to vector<128x8xbf16>
    %24 = vector.shape_cast %21 : vector<128x8xbf16> to vector<1x128x8xbf16>
    tpu.vector_store %arg5[%c0_11, %c0_12, %c0_13], %24 {strides = array<i32>} : memref<1x128x8xbf16, #tpu.memory_space<vmem>>, vector<1x128x8xbf16>,
    return
  }
  func.func @transform_0(%arg0: i32, %arg1: i32) -> (i32, i32, i32) {
    %c0_i32 = arith.constant 0 : i32
    %c0_i32_0 = arith.constant 0 : i32
    return %arg0, %arg1, %c0_i32 : i32, i32, i32
  }
  func.func @transform_1(%arg0: i32, %arg1: i32) -> (i32, i32, i32) {
    %c0_i32 = arith.constant 0 : i32
    %c0_i32_0 = arith.constant 0 : i32
    %c0_i32_1 = arith.constant 0 : i32
    return %arg0, %c0_i32, %c0_i32_0 : i32, i32, i32
  }
  func.func @transform_2(%arg0: i32, %arg1: i32) -> (i32, i32, i32) {
    %c0_i32 = arith.constant 0 : i32
    %c0_i32_0 = arith.constant 0 : i32
    %c0_i32_1 = arith.constant 0 : i32
    return %arg0, %c0_i32, %c0_i32_0 : i32, i32, i32
  }
  func.func @transform_3(%arg0: i32, %arg1: i32) -> (i32, i32, i32) {
    %c0_i32 = arith.constant 0 : i32
    %c0_i32_0 = arith.constant 0 : i32
    return %arg0, %arg1, %c0_i32 : i32, i32, i32
  }
}

module attributes {stable_mosaic.version = 11 : i64} {
  func.func @kernel(%arg0: i32, %arg1: i32, %arg2: memref<1x1x10x18x8xbf16, #tpu.memory_space<vmem>>, %arg3: memref<9x8x8xbf16, #tpu.memory_space<vmem>>, %arg4: memref<1x128x8xf32, #tpu.memory_space<vmem>>, %arg5: memref<1x1x8xf32, #tpu.memory_space<vmem>>, %arg6: memref<1x1x8xf32, #tpu.memory_space<vmem>>) attributes {dimension_semantics = [#tpu.dimension_semantics<parallel>, #tpu.dimension_semantics<arbitrary>], iteration_bounds = array<i64: 2, 2>, scalar_prefetch = 0 : i64, scratch_operands = 0 : i64, tpu.core_type = #tpu.core_type<tc>, window_params = [{transform_indices = @transform_0, window_bounds = array<i64: 1, 1, 10, 18, 8>}, {pipeline_mode = #tpu.pipeline_mode<synchronous>, transform_indices = @transform_1, window_bounds = array<i64: 9, 8, 8>}, {transform_indices = @transform_2, window_bounds = array<i64: 1, 128, 8>}, {transform_indices = @transform_3, window_bounds = array<i64: 1, 1, 8>}, {transform_indices = @transform_4, window_bounds = array<i64: 1, 1, 8>}]} {
    %cst = arith.constant 0.000000e+00 : f32
    %0 = vector.broadcast %cst : f32 to vector<128x8xf32>
    %c0 = arith.constant 0 : index
    %c0_0 = arith.constant 0 : index
    %c0_1 = arith.constant 0 : index
    %c0_2 = arith.constant 0 : index
    %c0_3 = arith.constant 0 : index
    %1 = vector.load %arg2[%c0, %c0_0, %c0_1, %c0_2, %c0_3] : memref<1x1x10x18x8xbf16, #tpu.memory_space<vmem>>, vector<1x1x8x16x8xbf16>
    %2 = vector.shape_cast %1 : vector<1x1x8x16x8xbf16> to vector<8x16x8xbf16>
    %3 = vector.shape_cast %2 : vector<8x16x8xbf16> to vector<128x8xbf16>
    %c0_4 = arith.constant 0 : index
    %c0_5 = arith.constant 0 : index
    %c0_6 = arith.constant 0 : index
    %4 = vector.load %arg3[%c0_4, %c0_5, %c0_6] : memref<9x8x8xbf16, #tpu.memory_space<vmem>>, vector<1x8x8xbf16>
    %5 = vector.shape_cast %4 : vector<1x8x8xbf16> to vector<8x8xbf16>
    %cst_7 = arith.constant dense<0.000000e+00> : vector<128x8xf32>
    %6 = tpu.matmul %3, %5, %cst_7 {dimension_numbers = #tpu.dot_dimension_numbers<[1], [0], [0], [1], [0, 0, 1, 1], [], []>} : vector<128x8xbf16>, vector<8x8xbf16>, vector<128x8xf32> -> vector<128x8xf32>
    %7 = arith.addf %0, %6 : vector<128x8xf32>
    %c0_8 = arith.constant 0 : index
    %c0_9 = arith.constant 0 : index
    %c0_10 = arith.constant 0 : index
    %c1 = arith.constant 1 : index
    %c0_11 = arith.constant 0 : index
    %8 = vector.load %arg2[%c0_8, %c0_9, %c0_10, %c1, %c0_11] : memref<1x1x10x18x8xbf16, #tpu.memory_space<vmem>>, vector<1x1x8x16x8xbf16>
    %9 = vector.shape_cast %8 : vector<1x1x8x16x8xbf16> to vector<8x16x8xbf16>
    %10 = vector.shape_cast %9 : vector<8x16x8xbf16> to vector<128x8xbf16>
    %c1_12 = arith.constant 1 : index
    %c0_13 = arith.constant 0 : index
    %c0_14 = arith.constant 0 : index
    %11 = vector.load %arg3[%c1_12, %c0_13, %c0_14] : memref<9x8x8xbf16, #tpu.memory_space<vmem>>, vector<1x8x8xbf16>
    %12 = vector.shape_cast %11 : vector<1x8x8xbf16> to vector<8x8xbf16>
    %cst_15 = arith.constant dense<0.000000e+00> : vector<128x8xf32>
    %13 = tpu.matmul %10, %12, %cst_15 {dimension_numbers = #tpu.dot_dimension_numbers<[1], [0], [0], [1], [0, 0, 1, 1], [], []>} : vector<128x8xbf16>, vector<8x8xbf16>, vector<128x8xf32> -> vector<128x8xf32>
    %14 = arith.addf %7, %13 : vector<128x8xf32>
    %c0_16 = arith.constant 0 : index
    %c0_17 = arith.constant 0 : index
    %c0_18 = arith.constant 0 : index
    %c2 = arith.constant 2 : index
    %c0_19 = arith.constant 0 : index
    %15 = vector.load %arg2[%c0_16, %c0_17, %c0_18, %c2, %c0_19] : memref<1x1x10x18x8xbf16, #tpu.memory_space<vmem>>, vector<1x1x8x16x8xbf16>
    %16 = vector.shape_cast %15 : vector<1x1x8x16x8xbf16> to vector<8x16x8xbf16>
    %17 = vector.shape_cast %16 : vector<8x16x8xbf16> to vector<128x8xbf16>
    %c2_20 = arith.constant 2 : index
    %c0_21 = arith.constant 0 : index
    %c0_22 = arith.constant 0 : index
    %18 = vector.load %arg3[%c2_20, %c0_21, %c0_22] : memref<9x8x8xbf16, #tpu.memory_space<vmem>>, vector<1x8x8xbf16>
    %19 = vector.shape_cast %18 : vector<1x8x8xbf16> to vector<8x8xbf16>
    %cst_23 = arith.constant dense<0.000000e+00> : vector<128x8xf32>
    %20 = tpu.matmul %17, %19, %cst_23 {dimension_numbers = #tpu.dot_dimension_numbers<[1], [0], [0], [1], [0, 0, 1, 1], [], []>} : vector<128x8xbf16>, vector<8x8xbf16>, vector<128x8xf32> -> vector<128x8xf32>
    %21 = arith.addf %14, %20 : vector<128x8xf32>
    %c0_24 = arith.constant 0 : index
    %c0_25 = arith.constant 0 : index
    %c1_26 = arith.constant 1 : index
    %c0_27 = arith.constant 0 : index
    %c0_28 = arith.constant 0 : index
    %22 = vector.load %arg2[%c0_24, %c0_25, %c1_26, %c0_27, %c0_28] : memref<1x1x10x18x8xbf16, #tpu.memory_space<vmem>>, vector<1x1x8x16x8xbf16>
    %23 = vector.shape_cast %22 : vector<1x1x8x16x8xbf16> to vector<8x16x8xbf16>
    %24 = vector.shape_cast %23 : vector<8x16x8xbf16> to vector<128x8xbf16>
    %c3 = arith.constant 3 : index
    %c0_29 = arith.constant 0 : index
    %c0_30 = arith.constant 0 : index
    %25 = vector.load %arg3[%c3, %c0_29, %c0_30] : memref<9x8x8xbf16, #tpu.memory_space<vmem>>, vector<1x8x8xbf16>
    %26 = vector.shape_cast %25 : vector<1x8x8xbf16> to vector<8x8xbf16>
    %cst_31 = arith.constant dense<0.000000e+00> : vector<128x8xf32>
    %27 = tpu.matmul %24, %26, %cst_31 {dimension_numbers = #tpu.dot_dimension_numbers<[1], [0], [0], [1], [0, 0, 1, 1], [], []>} : vector<128x8xbf16>, vector<8x8xbf16>, vector<128x8xf32> -> vector<128x8xf32>
    %28 = arith.addf %21, %27 : vector<128x8xf32>
    %c0_32 = arith.constant 0 : index
    %c0_33 = arith.constant 0 : index
    %c1_34 = arith.constant 1 : index
    %c1_35 = arith.constant 1 : index
    %c0_36 = arith.constant 0 : index
    %29 = vector.load %arg2[%c0_32, %c0_33, %c1_34, %c1_35, %c0_36] : memref<1x1x10x18x8xbf16, #tpu.memory_space<vmem>>, vector<1x1x8x16x8xbf16>
    %30 = vector.shape_cast %29 : vector<1x1x8x16x8xbf16> to vector<8x16x8xbf16>
    %31 = vector.shape_cast %30 : vector<8x16x8xbf16> to vector<128x8xbf16>
    %c4 = arith.constant 4 : index
    %c0_37 = arith.constant 0 : index
    %c0_38 = arith.constant 0 : index
    %32 = vector.load %arg3[%c4, %c0_37, %c0_38] : memref<9x8x8xbf16, #tpu.memory_space<vmem>>, vector<1x8x8xbf16>
    %33 = vector.shape_cast %32 : vector<1x8x8xbf16> to vector<8x8xbf16>
    %cst_39 = arith.constant dense<0.000000e+00> : vector<128x8xf32>
    %34 = tpu.matmul %31, %33, %cst_39 {dimension_numbers = #tpu.dot_dimension_numbers<[1], [0], [0], [1], [0, 0, 1, 1], [], []>} : vector<128x8xbf16>, vector<8x8xbf16>, vector<128x8xf32> -> vector<128x8xf32>
    %35 = arith.addf %28, %34 : vector<128x8xf32>
    %c0_40 = arith.constant 0 : index
    %c0_41 = arith.constant 0 : index
    %c1_42 = arith.constant 1 : index
    %c2_43 = arith.constant 2 : index
    %c0_44 = arith.constant 0 : index
    %36 = vector.load %arg2[%c0_40, %c0_41, %c1_42, %c2_43, %c0_44] : memref<1x1x10x18x8xbf16, #tpu.memory_space<vmem>>, vector<1x1x8x16x8xbf16>
    %37 = vector.shape_cast %36 : vector<1x1x8x16x8xbf16> to vector<8x16x8xbf16>
    %38 = vector.shape_cast %37 : vector<8x16x8xbf16> to vector<128x8xbf16>
    %c5 = arith.constant 5 : index
    %c0_45 = arith.constant 0 : index
    %c0_46 = arith.constant 0 : index
    %39 = vector.load %arg3[%c5, %c0_45, %c0_46] : memref<9x8x8xbf16, #tpu.memory_space<vmem>>, vector<1x8x8xbf16>
    %40 = vector.shape_cast %39 : vector<1x8x8xbf16> to vector<8x8xbf16>
    %cst_47 = arith.constant dense<0.000000e+00> : vector<128x8xf32>
    %41 = tpu.matmul %38, %40, %cst_47 {dimension_numbers = #tpu.dot_dimension_numbers<[1], [0], [0], [1], [0, 0, 1, 1], [], []>} : vector<128x8xbf16>, vector<8x8xbf16>, vector<128x8xf32> -> vector<128x8xf32>
    %42 = arith.addf %35, %41 : vector<128x8xf32>
    %c0_48 = arith.constant 0 : index
    %c0_49 = arith.constant 0 : index
    %c2_50 = arith.constant 2 : index
    %c0_51 = arith.constant 0 : index
    %c0_52 = arith.constant 0 : index
    %43 = vector.load %arg2[%c0_48, %c0_49, %c2_50, %c0_51, %c0_52] : memref<1x1x10x18x8xbf16, #tpu.memory_space<vmem>>, vector<1x1x8x16x8xbf16>
    %44 = vector.shape_cast %43 : vector<1x1x8x16x8xbf16> to vector<8x16x8xbf16>
    %45 = vector.shape_cast %44 : vector<8x16x8xbf16> to vector<128x8xbf16>
    %c6 = arith.constant 6 : index
    %c0_53 = arith.constant 0 : index
    %c0_54 = arith.constant 0 : index
    %46 = vector.load %arg3[%c6, %c0_53, %c0_54] : memref<9x8x8xbf16, #tpu.memory_space<vmem>>, vector<1x8x8xbf16>
    %47 = vector.shape_cast %46 : vector<1x8x8xbf16> to vector<8x8xbf16>
    %cst_55 = arith.constant dense<0.000000e+00> : vector<128x8xf32>
    %48 = tpu.matmul %45, %47, %cst_55 {dimension_numbers = #tpu.dot_dimension_numbers<[1], [0], [0], [1], [0, 0, 1, 1], [], []>} : vector<128x8xbf16>, vector<8x8xbf16>, vector<128x8xf32> -> vector<128x8xf32>
    %49 = arith.addf %42, %48 : vector<128x8xf32>
    %c0_56 = arith.constant 0 : index
    %c0_57 = arith.constant 0 : index
    %c2_58 = arith.constant 2 : index
    %c1_59 = arith.constant 1 : index
    %c0_60 = arith.constant 0 : index
    %50 = vector.load %arg2[%c0_56, %c0_57, %c2_58, %c1_59, %c0_60] : memref<1x1x10x18x8xbf16, #tpu.memory_space<vmem>>, vector<1x1x8x16x8xbf16>
    %51 = vector.shape_cast %50 : vector<1x1x8x16x8xbf16> to vector<8x16x8xbf16>
    %52 = vector.shape_cast %51 : vector<8x16x8xbf16> to vector<128x8xbf16>
    %c7 = arith.constant 7 : index
    %c0_61 = arith.constant 0 : index
    %c0_62 = arith.constant 0 : index
    %53 = vector.load %arg3[%c7, %c0_61, %c0_62] : memref<9x8x8xbf16, #tpu.memory_space<vmem>>, vector<1x8x8xbf16>
    %54 = vector.shape_cast %53 : vector<1x8x8xbf16> to vector<8x8xbf16>
    %cst_63 = arith.constant dense<0.000000e+00> : vector<128x8xf32>
    %55 = tpu.matmul %52, %54, %cst_63 {dimension_numbers = #tpu.dot_dimension_numbers<[1], [0], [0], [1], [0, 0, 1, 1], [], []>} : vector<128x8xbf16>, vector<8x8xbf16>, vector<128x8xf32> -> vector<128x8xf32>
    %56 = arith.addf %49, %55 : vector<128x8xf32>
    %c0_64 = arith.constant 0 : index
    %c0_65 = arith.constant 0 : index
    %c2_66 = arith.constant 2 : index
    %c2_67 = arith.constant 2 : index
    %c0_68 = arith.constant 0 : index
    %57 = vector.load %arg2[%c0_64, %c0_65, %c2_66, %c2_67, %c0_68] : memref<1x1x10x18x8xbf16, #tpu.memory_space<vmem>>, vector<1x1x8x16x8xbf16>
    %58 = vector.shape_cast %57 : vector<1x1x8x16x8xbf16> to vector<8x16x8xbf16>
    %59 = vector.shape_cast %58 : vector<8x16x8xbf16> to vector<128x8xbf16>
    %c8 = arith.constant 8 : index
    %c0_69 = arith.constant 0 : index
    %c0_70 = arith.constant 0 : index
    %60 = vector.load %arg3[%c8, %c0_69, %c0_70] : memref<9x8x8xbf16, #tpu.memory_space<vmem>>, vector<1x8x8xbf16>
    %61 = vector.shape_cast %60 : vector<1x8x8xbf16> to vector<8x8xbf16>
    %cst_71 = arith.constant dense<0.000000e+00> : vector<128x8xf32>
    %62 = tpu.matmul %59, %61, %cst_71 {dimension_numbers = #tpu.dot_dimension_numbers<[1], [0], [0], [1], [0, 0, 1, 1], [], []>} : vector<128x8xbf16>, vector<8x8xbf16>, vector<128x8xf32> -> vector<128x8xf32>
    %63 = arith.addf %56, %62 : vector<128x8xf32>
    %c0_72 = arith.constant 0 : index
    %c0_73 = arith.constant 0 : index
    %c0_74 = arith.constant 0 : index
    %64 = vector.load %arg4[%c0_72, %c0_73, %c0_74] : memref<1x128x8xf32, #tpu.memory_space<vmem>>, vector<1x128x8xf32>
    %65 = vector.shape_cast %64 : vector<1x128x8xf32> to vector<128x8xf32>
    %66 = vector.shape_cast %63 : vector<128x8xf32> to vector<1x128x8xf32>
    tpu.vector_store %arg4[%c0_72, %c0_73, %c0_74], %66 {strides = array<i32>} : memref<1x128x8xf32, #tpu.memory_space<vmem>>, vector<1x128x8xf32>,
    %c0_i32 = arith.constant 0 : i32
    %67 = arith.cmpi eq, %arg1, %c0_i32 : i32
    %68 = arith.extui %67 : i1 to i32
    %c0_i32_75 = arith.constant 0 : i32
    %69 = arith.cmpi ne, %68, %c0_i32_75 : i32
    scf.if %69 {
      %cst_90 = arith.constant 0.000000e+00 : f32
      %87 = vector.broadcast %cst_90 : f32 to vector<1x8xf32>
      %c0_91 = arith.constant 0 : index
      %c0_92 = arith.constant 0 : index
      %c0_93 = arith.constant 0 : index
      %88 = vector.load %arg5[%c0_91, %c0_92, %c0_93] : memref<1x1x8xf32, #tpu.memory_space<vmem>>, vector<1x1x8xf32>
      %89 = vector.shape_cast %88 : vector<1x1x8xf32> to vector<1x8xf32>
      %90 = vector.shape_cast %87 : vector<1x8xf32> to vector<1x1x8xf32>
      tpu.vector_store %arg5[%c0_91, %c0_92, %c0_93], %90 {strides = array<i32>} : memref<1x1x8xf32, #tpu.memory_space<vmem>>, vector<1x1x8xf32>,
      %cst_94 = arith.constant 0.000000e+00 : f32
      %91 = vector.broadcast %cst_94 : f32 to vector<1x8xf32>
      %c0_95 = arith.constant 0 : index
      %c0_96 = arith.constant 0 : index
      %c0_97 = arith.constant 0 : index
      %92 = vector.load %arg6[%c0_95, %c0_96, %c0_97] : memref<1x1x8xf32, #tpu.memory_space<vmem>>, vector<1x1x8xf32>
      %93 = vector.shape_cast %92 : vector<1x1x8xf32> to vector<1x8xf32>
      %94 = vector.shape_cast %91 : vector<1x8xf32> to vector<1x1x8xf32>
      tpu.vector_store %arg6[%c0_95, %c0_96, %c0_97], %94 {strides = array<i32>} : memref<1x1x8xf32, #tpu.memory_space<vmem>>, vector<1x1x8xf32>,
    } else {
    }
    %c0_76 = arith.constant 0 : index
    %c0_77 = arith.constant 0 : index
    %c0_78 = arith.constant 0 : index
    %70 = vector.load %arg5[%c0_76, %c0_77, %c0_78] : memref<1x1x8xf32, #tpu.memory_space<vmem>>, vector<1x1x8xf32>
    %71 = vector.shape_cast %70 : vector<1x1x8xf32> to vector<1x8xf32>
    %cst_79 = arith.constant dense<0.000000e+00> : vector<8xf32>
    %72 = vector.multi_reduction <add>, %63, %cst_79 [0] : vector<128x8xf32> to vector<8xf32>
    %73 = vector.shape_cast %72 : vector<8xf32> to vector<1x8xf32>
    %74 = arith.addf %71, %73 : vector<1x8xf32>
    %c0_80 = arith.constant 0 : index
    %c0_81 = arith.constant 0 : index
    %c0_82 = arith.constant 0 : index
    %75 = vector.load %arg5[%c0_80, %c0_81, %c0_82] : memref<1x1x8xf32, #tpu.memory_space<vmem>>, vector<1x1x8xf32>
    %76 = vector.shape_cast %75 : vector<1x1x8xf32> to vector<1x8xf32>
    %77 = vector.shape_cast %74 : vector<1x8xf32> to vector<1x1x8xf32>
    tpu.vector_store %arg5[%c0_80, %c0_81, %c0_82], %77 {strides = array<i32>} : memref<1x1x8xf32, #tpu.memory_space<vmem>>, vector<1x1x8xf32>,
    %c0_83 = arith.constant 0 : index
    %c0_84 = arith.constant 0 : index
    %c0_85 = arith.constant 0 : index
    %78 = vector.load %arg6[%c0_83, %c0_84, %c0_85] : memref<1x1x8xf32, #tpu.memory_space<vmem>>, vector<1x1x8xf32>
    %79 = vector.shape_cast %78 : vector<1x1x8xf32> to vector<1x8xf32>
    %80 = arith.mulf %63, %63 : vector<128x8xf32>
    %cst_86 = arith.constant dense<0.000000e+00> : vector<8xf32>
    %81 = vector.multi_reduction <add>, %80, %cst_86 [0] : vector<128x8xf32> to vector<8xf32>
    %82 = vector.shape_cast %81 : vector<8xf32> to vector<1x8xf32>
    %83 = arith.addf %79, %82 : vector<1x8xf32>
    %c0_87 = arith.constant 0 : index
    %c0_88 = arith.constant 0 : index
    %c0_89 = arith.constant 0 : index
    %84 = vector.load %arg6[%c0_87, %c0_88, %c0_89] : memref<1x1x8xf32, #tpu.memory_space<vmem>>, vector<1x1x8xf32>
    %85 = vector.shape_cast %84 : vector<1x1x8xf32> to vector<1x8xf32>
    %86 = vector.shape_cast %83 : vector<1x8xf32> to vector<1x1x8xf32>
    tpu.vector_store %arg6[%c0_87, %c0_88, %c0_89], %86 {strides = array<i32>} : memref<1x1x8xf32, #tpu.memory_space<vmem>>, vector<1x1x8xf32>,
    return
  }
  func.func @transform_0(%arg0: i32, %arg1: i32) -> (i32, i32, i32, i32, i32) {
    %c0_i32 = arith.constant 0 : i32
    %c0_i32_0 = arith.constant 0 : i32
    %c0_i32_1 = arith.constant 0 : i32
    %c0_i32_2 = arith.constant 0 : i32
    return %arg0, %arg1, %c0_i32, %c0_i32_0, %c0_i32_1 : i32, i32, i32, i32, i32
  }
  func.func @transform_1(%arg0: i32, %arg1: i32) -> (i32, i32, i32) {
    %c0_i32 = arith.constant 0 : i32
    %c0_i32_0 = arith.constant 0 : i32
    %c0_i32_1 = arith.constant 0 : i32
    %c0_i32_2 = arith.constant 0 : i32
    return %c0_i32, %c0_i32_0, %c0_i32_1 : i32, i32, i32
  }
  func.func @transform_2(%arg0: i32, %arg1: i32) -> (i32, i32, i32) {
    %c0_i32 = arith.constant 0 : i32
    %c0_i32_0 = arith.constant 0 : i32
    return %arg0, %arg1, %c0_i32 : i32, i32, i32
  }
  func.func @transform_3(%arg0: i32, %arg1: i32) -> (i32, i32, i32) {
    %c0_i32 = arith.constant 0 : i32
    %c0_i32_0 = arith.constant 0 : i32
    %c0_i32_1 = arith.constant 0 : i32
    return %arg0, %c0_i32, %c0_i32_0 : i32, i32, i32
  }
  func.func @transform_4(%arg0: i32, %arg1: i32) -> (i32, i32, i32) {
    %c0_i32 = arith.constant 0 : i32
    %c0_i32_0 = arith.constant 0 : i32
    %c0_i32_1 = arith.constant 0 : i32
    return %arg0, %c0_i32, %c0_i32_0 : i32, i32, i32
  }
}

module attributes {stable_mosaic.version = 11 : i64} {
  func.func @kernel(%arg0: i32, %arg1: i32, %arg2: memref<1x128x8xf32, #tpu.memory_space<vmem>>, %arg3: memref<1x128x8xf32, #tpu.memory_space<vmem>>, %arg4: memref<1x1x8xf32, #tpu.memory_space<vmem>>, %arg5: memref<1x1x8xf32, #tpu.memory_space<vmem>>, %arg6: memref<1x128x8xf32, #tpu.memory_space<vmem>>) attributes {dimension_semantics = [#tpu.dimension_semantics<parallel>, #tpu.dimension_semantics<parallel>], iteration_bounds = array<i64: 2, 2>, scalar_prefetch = 0 : i64, scratch_operands = 0 : i64, tpu.core_type = #tpu.core_type<tc>, window_params = [{transform_indices = @transform_0, window_bounds = array<i64: 1, 128, 8>}, {transform_indices = @transform_1, window_bounds = array<i64: 1, 128, 8>}, {transform_indices = @transform_2, window_bounds = array<i64: 1, 1, 8>}, {transform_indices = @transform_3, window_bounds = array<i64: 1, 1, 8>}, {transform_indices = @transform_4, window_bounds = array<i64: 1, 128, 8>}]} {
    %c0 = arith.constant 0 : index
    %c0_0 = arith.constant 0 : index
    %c0_1 = arith.constant 0 : index
    %0 = vector.load %arg4[%c0, %c0_0, %c0_1] : memref<1x1x8xf32, #tpu.memory_space<vmem>>, vector<1x1x8xf32>
    %1 = vector.shape_cast %0 : vector<1x1x8xf32> to vector<1x8xf32>
    %cst = arith.constant 3.906250e-03 : f32
    %2 = vector.broadcast %cst : f32 to vector<1x8xf32>
    %3 = arith.mulf %1, %2 : vector<1x8xf32>
    %c0_2 = arith.constant 0 : index
    %c0_3 = arith.constant 0 : index
    %c0_4 = arith.constant 0 : index
    %4 = vector.load %arg5[%c0_2, %c0_3, %c0_4] : memref<1x1x8xf32, #tpu.memory_space<vmem>>, vector<1x1x8xf32>
    %5 = vector.shape_cast %4 : vector<1x1x8xf32> to vector<1x8xf32>
    %cst_5 = arith.constant 3.906250e-03 : f32
    %6 = vector.broadcast %cst_5 : f32 to vector<1x8xf32>
    %7 = arith.mulf %5, %6 : vector<1x8xf32>
    %8 = arith.mulf %3, %3 : vector<1x8xf32>
    %9 = arith.subf %7, %8 : vector<1x8xf32>
    %c0_6 = arith.constant 0 : index
    %c0_7 = arith.constant 0 : index
    %c0_8 = arith.constant 0 : index
    %10 = vector.load %arg3[%c0_6, %c0_7, %c0_8] : memref<1x128x8xf32, #tpu.memory_space<vmem>>, vector<1x128x8xf32>
    %11 = vector.shape_cast %10 : vector<1x128x8xf32> to vector<128x8xf32>
    %12 = vector.broadcast %3 : vector<1x8xf32> to vector<128x8xf32>
    %13 = arith.subf %11, %12 : vector<128x8xf32>
    %cst_9 = arith.constant 9.99999974E-6 : f32
    %14 = vector.broadcast %cst_9 : f32 to vector<1x8xf32>
    %15 = arith.addf %9, %14 : vector<1x8xf32>
    %16 = math.rsqrt %15 : vector<1x8xf32>
    %17 = vector.broadcast %16 : vector<1x8xf32> to vector<128x8xf32>
    %18 = arith.mulf %13, %17 : vector<128x8xf32>
    %c0_10 = arith.constant 0 : index
    %c0_11 = arith.constant 0 : index
    %c0_12 = arith.constant 0 : index
    %19 = vector.load %arg2[%c0_10, %c0_11, %c0_12] : memref<1x128x8xf32, #tpu.memory_space<vmem>>, vector<1x128x8xf32>
    %20 = vector.shape_cast %19 : vector<1x128x8xf32> to vector<128x8xf32>
    %21 = arith.addf %20, %18 : vector<128x8xf32>
    %cst_13 = arith.constant 0.000000e+00 : f32
    %22 = vector.broadcast %cst_13 : f32 to vector<128x8xf32>
    %23 = arith.maximumf %21, %22 : vector<128x8xf32>
    %c0_14 = arith.constant 0 : index
    %c0_15 = arith.constant 0 : index
    %c0_16 = arith.constant 0 : index
    %24 = vector.load %arg6[%c0_14, %c0_15, %c0_16] : memref<1x128x8xf32, #tpu.memory_space<vmem>>, vector<1x128x8xf32>
    %25 = vector.shape_cast %24 : vector<1x128x8xf32> to vector<128x8xf32>
    %26 = vector.shape_cast %23 : vector<128x8xf32> to vector<1x128x8xf32>
    tpu.vector_store %arg6[%c0_14, %c0_15, %c0_16], %26 {strides = array<i32>} : memref<1x128x8xf32, #tpu.memory_space<vmem>>, vector<1x128x8xf32>,
    return
  }
  func.func @transform_0(%arg0: i32, %arg1: i32) -> (i32, i32, i32) {
    %c0_i32 = arith.constant 0 : i32
    %c0_i32_0 = arith.constant 0 : i32
    return %arg0, %arg1, %c0_i32 : i32, i32, i32
  }
  func.func @transform_1(%arg0: i32, %arg1: i32) -> (i32, i32, i32) {
    %c0_i32 = arith.constant 0 : i32
    %c0_i32_0 = arith.constant 0 : i32
    return %arg0, %arg1, %c0_i32 : i32, i32, i32
  }
  func.func @transform_2(%arg0: i32, %arg1: i32) -> (i32, i32, i32) {
    %c0_i32 = arith.constant 0 : i32
    %c0_i32_0 = arith.constant 0 : i32
    %c0_i32_1 = arith.constant 0 : i32
    return %arg0, %c0_i32, %c0_i32_0 : i32, i32, i32
  }
  func.func @transform_3(%arg0: i32, %arg1: i32) -> (i32, i32, i32) {
    %c0_i32 = arith.constant 0 : i32
    %c0_i32_0 = arith.constant 0 : i32
    %c0_i32_1 = arith.constant 0 : i32
    return %arg0, %c0_i32, %c0_i32_0 : i32, i32, i32
  }
  func.func @transform_4(%arg0: i32, %arg1: i32) -> (i32, i32, i32) {
    %c0_i32 = arith.constant 0 : i32
    %c0_i32_0 = arith.constant 0 : i32
    return %arg0, %arg1, %c0_i32 : i32, i32, i32
  }
}

module attributes {stable_mosaic.version = 11 : i64} {
  func.func @kernel(%arg0: i32, %arg1: i32, %arg2: memref<1x128x8xf32, #tpu.memory_space<vmem>>, %arg3: memref<1x1x8xf32, #tpu.memory_space<vmem>>, %arg4: memref<1x1x8xf32, #tpu.memory_space<vmem>>, %arg5: memref<1x128x4xbf16, #tpu.memory_space<vmem>>, %arg6: memref<8x8xbf16, #tpu.memory_space<vmem>>, %arg7: memref<4x8xbf16, #tpu.memory_space<vmem>>, %arg8: memref<1x128x8xf32, #tpu.memory_space<vmem>>, %arg9: memref<1x128x8xf32, #tpu.memory_space<vmem>>, %arg10: memref<1x1x8xf32, #tpu.memory_space<vmem>>, %arg11: memref<1x1x8xf32, #tpu.memory_space<vmem>>) attributes {dimension_semantics = [#tpu.dimension_semantics<parallel>, #tpu.dimension_semantics<arbitrary>], iteration_bounds = array<i64: 2, 2>, scalar_prefetch = 0 : i64, scratch_operands = 0 : i64, tpu.core_type = #tpu.core_type<tc>, window_params = [{transform_indices = @transform_0, window_bounds = array<i64: 1, 128, 8>}, {transform_indices = @transform_1, window_bounds = array<i64: 1, 1, 8>}, {transform_indices = @transform_2, window_bounds = array<i64: 1, 1, 8>}, {transform_indices = @transform_3, window_bounds = array<i64: 1, 128, 4>}, {pipeline_mode = #tpu.pipeline_mode<synchronous>, transform_indices = @transform_4, window_bounds = array<i64: 8, 8>}, {pipeline_mode = #tpu.pipeline_mode<synchronous>, transform_indices = @transform_5, window_bounds = array<i64: 4, 8>}, {transform_indices = @transform_6, window_bounds = array<i64: 1, 128, 8>}, {transform_indices = @transform_7, window_bounds = array<i64: 1, 128, 8>}, {transform_indices = @transform_8, window_bounds = array<i64: 1, 1, 8>}, {transform_indices = @transform_9, window_bounds = array<i64: 1, 1, 8>}]} {
    %c0 = arith.constant 0 : index
    %c0_0 = arith.constant 0 : index
    %c0_1 = arith.constant 0 : index
    %0 = vector.load %arg3[%c0, %c0_0, %c0_1] : memref<1x1x8xf32, #tpu.memory_space<vmem>>, vector<1x1x8xf32>
    %1 = vector.shape_cast %0 : vector<1x1x8xf32> to vector<1x8xf32>
    %cst = arith.constant 3.906250e-03 : f32
    %2 = vector.broadcast %cst : f32 to vector<1x8xf32>
    %3 = arith.mulf %1, %2 : vector<1x8xf32>
    %c0_2 = arith.constant 0 : index
    %c0_3 = arith.constant 0 : index
    %c0_4 = arith.constant 0 : index
    %4 = vector.load %arg4[%c0_2, %c0_3, %c0_4] : memref<1x1x8xf32, #tpu.memory_space<vmem>>, vector<1x1x8xf32>
    %5 = vector.shape_cast %4 : vector<1x1x8xf32> to vector<1x8xf32>
    %cst_5 = arith.constant 3.906250e-03 : f32
    %6 = vector.broadcast %cst_5 : f32 to vector<1x8xf32>
    %7 = arith.mulf %5, %6 : vector<1x8xf32>
    %8 = arith.mulf %3, %3 : vector<1x8xf32>
    %9 = arith.subf %7, %8 : vector<1x8xf32>
    %c0_6 = arith.constant 0 : index
    %c0_7 = arith.constant 0 : index
    %c0_8 = arith.constant 0 : index
    %10 = vector.load %arg2[%c0_6, %c0_7, %c0_8] : memref<1x128x8xf32, #tpu.memory_space<vmem>>, vector<1x128x8xf32>
    %11 = vector.shape_cast %10 : vector<1x128x8xf32> to vector<128x8xf32>
    %12 = vector.broadcast %3 : vector<1x8xf32> to vector<128x8xf32>
    %13 = arith.subf %11, %12 : vector<128x8xf32>
    %cst_9 = arith.constant 9.99999974E-6 : f32
    %14 = vector.broadcast %cst_9 : f32 to vector<1x8xf32>
    %15 = arith.addf %9, %14 : vector<1x8xf32>
    %16 = math.rsqrt %15 : vector<1x8xf32>
    %17 = vector.broadcast %16 : vector<1x8xf32> to vector<128x8xf32>
    %18 = arith.mulf %13, %17 : vector<128x8xf32>
    %cst_10 = arith.constant 0.000000e+00 : f32
    %19 = vector.broadcast %cst_10 : f32 to vector<128x8xf32>
    %20 = arith.maximumf %18, %19 : vector<128x8xf32>
    %21 = arith.truncf %20 : vector<128x8xf32> to vector<128x8xbf16>
    %c0_11 = arith.constant 0 : index
    %c0_12 = arith.constant 0 : index
    %22 = vector.load %arg6[%c0_11, %c0_12] : memref<8x8xbf16, #tpu.memory_space<vmem>>, vector<8x8xbf16>
    %cst_13 = arith.constant dense<0.000000e+00> : vector<128x8xf32>
    %23 = tpu.matmul %21, %22, %cst_13 {dimension_numbers = #tpu.dot_dimension_numbers<[1], [0], [0], [1], [0, 0, 1, 1], [], []>} : vector<128x8xbf16>, vector<8x8xbf16>, vector<128x8xf32> -> vector<128x8xf32>
    %c0_14 = arith.constant 0 : index
    %c0_15 = arith.constant 0 : index
    %c0_16 = arith.constant 0 : index
    %24 = vector.load %arg5[%c0_14, %c0_15, %c0_16] : memref<1x128x4xbf16, #tpu.memory_space<vmem>>, vector<1x128x4xbf16>
    %25 = vector.shape_cast %24 : vector<1x128x4xbf16> to vector<128x4xbf16>
    %c0_17 = arith.constant 0 : index
    %c0_18 = arith.constant 0 : index
    %26 = vector.load %arg7[%c0_17, %c0_18] : memref<4x8xbf16, #tpu.memory_space<vmem>>, vector<4x8xbf16>
    %cst_19 = arith.constant dense<0.000000e+00> : vector<128x8xf32>
    %27 = tpu.matmul %25, %26, %cst_19 {dimension_numbers = #tpu.dot_dimension_numbers<[1], [0], [0], [1], [0, 0, 1, 1], [], []>} : vector<128x4xbf16>, vector<4x8xbf16>, vector<128x8xf32> -> vector<128x8xf32>
    %c0_20 = arith.constant 0 : index
    %c0_21 = arith.constant 0 : index
    %c0_22 = arith.constant 0 : index
    %28 = vector.load %arg8[%c0_20, %c0_21, %c0_22] : memref<1x128x8xf32, #tpu.memory_space<vmem>>, vector<1x128x8xf32>
    %29 = vector.shape_cast %28 : vector<1x128x8xf32> to vector<128x8xf32>
    %30 = vector.shape_cast %23 : vector<128x8xf32> to vector<1x128x8xf32>
    tpu.vector_store %arg8[%c0_20, %c0_21, %c0_22], %30 {strides = array<i32>} : memref<1x128x8xf32, #tpu.memory_space<vmem>>, vector<1x128x8xf32>,
    %c0_23 = arith.constant 0 : index
    %c0_24 = arith.constant 0 : index
    %c0_25 = arith.constant 0 : index
    %31 = vector.load %arg9[%c0_23, %c0_24, %c0_25] : memref<1x128x8xf32, #tpu.memory_space<vmem>>, vector<1x128x8xf32>
    %32 = vector.shape_cast %31 : vector<1x128x8xf32> to vector<128x8xf32>
    %33 = vector.shape_cast %27 : vector<128x8xf32> to vector<1x128x8xf32>
    tpu.vector_store %arg9[%c0_23, %c0_24, %c0_25], %33 {strides = array<i32>} : memref<1x128x8xf32, #tpu.memory_space<vmem>>, vector<1x128x8xf32>,
    %c0_i32 = arith.constant 0 : i32
    %34 = arith.cmpi eq, %arg1, %c0_i32 : i32
    %35 = arith.extui %34 : i1 to i32
    %c0_i32_26 = arith.constant 0 : i32
    %36 = arith.cmpi ne, %35, %c0_i32_26 : i32
    scf.if %36 {
      %cst_41 = arith.constant 0.000000e+00 : f32
      %54 = vector.broadcast %cst_41 : f32 to vector<1x8xf32>
      %c0_42 = arith.constant 0 : index
      %c0_43 = arith.constant 0 : index
      %c0_44 = arith.constant 0 : index
      %55 = vector.load %arg10[%c0_42, %c0_43, %c0_44] : memref<1x1x8xf32, #tpu.memory_space<vmem>>, vector<1x1x8xf32>
      %56 = vector.shape_cast %55 : vector<1x1x8xf32> to vector<1x8xf32>
      %57 = vector.shape_cast %54 : vector<1x8xf32> to vector<1x1x8xf32>
      tpu.vector_store %arg10[%c0_42, %c0_43, %c0_44], %57 {strides = array<i32>} : memref<1x1x8xf32, #tpu.memory_space<vmem>>, vector<1x1x8xf32>,
      %cst_45 = arith.constant 0.000000e+00 : f32
      %58 = vector.broadcast %cst_45 : f32 to vector<1x8xf32>
      %c0_46 = arith.constant 0 : index
      %c0_47 = arith.constant 0 : index
      %c0_48 = arith.constant 0 : index
      %59 = vector.load %arg11[%c0_46, %c0_47, %c0_48] : memref<1x1x8xf32, #tpu.memory_space<vmem>>, vector<1x1x8xf32>
      %60 = vector.shape_cast %59 : vector<1x1x8xf32> to vector<1x8xf32>
      %61 = vector.shape_cast %58 : vector<1x8xf32> to vector<1x1x8xf32>
      tpu.vector_store %arg11[%c0_46, %c0_47, %c0_48], %61 {strides = array<i32>} : memref<1x1x8xf32, #tpu.memory_space<vmem>>, vector<1x1x8xf32>,
    } else {
    }
    %c0_27 = arith.constant 0 : index
    %c0_28 = arith.constant 0 : index
    %c0_29 = arith.constant 0 : index
    %37 = vector.load %arg10[%c0_27, %c0_28, %c0_29] : memref<1x1x8xf32, #tpu.memory_space<vmem>>, vector<1x1x8xf32>
    %38 = vector.shape_cast %37 : vector<1x1x8xf32> to vector<1x8xf32>
    %cst_30 = arith.constant dense<0.000000e+00> : vector<8xf32>
    %39 = vector.multi_reduction <add>, %27, %cst_30 [0] : vector<128x8xf32> to vector<8xf32>
    %40 = vector.shape_cast %39 : vector<8xf32> to vector<1x8xf32>
    %41 = arith.addf %38, %40 : vector<1x8xf32>
    %c0_31 = arith.constant 0 : index
    %c0_32 = arith.constant 0 : index
    %c0_33 = arith.constant 0 : index
    %42 = vector.load %arg10[%c0_31, %c0_32, %c0_33] : memref<1x1x8xf32, #tpu.memory_space<vmem>>, vector<1x1x8xf32>
    %43 = vector.shape_cast %42 : vector<1x1x8xf32> to vector<1x8xf32>
    %44 = vector.shape_cast %41 : vector<1x8xf32> to vector<1x1x8xf32>
    tpu.vector_store %arg10[%c0_31, %c0_32, %c0_33], %44 {strides = array<i32>} : memref<1x1x8xf32, #tpu.memory_space<vmem>>, vector<1x1x8xf32>,
    %c0_34 = arith.constant 0 : index
    %c0_35 = arith.constant 0 : index
    %c0_36 = arith.constant 0 : index
    %45 = vector.load %arg11[%c0_34, %c0_35, %c0_36] : memref<1x1x8xf32, #tpu.memory_space<vmem>>, vector<1x1x8xf32>
    %46 = vector.shape_cast %45 : vector<1x1x8xf32> to vector<1x8xf32>
    %47 = arith.mulf %27, %27 : vector<128x8xf32>
    %cst_37 = arith.constant dense<0.000000e+00> : vector<8xf32>
    %48 = vector.multi_reduction <add>, %47, %cst_37 [0] : vector<128x8xf32> to vector<8xf32>
    %49 = vector.shape_cast %48 : vector<8xf32> to vector<1x8xf32>
    %50 = arith.addf %46, %49 : vector<1x8xf32>
    %c0_38 = arith.constant 0 : index
    %c0_39 = arith.constant 0 : index
    %c0_40 = arith.constant 0 : index
    %51 = vector.load %arg11[%c0_38, %c0_39, %c0_40] : memref<1x1x8xf32, #tpu.memory_space<vmem>>, vector<1x1x8xf32>
    %52 = vector.shape_cast %51 : vector<1x1x8xf32> to vector<1x8xf32>
    %53 = vector.shape_cast %50 : vector<1x8xf32> to vector<1x1x8xf32>
    tpu.vector_store %arg11[%c0_38, %c0_39, %c0_40], %53 {strides = array<i32>} : memref<1x1x8xf32, #tpu.memory_space<vmem>>, vector<1x1x8xf32>,
    return
  }
  func.func @transform_0(%arg0: i32, %arg1: i32) -> (i32, i32, i32) {
    %c0_i32 = arith.constant 0 : i32
    %c0_i32_0 = arith.constant 0 : i32
    return %arg0, %arg1, %c0_i32 : i32, i32, i32
  }
  func.func @transform_1(%arg0: i32, %arg1: i32) -> (i32, i32, i32) {
    %c0_i32 = arith.constant 0 : i32
    %c0_i32_0 = arith.constant 0 : i32
    %c0_i32_1 = arith.constant 0 : i32
    return %arg0, %c0_i32, %c0_i32_0 : i32, i32, i32
  }
  func.func @transform_2(%arg0: i32, %arg1: i32) -> (i32, i32, i32) {
    %c0_i32 = arith.constant 0 : i32
    %c0_i32_0 = arith.constant 0 : i32
    %c0_i32_1 = arith.constant 0 : i32
    return %arg0, %c0_i32, %c0_i32_0 : i32, i32, i32
  }
  func.func @transform_3(%arg0: i32, %arg1: i32) -> (i32, i32, i32) {
    %c0_i32 = arith.constant 0 : i32
    %c0_i32_0 = arith.constant 0 : i32
    return %arg0, %arg1, %c0_i32 : i32, i32, i32
  }
  func.func @transform_4(%arg0: i32, %arg1: i32) -> (i32, i32) {
    %c0_i32 = arith.constant 0 : i32
    %c0_i32_0 = arith.constant 0 : i32
    %c0_i32_1 = arith.constant 0 : i32
    return %c0_i32, %c0_i32_0 : i32, i32
  }
  func.func @transform_5(%arg0: i32, %arg1: i32) -> (i32, i32) {
    %c0_i32 = arith.constant 0 : i32
    %c0_i32_0 = arith.constant 0 : i32
    %c0_i32_1 = arith.constant 0 : i32
    return %c0_i32, %c0_i32_0 : i32, i32
  }
  func.func @transform_6(%arg0: i32, %arg1: i32) -> (i32, i32, i32) {
    %c0_i32 = arith.constant 0 : i32
    %c0_i32_0 = arith.constant 0 : i32
    return %arg0, %arg1, %c0_i32 : i32, i32, i32
  }
  func.func @transform_7(%arg0: i32, %arg1: i32) -> (i32, i32, i32) {
    %c0_i32 = arith.constant 0 : i32
    %c0_i32_0 = arith.constant 0 : i32
    return %arg0, %arg1, %c0_i32 : i32, i32, i32
  }
  func.func @transform_8(%arg0: i32, %arg1: i32) -> (i32, i32, i32) {
    %c0_i32 = arith.constant 0 : i32
    %c0_i32_0 = arith.constant 0 : i32
    %c0_i32_1 = arith.constant 0 : i32
    return %arg0, %c0_i32, %c0_i32_0 : i32, i32, i32
  }
  func.func @transform_9(%arg0: i32, %arg1: i32) -> (i32, i32, i32) {
    %c0_i32 = arith.constant 0 : i32
    %c0_i32_0 = arith.constant 0 : i32
    %c0_i32_1 = arith.constant 0 : i32
    return %arg0, %c0_i32, %c0_i32_0 : i32, i32, i32
  }
}

</mosaic_0001>

<bundles_post_ra>
// kernel: residual_block_forward.6
= control target key start
LH: loop header
LB: loop body
LE: loop exit
PB: predicated region body
PF: predicated region fallthrough
CT: control target
= control target key end

     0   :  { %s658_s12 = smov 0   ;;  %s660_s13 = smov 0   ;;  %s771_s0 = inlined_call_operand.vmem [shape: f32[2,256,8], index: 0, kind: input, shape index: {}]   ;;  %s772_s1 = inlined_call_operand.vmem [shape: f32[2,1,8], index: 1, kind: input, shape index: {}]   ;;  %s773_s2 = inlined_call_operand.vmem [shape: f32[2,1,8], index: 2, kind: input, shape index: {}]   ;;  %s774_s3 = inlined_call_operand.vmem [shape: bf16[2,256,8], index: 3, kind: output, shape index: {}]  }
   0x1   :  { %s662_s14 = smov 0   ;;  %s664_s15 = smov 0  }
   0x2   :  { %s666_s16 = smov 0  }
   0x3 LB: > { %s22_s17 = sadd.s32 1, %s628_s14  ;;  %s25_s18 = sadd.s32 1, %s632_s15  ;;  %s636_s16 = sphi %s666_s16, %s13_s16   ;;  %s632_s15 = sphi %s664_s15, %s778_s15   ;;  %s628_s14 = sphi %s662_s14, %s777_s14   ;;  %s624_s13 = sphi %s660_s13, %s776_s13   ;;  %s620_s12 = sphi %s658_s12, %s775_s12  }
   0x4   : > { %p23_p0 = scmp.ge.s32.totalorder %s22_s17, 2  ;;  %p515_p1 = scmp.ge.s32.totalorder %s636_s16, 1 }
   0x5   : > { %p174_p2 = scmp.lt.s32.totalorder %s636_s16, 5 }
   0x6   : > { %s780_s17 = smov (%p23_p0, %s22_s17), 0  ;;  %s782_s18 = smov (!%p23_p0, %s25_s18), %s632_s15 }
   0x7   : > { %p175_p3 = pnand %p515_p1, %p174_p2  ;;  %p27_p4 = scmp.ge.s32.totalorder %s782_s18, 2 }
   0x8   : > { %s516_s19 = sshll.u32 (!%p175_p3), %s620_s12, 4  ;;  %p213_p5 = scmp.lt.s32.totalorder (!%p175_p3), %s624_s13, 1  ;;  %v261_v3 = vlaneseq (!%p175_p3)  ;;  %vm386_vm0 = vcmask (!%p175_p3), 60416  }
   0x9   : > { %s784_s18 = smov (%p27_p4, %s782_s18), 0  ;;  %178 = sbr.rel (%p175_p3) target bundleno = 57 (0x39), region = 32 }
   0xa   : > { %p215_p6 = scmp.lt.s32.totalorder (!%p175_p3), %s516_s19, 31  ;;  %v262_v7 = vshrl.u32 (!%p175_p3), %v261_v3, 7 }
   0xc   : > { %v263_v9 = vsub.s32 (!%p175_p3), 0, %v262_v7 }
  0x10   : > { %s786_s13 = smov (!%p213_p5, %s624_s13), 1  ;;  %s788_s19 = smov (!%p215_p6, %s516_s19), 31 }
  0x11   : > { %s224_s22 = scalar_lea.vmem %s772_s1, %s786_s13  ;;  %s227_s25 = scalar_lea.vmem %s773_s2, %s786_s13 }
  0x12   : > { %v238_v0 = vld [vmem:[%s224_s22] sm:$0x1]  ;;  %s517_s26 = sshll.u32 %s786_s13, 5 }
  0x13   : > { %v239_v1 = vmul.f32 0.00390625, %v238_v0  ;;  %v240_v2 = vld [vmem:[%s227_s25] sm:$0x1]  ;;  %s694_s27 = sadd.s32 %s517_s26, %s788_s19 }
  0x14   : > { %v241_v4 = vmul.f32 0.00390625, %v240_v2  ;;  %s518_s28 = sshll.u32 %s694_s27, 3  ;;  %s521_s5 = sshll.u32 %s694_s27, 2 }
  0x15   : > { %v242_v5 = vmul.f32 %v239_v1, %v239_v1  ;;  %s220_s4 = scalar_lea.vmem %s771_s0, %s518_s28  ;;  %v700_v11 = vrot.slane %v239_v1, %v263_v9  ;;  %s722_s8 = scalar_lea.vmem %s774_s3, %s521_s5 }
  0x16   : > { %v244_v10 = vld [vmem:[%s220_s4] sm:$0xff]  ;;  %v245_v12 = vld [vmem:[%s220_s4 + $0x8] sm:$0xff]  ;;  %v246_v13 = vld [vmem:[%s220_s4 + $0x10] sm:$0xff] }
  0x17   : > { %v243_v6 = vsub.f32 %v241_v4, %v242_v5  ;;  %v247_v14 = vld [vmem:[%s220_s4 + $0x18] sm:$0xff]  ;;  %v248_v15 = vld [vmem:[%s220_s4 + $0x20] sm:$0xff]  ;;  %v249_v16 = vld [vmem:[%s220_s4 + $0x28] sm:$0xff]  ;;  %v266_v21 = vsub.f32 %v244_v10, %v700_v11  ;;  %v267_v25 = vsub.f32 %v245_v12, %v700_v11  ;;  %v268_v26 = vsub.f32 %v246_v13, %v700_v11 }
  0x18   : > { %v250_v17 = vld [vmem:[%s220_s4 + $0x30] sm:$0xff]  ;;  %v251_v18 = vld [vmem:[%s220_s4 + $0x38] sm:$0xff]  ;;  %v252_v19 = vld [vmem:[%s220_s4 + $0x40] sm:$0xff]  ;;  %v269_v27 = vsub.f32 %v247_v14, %v700_v11  ;;  %v270_v28 = vsub.f32 %v248_v15, %v700_v11  ;;  %v271_v33 = vsub.f32 %v249_v16, %v700_v11 }
  0x19   : > { %v282_v8 = vadd.f32 1e-05, %v243_v6  ;;  %v253_v20 = vld [vmem:[%s220_s4 + $0x48] sm:$0xff]  ;;  %v254_v22 = vld [vmem:[%s220_s4 + $0x50] sm:$0xff]  ;;  %v255_v23 = vld [vmem:[%s220_s4 + $0x58] sm:$0xff]  ;;  %v272_v34 = vsub.f32 %v250_v17, %v700_v11  ;;  %v273_v35 = vsub.f32 %v251_v18, %v700_v11  ;;  %v274_v36 = vsub.f32 %v252_v19, %v700_v11 }
  0x1a   : > { %v256_v24 = vld [vmem:[%s220_s4 + $0x60] sm:$0xff]  ;;  %v257_v29 = vld [vmem:[%s220_s4 + $0x68] sm:$0xff]  ;;  %v258_v30 = vld [vmem:[%s220_s4 + $0x70] sm:$0xff]  ;;  %v275_v38 = vsub.f32 %v253_v20, %v700_v11  ;;  %v276_v39 = vsub.f32 %v254_v22, %v700_v11  ;;  %v277_v40 = vsub.f32 %v255_v23, %v700_v11 }
  0x1b   : > { %596 = vrsqrt.f32 %v282_v8  ;;  %v259_v31 = vld [vmem:[%s220_s4 + $0x78] sm:$0xff]  ;;  %v278_v41 = vsub.f32 %v256_v24, %v700_v11  ;;  %v279_v42 = vsub.f32 %v257_v29, %v700_v11  ;;  %v280_v43 = vsub.f32 %v258_v30, %v700_v11 }
  0x1c   : > { %v281_v44 = vsub.f32 %v259_v31, %v700_v11 }
  0x25   : > { %v597_v32 = vpop.eup %596 }
  0x26   : > { %v288_v37 = vrot.slane %v597_v32, %v263_v9 }
  0x28   : > { %v290_v45 = vmul.f32 %v288_v37, %v266_v21  ;;  %v291_v46 = vmul.f32 %v288_v37, %v267_v25  ;;  %v292_v47 = vmul.f32 %v288_v37, %v268_v26  ;;  %v293_v48 = vmul.f32 %v288_v37, %v269_v27 }
  0x29   : > { %v294_v49 = vmul.f32 %v288_v37, %v270_v28  ;;  %v295_v50 = vmul.f32 %v288_v37, %v271_v33  ;;  %v296_v51 = vmul.f32 %v288_v37, %v272_v34  ;;  %v297_v52 = vmul.f32 %v288_v37, %v273_v35 }
  0x2a   : > { %v306_v53 = vmax.f32 %v290_v45, 0.0  ;;  %v307_v54 = vmax.f32 %v291_v46, 0.0  ;;  %v308_v55 = vmax.f32 %v292_v47, 0.0  ;;  %v309_v56 = vmax.f32 %v293_v48, 0.0 }
  0x2b   : > { %v310_v57 = vmax.f32 %v294_v49, 0.0  ;;  %v311_v58 = vmax.f32 %v295_v50, 0.0  ;;  %v312_v59 = vmax.f32 %v296_v51, 0.0  ;;  %v313_v60 = vmax.f32 %v297_v52, 0.0 }
  0x2c   : > { %v540_v61 = vpack.c.bf16 %v306_v53, %v306_v53  ;;  %v541_v62 = vpack.c.bf16 %v307_v54, %v307_v54  ;;  %v542_v63 = vpack.c.bf16 %v308_v55, %v308_v55  ;;  %v543_v0 = vpack.c.bf16 %v309_v56, %v309_v56 }
  0x2d   : > { %v544_v1 = vpack.c.bf16 %v310_v57, %v310_v57  ;;  %v545_v2 = vpack.c.bf16 %v311_v58, %v311_v58  ;;  %v546_v3 = vpack.c.bf16 %v312_v59, %v312_v59  ;;  %v547_v4 = vpack.c.bf16 %v313_v60, %v313_v60 }
  0x2e   : > { %387 = vst.msk [vmem:[%s722_s8] sm:$0xf] %vm386_vm0, %v540_v61  ;;  %388 = vst.msk [vmem:[%s722_s8 + $0x4] sm:$0xf] %vm386_vm0, %v541_v62  ;;  %v298_v5 = vmul.f32 %v288_v37, %v274_v36  ;;  %v299_v6 = vmul.f32 %v288_v37, %v275_v38  ;;  %v300_v7 = vmul.f32 %v288_v37, %v276_v39 }
  0x2f   : > { %389 = vst.msk [vmem:[%s722_s8 + $0x8] sm:$0xf] %vm386_vm0, %v542_v63  ;;  %390 = vst.msk [vmem:[%s722_s8 + $0xc] sm:$0xf] %vm386_vm0, %v543_v0  ;;  %v301_v8 = vmul.f32 %v288_v37, %v277_v40  ;;  %v302_v9 = vmul.f32 %v288_v37, %v278_v41  ;;  %v303_v10 = vmul.f32 %v288_v37, %v279_v42 }
  0x30   : > { %391 = vst.msk [vmem:[%s722_s8 + $0x10] sm:$0xf] %vm386_vm0, %v544_v1  ;;  %392 = vst.msk [vmem:[%s722_s8 + $0x14] sm:$0xf] %vm386_vm0, %v545_v2  ;;  %v304_v11 = vmul.f32 %v288_v37, %v280_v43  ;;  %v305_v12 = vmul.f32 %v288_v37, %v281_v44  ;;  %v314_v13 = vmax.f32 %v298_v5, 0.0  ;;  %v315_v14 = vmax.f32 %v299_v6, 0.0 }
  0x31   : > { %393 = vst.msk [vmem:[%s722_s8 + $0x18] sm:$0xf] %vm386_vm0, %v546_v3  ;;  %394 = vst.msk [vmem:[%s722_s8 + $0x1c] sm:$0xf] %vm386_vm0, %v547_v4  ;;  %v316_v15 = vmax.f32 %v300_v7, 0.0  ;;  %v317_v16 = vmax.f32 %v301_v8, 0.0 }
  0x32   : > { %v318_v17 = vmax.f32 %v302_v9, 0.0  ;;  %v319_v18 = vmax.f32 %v303_v10, 0.0  ;;  %v320_v19 = vmax.f32 %v304_v11, 0.0  ;;  %v321_v20 = vmax.f32 %v305_v12, 0.0 }
  0x33   : > { %v548_v21 = vpack.c.bf16 %v314_v13, %v314_v13  ;;  %v549_v22 = vpack.c.bf16 %v315_v14, %v315_v14  ;;  %v550_v23 = vpack.c.bf16 %v316_v15, %v316_v15  ;;  %v551_v24 = vpack.c.bf16 %v317_v16, %v317_v16 }
  0x34   : > { %v552_v25 = vpack.c.bf16 %v318_v17, %v318_v17  ;;  %v553_v26 = vpack.c.bf16 %v319_v18, %v319_v18  ;;  %v554_v27 = vpack.c.bf16 %v320_v19, %v320_v19  ;;  %v555_v28 = vpack.c.bf16 %v321_v20, %v321_v20 }
  0x35   : > { %395 = vst.msk [vmem:[%s722_s8 + $0x20] sm:$0xf] %vm386_vm0, %v548_v21  ;;  %396 = vst.msk [vmem:[%s722_s8 + $0x24] sm:$0xf] %vm386_vm0, %v549_v22 }
  0x36   : > { %397 = vst.msk [vmem:[%s722_s8 + $0x28] sm:$0xf] %vm386_vm0, %v550_v23  ;;  %398 = vst.msk [vmem:[%s722_s8 + $0x2c] sm:$0xf] %vm386_vm0, %v551_v24 }
  0x37   : > { %399 = vst.msk [vmem:[%s722_s8 + $0x30] sm:$0xf] %vm386_vm0, %v552_v25  ;;  %400 = vst.msk [vmem:[%s722_s8 + $0x34] sm:$0xf] %vm386_vm0, %v553_v26 }
  0x38   : > { %401 = vst.msk [vmem:[%s722_s8 + $0x38] sm:$0xf] %vm386_vm0, %v554_v27  ;;  %402 = vst.msk [vmem:[%s722_s8 + $0x3c] sm:$0xf] %vm386_vm0, %v555_v28 }
  0x39 PF: > { %s13_s16 = sadd.s32 1, %s636_s16   ;;  %s775_s12 = smov %s628_s14 }
  0x3a   : > { %p10_p7 = scmp.ge.s32.totalorder %s13_s16, 6   ;;  %s776_s13 = smov %s632_s15 }
  0x3b   : > { %s777_s14 = smov %s780_s17  ;;  %s778_s15 = smov %s784_s18 }
  0x3c   :  { %12 = sbr.rel (!%p10_p7) target bundleno = 3 (0x3), region = 68 }

// kernel: residual_block_forward.9
= control target key start
LH: loop header
LB: loop body
LE: loop exit
PB: predicated region body
PF: predicated region fallthrough
CT: control target
= control target key end

     0   :  { %s683_s15 = smov 0   ;;  %s685_s16 = smov 0   ;;  %s860_s0 = inlined_call_operand.vmem [shape: f32[2,256,8], index: 0, kind: input, shape index: {}]   ;;  %s861_s1 = inlined_call_operand.vmem [shape: f32[2,256,8], index: 1, kind: input, shape index: {}]   ;;  %s862_s2 = inlined_call_operand.vmem [shape: f32[2,1,8], index: 2, kind: input, shape index: {}]   ;;  %s863_s3 = inlined_call_operand.vmem [shape: f32[2,1,8], index: 3, kind: input, shape index: {}]   ;;  %s864_s4 = inlined_call_operand.vmem [shape: f32[2,256,8], index: 4, kind: output, shape index: {}]  }
   0x1   :  { %s687_s17 = smov 0   ;;  %s689_s18 = smov 0  }
   0x2   :  { %s691_s19 = smov 0  }
   0x3 LB: > { %s23_s20 = sadd.s32 1, %s648_s17  ;;  %s26_s21 = sadd.s32 1, %s652_s18  ;;  %s656_s19 = sphi %s691_s19, %s14_s19   ;;  %s652_s18 = sphi %s689_s18, %s868_s18   ;;  %s648_s17 = sphi %s687_s17, %s867_s17   ;;  %s644_s16 = sphi %s685_s16, %s866_s16   ;;  %s640_s15 = sphi %s683_s15, %s865_s15  }
   0x4   : > { %p24_p0 = scmp.ge.s32.totalorder %s23_s20, 2  ;;  %p564_p1 = scmp.ge.s32.totalorder %s656_s19, 1 }
   0x5   : > { %p216_p2 = scmp.lt.s32.totalorder %s656_s19, 5 }
   0x6   : > { %s870_s20 = smov (%p24_p0, %s23_s20), 0  ;;  %s872_s21 = smov (!%p24_p0, %s26_s21), %s652_s18 }
   0x7   : > { %p217_p3 = pnand %p564_p1, %p216_p2  ;;  %p28_p4 = scmp.ge.s32.totalorder %s872_s21, 2 }
   0x8   : > { %s565_s22 = sshll.u32 (!%p217_p3), %s640_s15, 4  ;;  %p266_p5 = scmp.lt.s32.totalorder (!%p217_p3), %s644_s16, 1  ;;  %v324_v3 = vlaneseq (!%p217_p3)  ;;  %vm417_vm0 = vcmask (!%p217_p3), 64512  }
   0x9   : > { %s874_s21 = smov (%p28_p4, %s872_s21), 0  ;;  %220 = sbr.rel (%p217_p3) target bundleno = 57 (0x39), region = 36 }
   0xa   : > { %p268_p6 = scmp.lt.s32.totalorder (!%p217_p3), %s565_s22, 31  ;;  %v325_v7 = vshrl.u32 (!%p217_p3), %v324_v3, 7 }
   0xc   : > { %v326_v9 = vsub.s32 (!%p217_p3), 0, %v325_v7 }
  0x10   : > { %s876_s16 = smov (!%p266_p5, %s644_s16), 1  ;;  %s878_s22 = smov (!%p268_p6, %s565_s22), 31 }
  0x11   : > { %s287_s25 = scalar_lea.vmem %s862_s2, %s876_s16  ;;  %s290_s28 = scalar_lea.vmem %s863_s3, %s876_s16 }
  0x12   : > { %v301_v0 = vld [vmem:[%s287_s25] sm:$0x1]  ;;  %s566_s29 = sshll.u32 %s876_s16, 5 }
  0x13   : > { %v302_v1 = vmul.f32 0.00390625, %v301_v0  ;;  %v303_v2 = vld [vmem:[%s290_s28] sm:$0x1]  ;;  %s271_s30 = sadd.s32 %s566_s29, %s878_s22 }
  0x14   : > { %v304_v4 = vmul.f32 0.00390625, %v303_v2  ;;  %s719_s5 = sshll.u32 %s271_s30, 3 }
  0x15   : > { %v305_v5 = vmul.f32 %v302_v1, %v302_v1  ;;  %s283_s8 = scalar_lea.vmem %s861_s1, %s719_s5  ;;  %v725_v11 = vrot.slane %v302_v1, %v326_v9  ;;  %s735_s11 = scalar_lea.vmem %s860_s0, %s719_s5 }
  0x16   : > { %v307_v10 = vld [vmem:[%s283_s8] sm:$0xff]  ;;  %v308_v12 = vld [vmem:[%s283_s8 + $0x8] sm:$0xff]  ;;  %v309_v13 = vld [vmem:[%s283_s8 + $0x10] sm:$0xff]  ;;  %s795_s14 = scalar_lea.vmem %s864_s4, %s719_s5 }
  0x17   : > { %v306_v6 = vsub.f32 %v304_v4, %v305_v5  ;;  %v310_v14 = vld [vmem:[%s283_s8 + $0x18] sm:$0xff]  ;;  %v311_v15 = vld [vmem:[%s283_s8 + $0x20] sm:$0xff]  ;;  %v312_v16 = vld [vmem:[%s283_s8 + $0x28] sm:$0xff]  ;;  %v329_v21 = vsub.f32 %v307_v10, %v725_v11  ;;  %v330_v25 = vsub.f32 %v308_v12, %v725_v11  ;;  %v331_v26 = vsub.f32 %v309_v13, %v725_v11 }
  0x18   : > { %v313_v17 = vld [vmem:[%s283_s8 + $0x30] sm:$0xff]  ;;  %v314_v18 = vld [vmem:[%s283_s8 + $0x38] sm:$0xff]  ;;  %v727_v19 = vld [vmem:[%s283_s8 + $0x40] sm:$0xff]  ;;  %v332_v27 = vsub.f32 %v310_v14, %v725_v11  ;;  %v333_v28 = vsub.f32 %v311_v15, %v725_v11  ;;  %v334_v33 = vsub.f32 %v312_v16, %v725_v11 }
  0x19   : > { %v345_v8 = vadd.f32 1e-05, %v306_v6  ;;  %v729_v20 = vld [vmem:[%s283_s8 + $0x48] sm:$0xff]  ;;  %v738_v22 = vld [vmem:[%s283_s8 + $0x50] sm:$0xff]  ;;  %v740_v23 = vld [vmem:[%s283_s8 + $0x58] sm:$0xff]  ;;  %v335_v34 = vsub.f32 %v313_v17, %v725_v11  ;;  %v336_v35 = vsub.f32 %v314_v18, %v725_v11  ;;  %v337_v36 = vsub.f32 %v727_v19, %v725_v11 }
  0x1a   : > { %v742_v24 = vld [vmem:[%s283_s8 + $0x60] sm:$0xff]  ;;  %v748_v29 = vld [vmem:[%s283_s8 + $0x68] sm:$0xff]  ;;  %v750_v30 = vld [vmem:[%s283_s8 + $0x70] sm:$0xff]  ;;  %v338_v40 = vsub.f32 %v729_v20, %v725_v11  ;;  %v339_v41 = vsub.f32 %v738_v22, %v725_v11  ;;  %v340_v42 = vsub.f32 %v740_v23, %v725_v11 }
  0x1b   : > { %616 = vrsqrt.f32 %v345_v8  ;;  %v752_v31 = vld [vmem:[%s283_s8 + $0x78] sm:$0xff]  ;;  %v369_v38 = vld [vmem:[%s735_s11] sm:$0xff]  ;;  %v370_v39 = vld [vmem:[%s735_s11 + $0x8] sm:$0xff]  ;;  %v341_v46 = vsub.f32 %v742_v24, %v725_v11  ;;  %v342_v47 = vsub.f32 %v748_v29, %v725_v11  ;;  %v343_v48 = vsub.f32 %v750_v30, %v725_v11 }
  0x1c   : > { %v371_v43 = vld [vmem:[%s735_s11 + $0x10] sm:$0xff]  ;;  %v372_v44 = vld [vmem:[%s735_s11 + $0x18] sm:$0xff]  ;;  %v373_v45 = vld [vmem:[%s735_s11 + $0x20] sm:$0xff]  ;;  %v344_v49 = vsub.f32 %v752_v31, %v725_v11 }
  0x1d   : > { %v374_v54 = vld [vmem:[%s735_s11 + $0x28] sm:$0xff]  ;;  %v375_v55 = vld [vmem:[%s735_s11 + $0x30] sm:$0xff]  ;;  %v376_v56 = vld [vmem:[%s735_s11 + $0x38] sm:$0xff] }
  0x1e   : > { %v377_v5 = vld [vmem:[%s735_s11 + $0x40] sm:$0xff]  ;;  %v378_v10 = vld [vmem:[%s735_s11 + $0x48] sm:$0xff]  ;;  %v379_v11 = vld [vmem:[%s735_s11 + $0x50] sm:$0xff] }
  0x1f   : > { %v380_v16 = vld [vmem:[%s735_s11 + $0x58] sm:$0xff]  ;;  %v381_v17 = vld [vmem:[%s735_s11 + $0x60] sm:$0xff]  ;;  %v382_v22 = vld [vmem:[%s735_s11 + $0x68] sm:$0xff] }
  0x20   : > { %v383_v23 = vld [vmem:[%s735_s11 + $0x70] sm:$0xff]  ;;  %v384_v24 = vld [vmem:[%s735_s11 + $0x78] sm:$0xff] }
  0x25   : > { %v617_v32 = vpop.eup %616 }
  0x26   : > { %v759_v37 = vrot.slane %v617_v32, %v326_v9 }
  0x28   : > { %v353_v50 = vmul.f32 %v759_v37, %v329_v21  ;;  %v354_v51 = vmul.f32 %v759_v37, %v330_v25  ;;  %v355_v52 = vmul.f32 %v759_v37, %v331_v26  ;;  %v356_v53 = vmul.f32 %v759_v37, %v332_v27 }
  0x29   : > { %v357_v57 = vmul.f32 %v759_v37, %v333_v28  ;;  %v358_v58 = vmul.f32 %v759_v37, %v334_v33  ;;  %v359_v59 = vmul.f32 %v759_v37, %v335_v34  ;;  %v360_v60 = vmul.f32 %v759_v37, %v336_v35 }
  0x2a   : > { %v385_v61 = vadd.f32 %v369_v38, %v353_v50  ;;  %v386_v62 = vadd.f32 %v370_v39, %v354_v51  ;;  %v387_v63 = vadd.f32 %v371_v43, %v355_v52  ;;  %v388_v0 = vadd.f32 %v372_v44, %v356_v53 }
  0x2b   : > { %v389_v1 = vadd.f32 %v373_v45, %v357_v57  ;;  %v390_v2 = vadd.f32 %v374_v54, %v358_v58  ;;  %v391_v3 = vadd.f32 %v375_v55, %v359_v59  ;;  %v392_v4 = vadd.f32 %v376_v56, %v360_v60 }
  0x2c   : > { %v401_v6 = vmax.f32 %v385_v61, 0.0  ;;  %v402_v7 = vmax.f32 %v386_v62, 0.0  ;;  %v403_v8 = vmax.f32 %v387_v63, 0.0  ;;  %v404_v9 = vmax.f32 %v388_v0, 0.0 }
  0x2d   : > { %v405_v12 = vmax.f32 %v389_v1, 0.0  ;;  %v406_v13 = vmax.f32 %v390_v2, 0.0  ;;  %v407_v14 = vmax.f32 %v391_v3, 0.0  ;;  %v408_v15 = vmax.f32 %v392_v4, 0.0 }
  0x2e   : > { %418 = vst.msk [vmem:[%s795_s14] sm:$0xff] %vm417_vm0, %v401_v6  ;;  %419 = vst.msk [vmem:[%s795_s14 + $0x8] sm:$0xff] %vm417_vm0, %v402_v7  ;;  %v361_v18 = vmul.f32 %v759_v37, %v337_v36  ;;  %v362_v19 = vmul.f32 %v759_v37, %v338_v40  ;;  %v363_v20 = vmul.f32 %v759_v37, %v339_v41 }
  0x2f   : > { %420 = vst.msk [vmem:[%s795_s14 + $0x10] sm:$0xff] %vm417_vm0, %v403_v8  ;;  %421 = vst.msk [vmem:[%s795_s14 + $0x18] sm:$0xff] %vm417_vm0, %v404_v9  ;;  %v364_v21 = vmul.f32 %v759_v37, %v340_v42  ;;  %v365_v25 = vmul.f32 %v759_v37, %v341_v46  ;;  %v366_v26 = vmul.f32 %v759_v37, %v342_v47 }
  0x30   : > { %422 = vst.msk [vmem:[%s795_s14 + $0x20] sm:$0xff] %vm417_vm0, %v405_v12  ;;  %423 = vst.msk [vmem:[%s795_s14 + $0x28] sm:$0xff] %vm417_vm0, %v406_v13  ;;  %v367_v27 = vmul.f32 %v759_v37, %v343_v48  ;;  %v368_v28 = vmul.f32 %v759_v37, %v344_v49  ;;  %v393_v29 = vadd.f32 %v377_v5, %v361_v18 }
  0x31   : > { %424 = vst.msk [vmem:[%s795_s14 + $0x30] sm:$0xff] %vm417_vm0, %v407_v14  ;;  %425 = vst.msk [vmem:[%s795_s14 + $0x38] sm:$0xff] %vm417_vm0, %v408_v15  ;;  %v394_v30 = vadd.f32 %v378_v10, %v362_v19  ;;  %v395_v31 = vadd.f32 %v379_v11, %v363_v20  ;;  %v396_v32 = vadd.f32 %v380_v16, %v364_v21 }
  0x32   : > { %v397_v33 = vadd.f32 %v381_v17, %v365_v25  ;;  %v398_v34 = vadd.f32 %v382_v22, %v366_v26  ;;  %v399_v35 = vadd.f32 %v383_v23, %v367_v27  ;;  %v400_v36 = vadd.f32 %v384_v24, %v368_v28 }
  0x33   : > { %v409_v38 = vmax.f32 %v393_v29, 0.0  ;;  %v410_v39 = vmax.f32 %v394_v30, 0.0  ;;  %v411_v40 = vmax.f32 %v395_v31, 0.0  ;;  %v412_v37 = vmax.f32 %v396_v32, 0.0 }
  0x34   : > { %v413_v41 = vmax.f32 %v397_v33, 0.0  ;;  %v414_v42 = vmax.f32 %v398_v34, 0.0  ;;  %v415_v43 = vmax.f32 %v399_v35, 0.0  ;;  %v416_v44 = vmax.f32 %v400_v36, 0.0 }
  0x35   : > { %426 = vst.msk [vmem:[%s795_s14 + $0x40] sm:$0xff] %vm417_vm0, %v409_v38  ;;  %427 = vst.msk [vmem:[%s795_s14 + $0x48] sm:$0xff] %vm417_vm0, %v410_v39 }
  0x36   : > { %428 = vst.msk [vmem:[%s795_s14 + $0x50] sm:$0xff] %vm417_vm0, %v411_v40  ;;  %429 = vst.msk [vmem:[%s795_s14 + $0x58] sm:$0xff] %vm417_vm0, %v412_v37 }
  0x37   : > { %430 = vst.msk [vmem:[%s795_s14 + $0x60] sm:$0xff] %vm417_vm0, %v413_v41  ;;  %431 = vst.msk [vmem:[%s795_s14 + $0x68] sm:$0xff] %vm417_vm0, %v414_v42 }
  0x38   : > { %432 = vst.msk [vmem:[%s795_s14 + $0x70] sm:$0xff] %vm417_vm0, %v415_v43  ;;  %433 = vst.msk [vmem:[%s795_s14 + $0x78] sm:$0xff] %vm417_vm0, %v416_v44 }
  0x39 PF: > { %s14_s19 = sadd.s32 1, %s656_s19   ;;  %s865_s15 = smov %s648_s17 }
  0x3a   : > { %p11_p7 = scmp.ge.s32.totalorder %s14_s19, 6   ;;  %s866_s16 = smov %s652_s18 }
  0x3b   : > { %s867_s17 = smov %s870_s20  ;;  %s868_s18 = smov %s874_s21 }
  0x3c   :  { %13 = sbr.rel (!%p11_p7) target bundleno = 3 (0x3), region = 75 }

// kernel: residual_block_forward.5
= control target key start
LH: loop header
LB: loop body
LE: loop exit
PB: predicated region body
PF: predicated region fallthrough
CT: control target
= control target key end

     0   :  { %s3773_s15 = smov 0   ;;  %s3775_s16 = smov 0   ;;  %s4871_s0 = inlined_call_operand.vmem [shape: bf16[2,2,10,18,4], index: 0, kind: input, shape index: {}]   ;;  %s4872_s1 = inlined_call_operand.vmem [shape: bf16[9,4,8], index: 1, kind: input, shape index: {}]   ;;  %s4873_s2 = inlined_call_operand.vmem [shape: f32[2,256,8], index: 2, kind: output, shape index: {0}]   ;;  %s4874_s3 = inlined_call_operand.vmem [shape: f32[2,1,8], index: 3, kind: output, shape index: {1}]   ;;  %s4875_s4 = inlined_call_operand.vmem [shape: f32[2,1,8], index: 4, kind: output, shape index: {2}]  }
   0x1   :  { %s3777_s17 = smov 0   ;;  %s3779_s18 = smov 0  }
   0x2   :  { %s3781_s19 = smov 0  }
   0x3 LB: > { %s24_s20 = sadd.s32 1, %s3737_s17  ;;  %s27_s21 = sadd.s32 1, %s3741_s18  ;;  %s3745_s19 = sphi %s3781_s19, %s15_s19   ;;  %s3741_s18 = sphi %s3779_s18, %s4901_s18   ;;  %s3737_s17 = sphi %s3777_s17, %s4900_s17   ;;  %s3733_s16 = sphi %s3775_s16, %s4899_s16   ;;  %s3729_s15 = sphi %s3773_s15, %s4898_s15  }
   0x4   : > { %p25_p0 = scmp.ge.s32.totalorder %s24_s20, 2  ;;  %p2976_p1 = scmp.ge.s32.totalorder %s3745_s19, 1 }
   0x5   : > { %p187_p2 = scmp.lt.s32.totalorder %s3745_s19, 5 }
   0x6   : > { %s4903_s20 = smov (%p25_p0, %s24_s20), 0  ;;  %s4905_s21 = smov (!%p25_p0, %s27_s21), %s3741_s18 }
   0x7   : > { %p188_p3 = pnand %p2976_p1, %p187_p2  ;;  %p29_p4 = scmp.ge.s32.totalorder %s4905_s21, 2 }
   0x9   : > { %s4907_s21 = smov (%p29_p4, %s4905_s21), 0  ;;  %191 = sbr.rel (%p188_p3) target bundleno = 469 (0x1d5), region = 28 }
  0x10   : > { %v2981_v0 = vld [vmem:[%s4872_s1 + $0x2] sm:$0x3]  ;;  %vm524_vm0 = vcmask 1041408   ;;  %v3096_v1 = vld [vmem:[%s4872_s1 + $0x8] sm:$0x3]  ;;  %p227_p5 = scmp.lt.s32.totalorder %s3733_s16, 1 }
  0x11   : > { %3629 = vmatprep.subr.msk.bf16.mxu1 %vm524_vm0, %v2981_v0  ;;  %3633 = vmatprep.subr.msk.bf16.mxu0 %vm524_vm0, %v3096_v1  ;;  %v526_v2 = vsel %vm524_vm0, %v2981_v0, 0  ;;  %v3815_v3 = vsel %vm524_vm0, %v3096_v1, 0  ;;  %p229_p6 = scmp.lt.s32.totalorder %s3729_s15, 1  ;;  %v269_v4 = vld [vmem:[%s4872_s1] sm:$0x3]  ;;  %vm499_vm3 = vcmask 31744  }
  0x12   : > { %3338 = vmatpush3.bf16.msra.mxu1 %v526_v2  ;;  %3410 = vmatpush3.bf16.msra.mxu0 %v3815_v3  ;;  %s4909_s16 = smov (!%p227_p5, %s3733_s16), 1  ;;  %v3129_v5 = vld [vmem:[%s4872_s1 + $0xa] sm:$0x3]  ;;  %vm278_vm1 = vsmask.f32 3328  ;;  %v3870_v17 = vsel %vm524_vm0, %v269_v4, 0 }
  0x13   : > { %s230_s28 = scalar_select %p229_p6, %s3729_s15, 1  ;;  %3630 = vmatprep.subr.msk.bf16.mxu1 %vm524_vm0, %v269_v4  ;;  %3635 = vmatprep.subr.msk.bf16.mxu0 %vm524_vm0, %v3129_v5  ;;  %vm279_vm2 = vsmask.f32 7440  ;;  %v3876_v26 = vld [vmem:[%s4872_s1 + $0xc] sm:$0x3]  ;;  %v3893_v37 = vsel %vm524_vm0, %v3129_v5, 0 }
  0x14   : > { %s3640_s5 = smul.u32 60, %s4909_s16  ;;  %s3834_s8 = scalar_lea.vmem %s4874_s3, %s4909_s16  ;;  %vm3885_vm4 = vmor %vm278_vm1, %vm279_vm2  ;;  %v3897_v41 = vsel %vm524_vm0, %v3876_v26, 0  ;;  %vm813_vm5 = vcmask 1042432   ;;  %vm814_vm6 = vcmask 1046532   ;;  %vm2708_vm8 = vcmask 64512  }
  0x15   : > { %s3639_s9 = smul.u32 30, %s230_s28  ;;  %s3841_s12 = scalar_lea.vmem %s4875_s4, %s4909_s16  ;;  %vm4040_vm7 = vmor %vm813_vm5, %vm814_vm6 }
  0x16   : > { %p3253_p8 = scmp.ne.s32.totalorder %s3729_s15, 0 }
  0x17   : > { %s233_s13 = sadd.s32 %s3640_s5, %s3639_s9  ;;  %vm2729_vm9 = vcmask (!%p3253_p8), 57344  }
  0x18   : > { %s2977_s14 = sshll.u32 %s233_s13, 2  ;;  %s2978_s13 = sshll.u32 %s3729_s15, 4 }
  0x19   : > { %s3846_s24 = scalar_lea.vmem %s4871_s0, %s2977_s14  ;;  %p239_p7 = scmp.lt.s32.totalorder %s2978_s13, 31 }
  0x1a   : > { %v3849_v6 = vld [vmem:[%s3846_s24] sm:$0xf]  ;;  %v3852_v7 = vld [vmem:[%s3846_s24 + $0x4] sm:$0xf]  ;;  %v3855_v8 = vld [vmem:[%s3846_s24 + $0x8] sm:$0x1] }
  0x1b   : > { %v282_v9 = vshrl.u32 %v3849_v6, 16  ;;  %v285_v10 = vshll.u32 %v3849_v6, 16  ;;  %v291_v11 = vshll.u32 %v3852_v7, 16  ;;  %v295_v12 = vshrl.u32 %v3852_v7, 16  ;;  %v3072_v13 = vld [vmem:[%s3846_s24 + $0xc] sm:$0xf] }
  0x1c   : > { %v301_v14 = vshll.u32 %v3855_v8, 16  ;;  %v3864_v15 = vld [vmem:[%s3846_s24 + $0x10] sm:$0xf]  ;;  %v3867_v16 = vld [vmem:[%s3846_s24 + $0x14] sm:$0x1]  ;;  %v1262_v23 = vshrl.u32 %v3072_v13, 16 }
  0x1d   : > { %v284_v18 = vrot.slane %v282_v9, 4  ;;  %v287_v19 = vrot.slane %v285_v10, 5  ;;  %v293_v20 = vrot.slane %v291_v11, 5  ;;  %v297_v21 = vrot.slane %v295_v12, 4  ;;  %v3881_v31 = vld [vmem:[%s3846_s24 + $0xc] sm:$0xf] }
  0x1e   : > { %v303_v22 = vrot.slane %v301_v14, 5  ;;  %v1265_v24 = vshll.u32 %v3072_v13, 16  ;;  %v1271_v25 = vshll.u32 %v3864_v15, 16  ;;  %v1275_v29 = vshrl.u32 %v3864_v15, 16  ;;  %v3890_v36 = vld [vmem:[%s3846_s24 + $0x10] sm:$0xf] }
  0x1f   : > { %v288_v27 = vor.u32 %v287_v19, %v284_v18  ;;  %v298_v28 = vor.u32 %v297_v21, %v293_v20  ;;  %v1281_v30 = vshll.u32 %v3867_v16, 16  ;;  %v1264_v33 = vrot.slane %v1262_v23, 4  ;;  %v3900_v44 = vld [vmem:[%s3846_s24 + $0x14] sm:$0x1]  ;;  %v3075_v55 = vld [vmem:[%s3846_s24 + $0x18] sm:$0xf] }
  0x20   : > { %v1267_v34 = vrot.slane %v1265_v24, 5  ;;  %v1273_v35 = vrot.slane %v1271_v25, 5  ;;  %v1277_v40 = vrot.slane %v1275_v29, 4  ;;  %v306_v45 = vshrl.u32 %v3881_v31, 16  ;;  %v3913_v60 = vld [vmem:[%s3846_s24 + $0x1c] sm:$0xf] }
  0x21   : > { %v289_v38 = vrot.slane %v288_v27, 4  ;;  %v299_v39 = vrot.slane %v298_v28, 4  ;;  %v1283_v43 = vrot.slane %v1281_v30, 5  ;;  %v309_v46 = vshll.u32 %v3881_v31, 16  ;;  %v3921_v1 = vld [vmem:[%s3846_s24 + $0x20] sm:$0x1] }
  0x22   : > { %v1268_v42 = vor.u32 %v1267_v34, %v1264_v33  ;;  %v1278_v49 = vor.u32 %v1277_v40, %v1273_v35  ;;  %v315_v50 = vshll.u32 %v3890_v36, 16  ;;  %v308_v53 = vrot.slane %v306_v45, 4  ;;  %v3929_v21 = vld [vmem:[%s3846_s24 + $0x18] sm:$0xf]  ;;  %v3936_v27 = vld [vmem:[%s3846_s24 + $0x1c] sm:$0xf] }
  0x23   : > { %v294_v47 = vsel %vm3885_vm4, %v289_v38, %v293_v20  ;;  %v304_v48 = vsel %vm3885_vm4, %v299_v39, %v303_v22  ;;  %v311_v54 = vrot.slane %v309_v46, 5  ;;  %v319_v58 = vshrl.u32 %v3890_v36, 16  ;;  %v3944_v38 = vld [vmem:[%s3846_s24 + $0x20] sm:$0x1]  ;;  %s4911_s13 = smov (!%p239_p7, %s2978_s13), 31  ;;  %s2979_s14 = sshll.u32 %s4909_s16, 5 }
  0x24   : > { %v2982_v51 = vcombine.low %v294_v47, %v304_v48  ;;  %v1269_v52 = vrot.slane %v1268_v42, 4  ;;  %v1279_v56 = vrot.slane %v1278_v49, 4  ;;  %v317_v57 = vrot.slane %v315_v50, 5  ;;  %v3078_v47 = vld [vmem:[%s3846_s24 + $0x24] sm:$0xf]  ;;  %s242_s22 = sadd.s32 %s2979_s14, %s4911_s13 }
  0x25   : > { %v325_v59 = vshll.u32 %v3900_v44, 16  ;;  %v1653_v62 = vrot.slane %v3864_v15, 5  ;;  %v1656_v63 = vrot.slane %v3867_v16, 5  ;;  %v312_v0 = vor.u32 %v311_v54, %v308_v53  ;;  %s2980_s23 = sshll.u32 %s242_s22, 3 }
  0x26   : > { %3339 = vmatprep.mubr.msk.bf16.mxu1 %vm499_vm3, %v2982_v51  ;;  %v1274_v61 = vsel %vm3885_vm4, %v1269_v52, %v1273_v35  ;;  %v1284_v2 = vsel %vm3885_vm4, %v1279_v56, %v1283_v43  ;;  %v321_v4 = vrot.slane %v319_v58, 4  ;;  %v1286_v9 = vshrl.u32 %v3075_v55, 16  ;;  %v3954_v52 = vld [vmem:[%s3846_s24 + $0x28] sm:$0xf]  ;;  %s4687_s26 = scalar_lea.vmem %s4873_s2, %s2980_s23 }
  0x27   : > { %v327_v5 = vrot.slane %v325_v59, 5  ;;  %v3097_v10 = vcombine.low %v1274_v61, %v1284_v2  ;;  %v313_v11 = vrot.slane %v312_v0, 4  ;;  %v1289_v12 = vshll.u32 %v3075_v55, 16  ;;  %v3966_v61 = vld [vmem:[%s3846_s24 + $0x2c] sm:$0x1] }
  0x28   : > { %v1295_v13 = vshll.u32 %v3913_v60, 16  ;;  %v322_v14 = vor.u32 %v321_v4, %v317_v57  ;;  %v1288_v18 = vrot.slane %v1286_v9, 4  ;;  %v1299_v19 = vshrl.u32 %v3913_v60, 16 }
  0x29   : > { %v1305_v20 = vshll.u32 %v3921_v1, 16  ;;  %3411 = vmatprep.mubr.msk.bf16.mxu0 %vm499_vm3, %v3097_v10  ;;  %v318_v22 = vsel %vm3885_vm4, %v313_v11, %v317_v57  ;;  %v1291_v23 = vrot.slane %v1289_v12, 5  ;;  %v1660_v25 = vrot.slane %v3913_v60, 5  ;;  %v3960_v57 = vld [vmem:[%s4872_s1 + $0x4] sm:$0x3] }
  0x2a   : > { %v1297_v24 = vrot.slane %v1295_v13, 5  ;;  %v323_v28 = vrot.slane %v322_v14, 4  ;;  %v1301_v29 = vrot.slane %v1299_v19, 4  ;;  %v1663_v33 = vrot.slane %v3921_v1, 5  ;;  %v3973_v11 = vld [vmem:[%s3846_s24 + $0x24] sm:$0xf] }
  0x2b   : > { %v1307_v30 = vrot.slane %v1305_v20, 5  ;;  %v1292_v34 = vor.u32 %v1291_v23, %v1288_v18  ;;  %v3941_v35 = vrot.slane %v1660_v25, 4  ;;  %v330_v39 = vshrl.u32 %v3929_v21, 16  ;;  %v3976_v19 = vld [vmem:[%s3846_s24 + $0x28] sm:$0xf] }
  0x2c   : > { %v333_v40 = vshll.u32 %v3929_v21, 16  ;;  %v328_v42 = vsel %vm3885_vm4, %v323_v28, %v327_v5  ;;  %v1302_v43 = vor.u32 %v1301_v29, %v1297_v24  ;;  %v339_v45 = vshll.u32 %v3936_v27, 16  ;;  %v3986_v29 = vld [vmem:[%s3846_s24 + $0x2c] sm:$0x1] }
  0x2d   : > { %v343_v46 = vshrl.u32 %v3936_v27, 16  ;;  %v2983_v48 = vcombine.low %v318_v22, %v328_v42  ;;  %v1293_v49 = vrot.slane %v1292_v34, 4  ;;  %v332_v50 = vrot.slane %v330_v39, 4 }
  0x2e   : > { %v335_v51 = vrot.slane %v333_v40, 5  ;;  %v1303_v53 = vrot.slane %v1302_v43, 4  ;;  %v341_v54 = vrot.slane %v339_v45, 5  ;;  %v349_v56 = vshll.u32 %v3944_v38, 16  ;;  %v3081_v45 = vld [vmem:[%s3846_s24 + $0x30] sm:$0xf] }
  0x2f   : > { %v345_v55 = vrot.slane %v343_v46, 4  ;;  %3340 = vmatmul.mubr.msk.bf16.vlgmr.msra.gmra.mrb[0].mxu1 %vm499_vm3, %v2983_v48  ;;  %v1298_v58 = vsel %vm3885_vm4, %v1293_v49, %v1297_v24  ;;  %v1310_v0 = vshrl.u32 %v3078_v47, 16  ;;  %v1313_v2 = vshll.u32 %v3078_v47, 16 }
  0x30   : > { %v336_v59 = vor.u32 %v335_v51, %v332_v50  ;;  %3356 = vmatpush3.bf16.msra.mxu1 %v3870_v17  ;;  %v1308_v4 = vsel %vm3885_vm4, %v1303_v53, %v1307_v30  ;;  %v351_v9 = vrot.slane %v349_v56, 5  ;;  %v1319_v10 = vshll.u32 %v3954_v52, 16  ;;  %v3996_v50 = vld [vmem:[%s3846_s24 + $0x34] sm:$0xf] }
  0x31   : > { %v346_v5 = vor.u32 %v345_v55, %v341_v54  ;;  %v3098_v12 = vcombine.low %v1298_v58, %v1308_v4  ;;  %v1312_v14 = vrot.slane %v1310_v0, 4  ;;  %v1315_v18 = vrot.slane %v1313_v2, 5  ;;  %3631 = vmatprep.subr.msk.bf16.mxu1 %vm524_vm0, %v3960_v57  ;;  %v4006_v58 = vld [vmem:[%s3846_s24 + $0x38] sm:$0x1] }
  0x32   : > { %v337_v13 = vrot.slane %v336_v59, 4  ;;  %v1321_v20 = vrot.slane %v1319_v10, 5  ;;  %v1323_v22 = vshrl.u32 %v3954_v52, 16  ;;  %v1329_v23 = vshll.u32 %v3966_v61, 16 }
  0x33   : > { %v347_v17 = vrot.slane %v346_v5, 4  ;;  %3412 = vmatmul.mubr.msk.bf16.vlgmr.msra.gmra.mrb[0].mxu0 %vm499_vm3, %v3098_v12  ;;  %v1316_v28 = vor.u32 %v1315_v18, %v1312_v14  ;;  %v354_v30 = vshrl.u32 %v3973_v11, 16  ;;  %v357_v34 = vshll.u32 %v3973_v11, 16  ;;  %v4011_v14 = vld [vmem:[%s3846_s24 + $0x30] sm:$0xf] }
  0x34   : > { %v342_v24 = vsel %vm3885_vm4, %v337_v13, %v341_v54  ;;  %3428 = vmatpush3.bf16.msra.mxu0 %v3893_v37  ;;  %v1325_v40 = vrot.slane %v1323_v22, 4  ;;  %v1331_v42 = vrot.slane %v1329_v23, 5  ;;  %v363_v43 = vshll.u32 %v3976_v19, 16  ;;  %v4017_v23 = vld [vmem:[%s3846_s24 + $0x34] sm:$0xf] }
  0x35   : > { %v352_v39 = vsel %vm3885_vm4, %v347_v17, %v351_v9  ;;  %v1317_v47 = vrot.slane %v1316_v28, 4  ;;  %v356_v48 = vrot.slane %v354_v30, 4  ;;  %v359_v49 = vrot.slane %v357_v34, 5  ;;  %3636 = vmatprep.subr.msk.bf16.mxu0 %vm524_vm0, %v3876_v26 }
  0x36   : > { %v2984_v46 = vcombine.low %v342_v24, %v352_v39  ;;  %v1326_v37 = vor.u32 %v1325_v40, %v1321_v20  ;;  %v365_v51 = vrot.slane %v363_v43, 5  ;;  %v367_v53 = vshrl.u32 %v3976_v19, 16  ;;  %v4022_v39 = vld [vmem:[%s3846_s24 + $0x38] sm:$0x1] }
  0x37   : > { %v373_v54 = vshll.u32 %v3986_v29, 16  ;;  %v1322_v55 = vsel %vm3885_vm4, %v1317_v47, %v1321_v20  ;;  %v360_v56 = vor.u32 %v359_v49, %v356_v48  ;;  %v1334_v59 = vshrl.u32 %v3081_v45, 16 }
  0x38   : > { %3343 = vmatprep.mubr.msk.bf16.mxu1 %vm499_vm3, %v2984_v46  ;;  %v1337_v0 = vshll.u32 %v3081_v45, 16  ;;  %v1327_v2 = vrot.slane %v1326_v37, 4  ;;  %v369_v26 = vrot.slane %v367_v53, 4  ;;  %v1343_v5 = vshll.u32 %v3996_v50, 16  ;;  %v3113_v37 = vld [vmem:[%s3846_s24 + $0xc] sm:$0xe] }
  0x39   : > { %v375_v4 = vrot.slane %v373_v54, 5  ;;  %v361_v9 = vrot.slane %v360_v56, 4  ;;  %v1336_v10 = vrot.slane %v1334_v59, 4  ;;  %v1347_v13 = vshrl.u32 %v3996_v50, 16  ;;  %v4034_v56 = vld [vmem:[%s3846_s24 + $0x3c] sm:$0xf] }
  0x3a   : > { %v1339_v12 = vrot.slane %v1337_v0, 5  ;;  %v1332_v18 = vsel %vm3885_vm4, %v1327_v2, %v1331_v42  ;;  %v370_v17 = vor.u32 %v369_v26, %v365_v51  ;;  %v1345_v20 = vrot.slane %v1343_v5, 5 }
  0x3b   : > { %v1353_v22 = vshll.u32 %v4006_v58, 16  ;;  %v3099_v24 = vcombine.low %v1322_v55, %v1332_v18  ;;  %v366_v28 = vsel %vm3885_vm4, %v361_v9, %v365_v51  ;;  %v1349_v34 = vrot.slane %v1347_v13, 4  ;;  %v4048_v18 = vld [vmem:[%s3846_s24 + $0x44] sm:$0x1] }
  0x3c   : > { %v1340_v30 = vor.u32 %v1339_v12, %v1336_v10  ;;  %v371_v40 = vrot.slane %v370_v17, 4  ;;  %v378_v42 = vshrl.u32 %v4011_v14, 16  ;;  %v381_v45 = vshll.u32 %v4011_v14, 16  ;;  %v3114_v17 = vld [vmem:[%s3846_s24 + $0x18] sm:$0xe] }
  0x3d   : > { %v1355_v43 = vrot.slane %v1353_v22, 5  ;;  %3415 = vmatprep.mubr.msk.bf16.mxu0 %vm499_vm3, %v3099_v24  ;;  %v1350_v47 = vor.u32 %v1349_v34, %v1345_v20  ;;  %v387_v48 = vshll.u32 %v4017_v23, 16  ;;  %v391_v49 = vshrl.u32 %v4017_v23, 16 }
  0x3e   : > { %v1341_v46 = vrot.slane %v1340_v30, 4  ;;  %v376_v51 = vsel %vm3885_vm4, %v371_v40, %v375_v4  ;;  %v380_v53 = vrot.slane %v378_v42, 4  ;;  %v383_v54 = vrot.slane %v381_v45, 5  ;;  %v4045_v4 = vld [vmem:[%s3846_s24 + $0x40] sm:$0xf] }
  0x3f   : > { %v397_v55 = vshll.u32 %v4022_v39, 16  ;;  %v2985_v59 = vcombine.low %v366_v28, %v376_v51  ;;  %v1351_v2 = vrot.slane %v1350_v47, 4  ;;  %v389_v26 = vrot.slane %v387_v48, 5  ;;  %v4059_v30 = vld [vmem:[%s3846_s24 + $0x48] sm:$0xf] }
  0x40   : > { %v1346_v0 = vsel %vm3885_vm4, %v1341_v46, %v1345_v20  ;;  %v384_v9 = vor.u32 %v383_v54, %v380_v53  ;;  %v393_v10 = vrot.slane %v391_v49, 4  ;;  %v3121_v13 = vrot.slane %v3113_v37, 9 }
  0x41   : > { %v399_v12 = vrot.slane %v397_v55, 5  ;;  %3344 = vmatmul.mubr.msk.bf16.gmra.mrb[4].mxu1 %vm499_vm3, %v2985_v59  ;;  %v1356_v20 = vsel %vm3885_vm4, %v1351_v2, %v1355_v43  ;;  %v1655_v22 = vrot.slane %v1653_v62, 4  ;;  %v402_v24 = vshrl.u32 %v4034_v56, 16  ;;  %v4079_v55 = vld [vmem:[%s3846_s24 + $0x50] sm:$0x1] }
  0x42   : > { %v405_v28 = vshll.u32 %v4034_v56, 16  ;;  %v3100_v34 = vcombine.low %v1346_v0, %v1356_v20  ;;  %v385_v40 = vrot.slane %v384_v9, 4  ;;  %v394_v42 = vor.u32 %v393_v10, %v389_v26 }
  0x43   : > { %v1654_v45 = vsel %vm4040_vm7, %v3121_v13, %v1653_v62  ;;  %v1657_v43 = vsel %vm4040_vm7, %v1655_v22, %v1656_v63  ;;  %v404_v46 = vrot.slane %v402_v24, 4  ;;  %v411_v48 = vshll.u32 %v4045_v4, 16  ;;  %v4075_v62 = vld [vmem:[%s3846_s24 + $0x4c] sm:$0xf] }
  0x44   : > { %v407_v47 = vrot.slane %v405_v28, 5  ;;  %3416 = vmatmul.mubr.msk.bf16.gmra.mrb[4].mxu0 %vm499_vm3, %v3100_v34  ;;  %v390_v49 = vsel %vm3885_vm4, %v385_v40, %v389_v26  ;;  %v395_v37 = vrot.slane %v394_v42, 4  ;;  %v3130_v15 = vcombine.low %v1654_v45, %v1657_v43  ;;  %v4097_v28 = vld [vmem:[%s3846_s24 + $0x54] sm:$0xf]  ;;  %v4108_v34 = vld [vmem:[%s4872_s1 + $0xe] sm:$0x3] }
  0x45   : > { %v415_v51 = vshrl.u32 %v4045_v4, 16  ;;  %v413_v53 = vrot.slane %v411_v48, 5  ;;  %v421_v63 = vshll.u32 %v4048_v18, 16  ;;  %v3122_v54 = vrot.slane %v3114_v17, 9 }
  0x46   : > { %v408_v16 = vor.u32 %v407_v47, %v404_v46  ;;  %v400_v59 = vsel %vm3885_vm4, %v395_v37, %v399_v12  ;;  %3429 = vmatprep.mubr.msk.bf16.mxu0 %vm499_vm3, %v3130_v15  ;;  %v1664_v2 = vsel %vm4040_vm7, %v3941_v35, %v1663_v33  ;;  %v426_v26 = vshrl.u32 %v4059_v30, 16  ;;  %v3115_v12 = vld [vmem:[%s3846_s24 + $0x24] sm:$0xe]  ;;  %v4113_v37 = vld [vmem:[%s3846_s24 + $0x58] sm:$0xf] }
  0x47   : > { %v417_v0 = vrot.slane %v415_v51, 4  ;;  %v2986_v9 = vcombine.low %v390_v49, %v400_v59  ;;  %v423_v13 = vrot.slane %v421_v63, 5  ;;  %v1661_v17 = vsel %vm4040_vm7, %v3122_v54, %v1660_v25  ;;  %v4122_v54 = vld [vmem:[%s3846_s24 + $0x5c] sm:$0x1] }
  0x48   : > { %v409_v10 = vrot.slane %v408_v16, 4  ;;  %v3131_v22 = vcombine.low %v1661_v17, %v1664_v2  ;;  %v428_v24 = vrot.slane %v426_v26, 4  ;;  %v429_v1 = vshll.u32 %v4059_v30, 16 }
  0x49   : > { %v418_v20 = vor.u32 %v417_v0, %v413_v53  ;;  %3347 = vmatprep.mubr.msk.bf16.mxu1 %vm499_vm3, %v2986_v9  ;;  %v435_v35 = vshll.u32 %v4075_v62, 16  ;;  %v439_v60 = vshrl.u32 %v4075_v62, 16  ;;  %v445_v25 = vshll.u32 %v4079_v55, 16 }
  0x4a   : > { %v414_v33 = vsel %vm3885_vm4, %v409_v10, %v413_v53  ;;  %v431_v42 = vrot.slane %v429_v1, 5  ;;  %v3123_v45 = vrot.slane %v3115_v12, 9  ;;  %v1667_v43 = vrot.slane %v3954_v52, 5  ;;  %v3116_v10 = vld [vmem:[%s3846_s24 + $0x30] sm:$0xe] }
  0x4b   : > { %v419_v40 = vrot.slane %v418_v20, 4  ;;  %v437_v46 = vrot.slane %v435_v35, 5  ;;  %v441_v47 = vrot.slane %v439_v60, 4  ;;  %v447_v48 = vrot.slane %v445_v25, 5 }
  0x4c   : > { %v1670_v49 = vrot.slane %v3966_v61, 5  ;;  %3430 = vmatmul.mubr.msk.bf16.vlgmr.msra.gmra.mrb[0].mxu0 %vm499_vm3, %v3131_v22  ;;  %v432_v51 = vor.u32 %v431_v42, %v428_v24  ;;  %v1668_v16 = vsel %vm4040_vm7, %v3123_v45, %v1667_v43  ;;  %v1669_v53 = vrot.slane %v1667_v43, 4  ;;  %v4143_v42 = vld [vmem:[%s3846_s24 + $0x40] sm:$0xf]  ;;  %v4146_v45 = vld [vmem:[%s3846_s24 + $0x44] sm:$0x1] }
  0x4d   : > { %v424_v15 = vsel %vm3885_vm4, %v419_v40, %v423_v13  ;;  %3446 = vmatpush3.bf16.msra.mxu0 %v3897_v41  ;;  %v442_v52 = vor.u32 %v441_v47, %v437_v46  ;;  %v450_v61 = vshrl.u32 %v4097_v28, 16  ;;  %v453_v59 = vshll.u32 %v4097_v28, 16 }
  0x4e   : > { %v2987_v63 = vcombine.low %v414_v33, %v424_v15  ;;  %v433_v0 = vrot.slane %v432_v51, 4  ;;  %v1671_v2 = vsel %vm4040_vm7, %v1669_v53, %v1670_v49  ;;  %v459_v26 = vshll.u32 %v4113_v37, 16  ;;  %3637 = vmatprep.subr.msk.bf16.mxu0 %vm524_vm0, %v4108_v34  ;;  %v3117_v33 = vld [vmem:[%s3846_s24 + $0x3c] sm:$0xe] }
  0x4f   : > { %v463_v9 = vshrl.u32 %v4113_v37, 16  ;;  %v443_v41 = vrot.slane %v442_v52, 4  ;;  %v3132_v13 = vcombine.low %v1668_v16, %v1671_v2  ;;  %v452_v17 = vrot.slane %v450_v61, 4  ;;  %v3118_v2 = vld [vmem:[%s3846_s24 + $0x48] sm:$0xe] }
  0x50   : > { %3348 = vmatmul.mubr.msk.bf16.gmra.mrb[8].mxu1 %vm499_vm3, %v2987_v63  ;;  %v455_v12 = vrot.slane %v453_v59, 5  ;;  %v438_v20 = vsel %vm3885_vm4, %v433_v0, %v437_v46  ;;  %v461_v22 = vrot.slane %v459_v26, 5  ;;  %v469_v1 = vshll.u32 %v4122_v54, 16  ;;  %v4161_v59 = vld [vmem:[%s3846_s24 + $0x4c] sm:$0xf] }
  0x51   : > { %v465_v24 = vrot.slane %v463_v9, 4  ;;  %v448_v35 = vsel %vm3885_vm4, %v443_v41, %v447_v48  ;;  %3433 = vmatprep.mubr.msk.bf16.mxu0 %vm499_vm3, %v3132_v13  ;;  %v3124_v25 = vrot.slane %v3116_v10, 9  ;;  %v1674_v40 = vrot.slane %v3996_v50, 5  ;;  %v4164_v0 = vld [vmem:[%s3846_s24 + $0x50] sm:$0x1] }
  0x52   : > { %v456_v60 = vor.u32 %v455_v12, %v452_v17  ;;  %v2988_v43 = vcombine.low %v438_v20, %v448_v35  ;;  %v471_v47 = vrot.slane %v469_v1, 5  ;;  %v1677_v49 = vrot.slane %v4006_v58, 5  ;;  %v4172_v17 = vld [vmem:[%s3846_s24 + $0x58] sm:$0xf]  ;;  %v4175_v12 = vld [vmem:[%s3846_s24 + $0x5c] sm:$0x1] }
  0x53   : > { %v466_v46 = vor.u32 %v465_v24, %v461_v22  ;;  %v1675_v48 = vsel %vm4040_vm7, %v3124_v25, %v1674_v40  ;;  %v1676_v51 = vrot.slane %v1674_v40, 4  ;;  %v3125_v16 = vrot.slane %v3117_v33, 9  ;;  %4885 = vst [vmem:[#allocation2_spill] sm:$0xff] %v4175_v12  ;;  %v4185_v35 = vld [vmem:[%s3846_s24 + $0x64] sm:$0xf] }
  0x54   : > { %v457_v15 = vrot.slane %v456_v60, 4  ;;  %3351 = vmatprep.mubr.msk.bf16.mxu1 %vm499_vm3, %v2988_v43  ;;  %v1681_v53 = vrot.slane %v4143_v42, 5  ;;  %v1684_v63 = vrot.slane %v4146_v45, 5  ;;  %v2998_v61 = vcombine.low %v3849_v6, %v3852_v7  ;;  %v3119_v6 = vld [vmem:[%s3846_s24 + $0x54] sm:$0xe]  ;;  %4886 = vst [vmem:[#allocation3_spill] sm:$0xff] %v4185_v35 }
  0x55   : > { %v467_v50 = vrot.slane %v466_v46, 4  ;;  %v1678_v58 = vsel %vm4040_vm7, %v1676_v51, %v1677_v49  ;;  %v1688_v24 = vrot.slane %v4161_v59, 5  ;;  %v1691_v1 = vrot.slane %v4164_v0, 5  ;;  %v4188_v60 = vld [vmem:[%s3846_s24 + $0x68] sm:$0x1] }
  0x56   : > { %v462_v52 = vsel %vm3885_vm4, %v457_v15, %v461_v22  ;;  %v3133_v9 = vcombine.low %v1675_v48, %v1678_v58  ;;  %v1682_v10 = vsel %vm4040_vm7, %v3125_v16, %v1681_v53  ;;  %v1683_v41 = vrot.slane %v1681_v53, 4  ;;  %4887 = vst [vmem:[#allocation4_spill] sm:$0xff] %v4188_v60 }
  0x57   : > { %v472_v26 = vsel %vm3885_vm4, %v467_v50, %v471_v47  ;;  %v3126_v22 = vrot.slane %v3118_v2, 9  ;;  %v1690_v40 = vrot.slane %v1688_v24, 4  ;;  %v3127_v43 = vrot.slane %v3119_v6, 9  ;;  %v3120_v47 = vld [vmem:[%s3846_s24 + $0x60] sm:$0xe] }
  0x58   : > { %v2989_v13 = vcombine.low %v462_v52, %v472_v26  ;;  %3434 = vmatmul.mubr.msk.bf16.gmra.mrb[4].mxu0 %vm499_vm3, %v3133_v9  ;;  %v1685_v20 = vsel %vm4040_vm7, %v1683_v41, %v1684_v63  ;;  %v1695_v46 = vrot.slane %v4172_v17, 5  ;;  %v825_v49 = vrot.slane %v3890_v36, 5  ;;  %v791_v2 = vld [vmem:[%s3846_s24 + $0x18] sm:$0xe]  ;;  %v4220_v6 = vld [vmem:[%s4872_s1 + $0x6] sm:$0x3] }
  0x59   : > { %v3134_v33 = vcombine.low %v1682_v10, %v1685_v20  ;;  %v1689_v25 = vsel %vm4040_vm7, %v3126_v22, %v1688_v24  ;;  %v1698_v15 = vrot.slane %v4175_v12, 5  ;;  %v1692_v48 = vsel %vm4040_vm7, %v1690_v40, %v1691_v1  ;;  %v793_v1 = vld [vmem:[%s3846_s24 + $0x30] sm:$0xe] }
  0x5a   : > { %3352 = vmatmul.mubr.msk.bf16.gmra.mrb[12].mxu1 %vm499_vm3, %v2989_v13  ;;  %v1696_v51 = vsel %vm4040_vm7, %v3127_v43, %v1695_v46  ;;  %v1697_v16 = vrot.slane %v1695_v46, 4  ;;  %v1702_v50 = vrot.slane %v4185_v35, 5  ;;  %v2999_v53 = vcombine.low %v3881_v31, %v3890_v36  ;;  %v792_v36 = vld [vmem:[%s3846_s24 + $0x24] sm:$0xe]  ;;  %v4494_v12 = vld [vmem:[%s3846_s24 + $0x70] sm:$0xf] }
  0x5b   : > { %3357 = vmatprep.mubr.msk.bf16.mxu1 %vm499_vm3, %v2998_v61  ;;  %3437 = vmatprep.mubr.msk.bf16.mxu0 %vm499_vm3, %v3134_v33  ;;  %v3135_v63 = vcombine.low %v1689_v25, %v1692_v48  ;;  %v3128_v52 = vrot.slane %v3120_v47, 9  ;;  %v1705_v58 = vrot.slane %v4188_v60, 5  ;;  %v790_v61 = vld [vmem:[%s3846_s24 + $0xc] sm:$0xe]  ;;  %v828_v26 = vrot.slane %v3900_v44, 5 }
  0x5c   : > { %v3000_v9 = vcombine.low %v3929_v21, %v3936_v27  ;;  %v1699_v10 = vsel %vm4040_vm7, %v1697_v16, %v1698_v15  ;;  %v1704_v41 = vrot.slane %v1702_v50, 4  ;;  %v923_v13 = vsel %vm524_vm0, %v3960_v57, 0  ;;  %v3687_v16 = vld [vmem:[%s3846_s24 + $0x18] sm:$0xff]   ;;  %v4466_v60 = vld [vmem:[%s3846_s24 + $0x64] sm:$0xf] }
  0x5d   : > { %v3136_v31 = vcombine.low %v1696_v51, %v1699_v10  ;;  %v3015_v44 = vrot.slane %v790_v61, 9  ;;  %v827_v20 = vrot.slane %v825_v49, 4  ;;  %v3016_v21 = vrot.slane %v791_v2, 9  ;;  %4888 = vst [vmem:[#allocation5_spill] sm:$0xff] %v4466_v60 }
  0x5e   : > { %v1703_v22 = vsel %vm4040_vm7, %v3128_v52, %v1702_v50  ;;  %v1706_v57 = vsel %vm4040_vm7, %v1704_v41, %v1705_v58  ;;  %v832_v24 = vrot.slane %v3936_v27, 5  ;;  %v835_v40 = vrot.slane %v3944_v38, 5 }
  0x5f   : > { %v4233_v33 = vsel %vm4040_vm7, %v3015_v44, %v825_v49  ;;  %v4237_v25 = vsel %vm4040_vm7, %v827_v20, %v828_v26  ;;  %v3017_v43 = vrot.slane %v792_v36, 9  ;;  %v3137_v49 = vcombine.low %v1703_v22, %v1706_v57  ;;  %v3179_v26 = vld [vmem:[%s3846_s24 + $0x18] sm:$0xf]  ;;  %v3689_v57 = vld [vmem:[%s3846_s24 + $0x24] sm:$0xff]  }
  0x60   : > { %3438 = vmatmul.mubr.msk.bf16.gmra.mrb[8].mxu0 %vm499_vm3, %v3135_v63  ;;  %v3024_v27 = vcombine.low %v4233_v33, %v4237_v25  ;;  %v4246_v46 = vsel %vm4040_vm7, %v3016_v21, %v832_v24  ;;  %v834_v47 = vrot.slane %v832_v24, 4  ;;  %v839_v15 = vrot.slane %v3976_v19, 5 }
  0x61   : > { %3441 = vmatprep.mubr.msk.bf16.mxu0 %vm499_vm3, %v3136_v31  ;;  %v842_v48 = vrot.slane %v3986_v29, 5  ;;  %v3018_v38 = vrot.slane %v793_v1, 9  ;;  %v3001_v51 = vcombine.low %v3973_v11, %v3976_v19  ;;  %v849_v63 = vrot.slane %v4022_v39, 5  ;;  %v794_v19 = vld [vmem:[%s3846_s24 + $0x3c] sm:$0xe] }
  0x62   : > { %3358 = vmatmul.mubr.msk.bf16.vlgmr.msra.gmra.mrb[0].mxu1 %vm499_vm3, %v2999_v53  ;;  %v4255_v50 = vsel %vm4040_vm7, %v834_v47, %v835_v40  ;;  %v846_v53 = vrot.slane %v4017_v23, 5  ;;  %v3002_v52 = vcombine.low %v4011_v14, %v4017_v23  ;;  %v4265_v58 = vsel %vm4040_vm7, %v3017_v43, %v839_v15  ;;  %v789_v14 = vld [vmem:[%s3846_s24] sm:$0xe]  ;;  %v4293_v31 = vld [vmem:[%s3846_s24 + $0x1c] sm:$0xf] }
  0x63   : > { %3374 = vmatpush3.bf16.msra.mxu1 %v923_v13  ;;  %3361 = vmatprep.mubr.msk.bf16.mxu1 %vm499_vm3, %v3000_v9  ;;  %v3025_v29 = vcombine.low %v4246_v46, %v4255_v50  ;;  %v841_v11 = vrot.slane %v839_v15, 4  ;;  %v818_v61 = vrot.slane %v3852_v7, 5  ;;  %v3019_v10 = vrot.slane %v794_v19, 9  ;;  %v795_v1 = vld [vmem:[%s3846_s24 + $0x48] sm:$0xe] }
  0x64   : > { %3632 = vmatprep.subr.msk.bf16.mxu1 %vm524_vm0, %v4220_v6  ;;  %v4271_v2 = vsel %vm4040_vm7, %v3018_v38, %v846_v53  ;;  %v848_v39 = vrot.slane %v846_v53, 4  ;;  %v821_v41 = vrot.slane %v3855_v8, 5  ;;  %v3014_v36 = vrot.slane %v789_v14, 9  ;;  %v4319_v38 = vld [vmem:[%s4872_s1 + $0x10] sm:$0x3] }
  0x65   : > { %v4277_v23 = vsel %vm4040_vm7, %v841_v11, %v842_v48  ;;  %v820_v44 = vrot.slane %v818_v61, 4  ;;  %v853_v20 = vrot.slane %v4045_v4, 5  ;;  %v856_v21 = vrot.slane %v4048_v18, 5  ;;  %v4340_v14 = vld [vmem:[%s3846_s24 + $0x28] sm:$0xf] }
  0x66   : > { %v4286_v9 = vsel %vm4040_vm7, %v848_v39, %v849_v63  ;;  %v3003_v22 = vcombine.low %v4034_v56, %v4045_v4  ;;  %v2097_v24 = vshrl.u32 %v3179_v26, 16  ;;  %v2100_v8 = vshll.u32 %v3179_v26, 16  ;;  %v3691_v4 = vld [vmem:[%s3846_s24 + $0x30] sm:$0xff]   ;;  %v4442_v46 = vld [vmem:[%s3846_s24 + $0x44] sm:$0x1] }
  0x67   : > { %v2106_v40 = vshll.u32 %v4293_v31, 16  ;;  %v2110_v43 = vshrl.u32 %v4293_v31, 16  ;;  %v4305_v47 = vsel %vm4040_vm7, %v3019_v10, %v853_v20  ;;  %v2339_v18 = vsel %vm524_vm0, %v4108_v34, 0  ;;  %v3197_v7 = vld [vmem:[%s3846_s24 + $0x60] sm:$0xf] }
  0x68   : > { %3442 = vmatmul.mubr.msk.bf16.gmra.mrb[12].mxu0 %vm499_vm3, %v3137_v49  ;;  %v855_v49 = vrot.slane %v853_v20, 4  ;;  %v3004_v56 = vcombine.low %v4059_v30, %v4075_v62  ;;  %v819_v15 = vsel %vm4040_vm7, %v3014_v36, %v818_v61  ;;  %v822_v48 = vsel %vm4040_vm7, %v820_v44, %v821_v41  ;;  %v4327_v30 = vld [vmem:[%s3846_s24 + $0x20] sm:$0x1]  ;;  %v3182_v61 = vld [vmem:[%s3846_s24 + $0x24] sm:$0xf] }
  0x69   : > { %3447 = vmatprep.mubr.msk.bf16.mxu0 %vm499_vm3, %v3687_v16  ;;  %v3020_v34 = vrot.slane %v795_v1, 9  ;;  %v2099_v16 = vrot.slane %v2097_v24, 4  ;;  %v2102_v53 = vrot.slane %v2100_v8, 5  ;;  %v4333_v11 = vrot.slane %v2106_v40, 5  ;;  %v796_v44 = vld [vmem:[%s3846_s24 + $0x54] sm:$0xe] }
  0x6a   : > { %3362 = vmatmul.mubr.msk.bf16.gmra.mrb[4].mxu1 %vm499_vm3, %v3001_v51  ;;  %v4323_v51 = vsel %vm4040_vm7, %v855_v49, %v856_v21  ;;  %v2112_v19 = vrot.slane %v2110_v43, 4  ;;  %v863_v39 = vrot.slane %v4079_v55, 5  ;;  %v3005_v10 = vcombine.low %v4097_v28, %v4113_v37  ;;  %v3185_v55 = vld [vmem:[%s3846_s24 + $0x30] sm:$0xf]  ;;  %v3693_v20 = vld [vmem:[%s3846_s24 + $0x3c] sm:$0xff]   ;;  %v3694_v1 = vld [vmem:[%s3846_s24 + $0x48] sm:$0xff]  }
  0x6b   : > { %3365 = vmatprep.mubr.msk.bf16.mxu1 %vm499_vm3, %v3002_v52  ;;  %v860_v52 = vrot.slane %v4075_v62, 5  ;;  %v3023_v41 = vcombine.low %v819_v15, %v822_v48  ;;  %v2116_v36 = vshll.u32 %v4327_v30, 16  ;;  %v2103_v21 = vor.u32 %v2102_v53, %v2099_v16  ;;  %v4359_v8 = vld [vmem:[%s3846_s24 + $0x34] sm:$0xf] }
  0x6c   : > { %v2113_v28 = vor.u32 %v2112_v19, %v4333_v11  ;;  %v2130_v40 = vshll.u32 %v4340_v14, 16  ;;  %v2134_v43 = vshrl.u32 %v4340_v14, 16  ;;  %v867_v15 = vrot.slane %v4113_v37, 5 }
  0x6d   : > { %v4344_v62 = vsel %vm4040_vm7, %v3020_v34, %v860_v52  ;;  %v862_v26 = vrot.slane %v860_v52, 4  ;;  %v2154_v48 = vshll.u32 %v4359_v8, 16  ;;  %v2158_v34 = vshrl.u32 %v4359_v8, 16 }
  0x6e   : > { %v870_v16 = vrot.slane %v4122_v54, 5  ;;  %v2104_v53 = vrot.slane %v2103_v21, 4  ;;  %v2118_v52 = vrot.slane %v2116_v36, 5  ;;  %v2114_v37 = vrot.slane %v2113_v28, 4  ;;  %v4382_v36 = vld [vmem:[%s3846_s24 + $0x2c] sm:$0x1] }
  0x6f   : > { %v4356_v24 = vsel %vm4040_vm7, %v862_v26, %v863_v39  ;;  %v4378_v26 = vrot.slane %v2130_v40, 5  ;;  %v4389_v21 = vld [vmem:[%s3846_s24 + $0x38] sm:$0x1]  ;;  %v1122_v28 = vsel %vm524_vm0, %v4220_v6, 0 }
  0x70   : > { %3448 = vmatmul.mubr.msk.bf16.vlgmr.msra.gmra.mrb[0].mxu0 %vm499_vm3, %v3689_v57  ;;  %v2124_v57 = vshll.u32 %v3182_v61, 16  ;;  %v3695_v40 = vld [vmem:[%s3846_s24 + $0x54] sm:$0xff]  }
  0x71   : > { %3464 = vmatpush3.bf16.msra.mxu0 %v2339_v18  ;;  %3451 = vmatprep.mubr.msk.bf16.mxu0 %vm499_vm3, %v3691_v4  ;;  %v2145_v18 = vshrl.u32 %v3185_v55, 16  ;;  %v3021_v4 = vrot.slane %v796_v44, 9 }
  0x72   : > { %3366 = vmatmul.mubr.msk.bf16.gmra.mrb[8].mxu1 %vm499_vm3, %v3003_v22  ;;  %3638 = vmatprep.subr.msk.bf16.mxu0 %vm524_vm0, %v4319_v38  ;;  %v2121_v22 = vshrl.u32 %v3182_v61, 16  ;;  %v869_v61 = vrot.slane %v867_v15, 4  ;;  %v2126_v54 = vrot.slane %v2124_v57, 5  ;;  %v2160_v57 = vrot.slane %v2158_v34, 4  ;;  %v3191_v34 = vld [vmem:[%s3846_s24 + $0x48] sm:$0xf] }
  0x73   : > { %3369 = vmatprep.mubr.msk.bf16.mxu1 %vm499_vm3, %v3004_v56  ;;  %v2148_v56 = vshll.u32 %v3185_v55, 16  ;;  %v4374_v19 = vsel %vm4040_vm7, %v3021_v4, %v867_v15  ;;  %v2136_v55 = vrot.slane %v2134_v43, 4  ;;  %v2147_v44 = vrot.slane %v2145_v18, 4  ;;  %v4400_v43 = vld [vmem:[%s3846_s24 + $0x40] sm:$0xf] }
  0x74   : > { %v2123_v39 = vrot.slane %v2121_v22, 4  ;;  %v4391_v22 = vrot.slane %v2154_v48, 5  ;;  %v3696_v18 = vld [vmem:[%s3846_s24 + $0x60] sm:$0xff]   ;;  %v2119_v4 = vsel %vm3885_vm4, %v2114_v37, %v2118_v52  ;;  %v2140_v48 = vshll.u32 %v4382_v36, 16 }
  0x75   : > { %v2193_v52 = vshrl.u32 %v3191_v34, 16  ;;  %v2196_v37 = vshll.u32 %v3191_v34, 16 }
  0x76   : > { %v2127_v15 = vor.u32 %v2126_v54, %v2123_v39  ;;  %v2161_v63 = vor.u32 %v2160_v57, %v4391_v22  ;;  %v3194_v57 = vld [vmem:[%s3846_s24 + $0x54] sm:$0xf] }
  0x77   : > { %v2195_v50 = vrot.slane %v2193_v52, 4  ;;  %v2220_v34 = vshll.u32 %v3194_v57, 16 }
  0x78   : > { %3452 = vmatmul.mubr.msk.bf16.gmra.mrb[4].mxu0 %vm499_vm3, %v3693_v20  ;;  %v2150_v20 = vrot.slane %v2148_v56, 5  ;;  %v2109_v56 = vsel %vm3885_vm4, %v2104_v53, %v4333_v11  ;;  %v2178_v11 = vshll.u32 %v4400_v43, 16  ;;  %v2182_v53 = vshrl.u32 %v4400_v43, 16 }
  0x79   : > { %3455 = vmatprep.mubr.msk.bf16.mxu0 %vm499_vm3, %v3694_v1  ;;  %v2164_v1 = vshll.u32 %v4389_v21, 16  ;;  %v3204_v54 = vcombine.low %v2109_v56, %v2119_v4  ;;  %v2162_v56 = vrot.slane %v2161_v63, 4  ;;  %v4447_v63 = vld [vmem:[%s3846_s24 + $0x50] sm:$0x1] }
  0x7a   : > { %3370 = vmatmul.mubr.msk.bf16.gmra.mrb[12].mxu1 %vm499_vm3, %v3005_v10  ;;  %v4386_v10 = vsel %vm4040_vm7, %v869_v61, %v870_v16  ;;  %v4411_v16 = vld [vmem:[%s3846_s24 + $0x4c] sm:$0xf]  ;;  %v2137_v61 = vor.u32 %v2136_v55, %v4378_v26  ;;  %v2151_v6 = vor.u32 %v2150_v20, %v2147_v44  ;;  %v2128_v55 = vrot.slane %v2127_v15, 4 }
  0x7b   : > { %3375 = vmatprep.mubr.msk.bf16.mxu1 %vm499_vm3, %v3023_v41  ;;  %v3188_v41 = vld [vmem:[%s3846_s24 + $0x3c] sm:$0xf]  ;;  %v2202_v39 = vshll.u32 %v4411_v16, 16  ;;  %v2142_v44 = vrot.slane %v2140_v48, 5  ;;  %v2206_v20 = vshrl.u32 %v4411_v16, 16  ;;  %v2166_v33 = vrot.slane %v2164_v1, 5 }
  0x7c   : > { %v2169_v49 = vshrl.u32 %v3188_v41, 16  ;;  %v2172_v13 = vshll.u32 %v3188_v41, 16  ;;  %v2138_v41 = vrot.slane %v2137_v61, 4  ;;  %v4435_v15 = vrot.slane %v2178_v11, 5 }
  0x7d   : > { %v2184_v48 = vrot.slane %v2182_v53, 4  ;;  %v2217_v1 = vshrl.u32 %v3194_v57, 16  ;;  %v1391_v11 = vshll.u32 %v4161_v59, 16  ;;  %v2133_v53 = vsel %vm3885_vm4, %v2128_v55, %v4378_v26 }
  0x7e   : > { %v2171_v25 = vrot.slane %v2169_v49, 4  ;;  %v2174_v4 = vrot.slane %v2172_v13, 5  ;;  %v4444_v49 = vrot.slane %v2202_v39, 5  ;;  %v2208_v13 = vrot.slane %v2206_v20, 4 }
  0x7f   : > { %v2143_v52 = vsel %vm3885_vm4, %v2138_v41, %v2142_v44  ;;  %v2185_v57 = vor.u32 %v2184_v48, %v4435_v15  ;;  %v2167_v26 = vsel %vm3885_vm4, %v2162_v56, %v2166_v33  ;;  %v2219_v44 = vrot.slane %v2217_v1, 4  ;;  %v4485_v56 = vld [vmem:[%s3846_s24 + $0x5c] sm:$0x1] }
  0x80   : > { %3456 = vmatmul.mubr.msk.bf16.gmra.mrb[8].mxu0 %vm499_vm3, %v3695_v40  ;;  %v2152_v40 = vrot.slane %v2151_v6, 4  ;;  %v2175_v20 = vor.u32 %v2174_v4, %v2171_v25  ;;  %v2209_v41 = vor.u32 %v2208_v13, %v4444_v49  ;;  %v4890_v33 = vcombine.low %v4271_v2, %v4286_v9 }
  0x81   : > { %3459 = vmatprep.mubr.msk.bf16.mxu0 %vm499_vm3, %v3696_v18  ;;  %v3697_v18 = vld [vmem:[%s3846_s24 + $0x6c] sm:$0xff]   ;;  %v2241_v4 = vshrl.u32 %v3197_v7, 16  ;;  %v1395_v48 = vshrl.u32 %v4161_v59, 16  ;;  %v3205_v13 = vcombine.low %v2133_v53, %v2143_v52 }
  0x82   : > { %3376 = vmatmul.mubr.msk.bf16.vlgmr.msra.gmra.mrb[0].mxu1 %vm499_vm3, %v3024_v27  ;;  %v4432_v27 = vld [vmem:[%s3846_s24 + $0x58] sm:$0xf]  ;;  %v2157_v39 = vsel %vm3885_vm4, %v2152_v40, %v4391_v22  ;;  %v4889_v22 = vcombine.low %v4265_v58, %v4277_v23  ;;  %v2222_v40 = vrot.slane %v2220_v34, 5  ;;  %v2244_v58 = vshll.u32 %v3197_v7, 16 }
  0x83   : > { %3392 = vmatpush3.bf16.msra.mxu1 %v1122_v28  ;;  %3379 = vmatprep.mubr.msk.bf16.mxu1 %vm499_vm3, %v3025_v29  ;;  %v3706_v28 = vld [vmem:[%s4872_s1 + $0x8] sm:$0x3]  ;;  %v2198_v29 = vrot.slane %v2196_v37, 5  ;;  %v2226_v61 = vshll.u32 %v4432_v27, 16  ;;  %v2230_v6 = vshrl.u32 %v4432_v27, 16  ;;  %v2593_v37 = vsel %vm524_vm0, %v4319_v38, 0 }
  0x84   : > { %3634 = vmatprep.subr.msk.bf16.mxu1 %vm524_vm0, %v3706_v28  ;;  %v2188_v28 = vshll.u32 %v4442_v46, 16  ;;  %v2212_v38 = vshll.u32 %v4447_v63, 16  ;;  %v2250_v23 = vshll.u32 %v4466_v60, 16  ;;  %v3206_v34 = vcombine.low %v2157_v39, %v2167_v26 }
  0x85   : > { %v2199_v55 = vor.u32 %v2198_v29, %v2195_v50  ;;  %v4478_v25 = vrot.slane %v2226_v61, 5  ;;  %v2176_v50 = vrot.slane %v2175_v20, 4  ;;  %v2186_v29 = vrot.slane %v2185_v57, 4 }
  0x86   : > { %v2190_v1 = vrot.slane %v2188_v28, 5  ;;  %v2214_v9 = vrot.slane %v2212_v38, 5  ;;  %v2210_v61 = vrot.slane %v2209_v41, 4  ;;  %v2236_v7 = vshll.u32 %v4485_v56, 16  ;;  %v4506_v28 = vld [vmem:[%s3846_s24 + $0x68] sm:$0x1] }
  0x87   : > { %v2200_v2 = vrot.slane %v2199_v55, 4  ;;  %v2243_v35 = vrot.slane %v2241_v4, 4  ;;  %v4496_v59 = vrot.slane %v2250_v23, 5  ;;  %v4498_v57 = vrot.slane %v1391_v11, 5 }
  0x88   : > { %3460 = vmatmul.mubr.msk.bf16.gmra.mrb[12].mxu0 %vm499_vm3, %v3697_v18  ;;  %v2232_v18 = vrot.slane %v2230_v6, 4  ;;  %v2223_v6 = vor.u32 %v2222_v40, %v2219_v44  ;;  %v1397_v53 = vrot.slane %v1395_v48, 4  ;;  %v2181_v52 = vsel %vm3885_vm4, %v2176_v50, %v4435_v15 }
  0x89   : > { %3465 = vmatprep.mubr.msk.bf16.mxu0 %vm499_vm3, %v3204_v54  ;;  %v2254_v54 = vshrl.u32 %v4466_v60, 16  ;;  %v2246_v60 = vrot.slane %v2244_v58, 5  ;;  %v2191_v39 = vsel %vm3885_vm4, %v2186_v29, %v2190_v1  ;;  %v2274_v38 = vshll.u32 %v4494_v12, 16  ;;  %v3698_v1 = vld [vmem:[%s3846_s24 + $0xc] sm:$0xff]  }
  0x8a   : > { %3380 = vmatmul.mubr.msk.bf16.gmra.mrb[4].mxu1 %vm499_vm3, %v4889_v22  ;;  %v2233_v22 = vor.u32 %v2232_v18, %v4478_v25  ;;  %v2278_v44 = vshrl.u32 %v4494_v12, 16  ;;  %v4891_v11 = vcombine.low %v4305_v47, %v4323_v51  ;;  %v2205_v15 = vsel %vm3885_vm4, %v2200_v2, %v4444_v49 }
  0x8b   : > { %3383 = vmatprep.mubr.msk.bf16.mxu1 %vm499_vm3, %v4890_v33  ;;  %v3200_v33 = vld [vmem:[%s3846_s24 + $0x6c] sm:$0xf]  ;;  %v2256_v20 = vrot.slane %v2254_v54, 4  ;;  %v2215_v41 = vsel %vm3885_vm4, %v2210_v61, %v2214_v9  ;;  %v2224_v40 = vrot.slane %v2223_v6, 4  ;;  %v2238_v18 = vrot.slane %v2236_v7, 5 }
  0x8c   : > { %v2265_v26 = vshrl.u32 %v3200_v33, 16  ;;  %v2268_v55 = vshll.u32 %v3200_v33, 16  ;;  %v4892_v4 = vcombine.low %v4344_v62, %v4356_v24  ;;  %v2234_v47 = vrot.slane %v2233_v22, 4  ;;  %v3087_v22 = vld [vmem:[%s3846_s24 + $0x48] sm:$0xf] }
  0x8d   : > { %v2247_v51 = vor.u32 %v2246_v60, %v2243_v35  ;;  %v2260_v49 = vshll.u32 %v4506_v28, 16  ;;  %v1398_v58 = vor.u32 %v1397_v53, %v4498_v57  ;;  %v1401_v23 = vshll.u32 %v4164_v0, 16  ;;  %v4535_v60 = vld [vmem:[%s3846_s24 + $0x74] sm:$0x1] }
  0x8e   : > { %v3207_v54 = vcombine.low %v2181_v52, %v2191_v39  ;;  %v2267_v48 = vrot.slane %v2265_v26, 4  ;;  %v2270_v62 = vrot.slane %v2268_v55, 5  ;;  %v4529_v24 = vrot.slane %v2274_v38, 5 }
  0x8f   : > { %v2280_v50 = vrot.slane %v2278_v44, 4  ;;  %v3208_v29 = vcombine.low %v2205_v15, %v2215_v41  ;;  %v2229_v35 = vsel %vm3885_vm4, %v2224_v40, %v4478_v25  ;;  %v2248_v0 = vrot.slane %v2247_v51, 4  ;;  %v3700_v51 = vld [vmem:[%s3846_s24 + $0x24] sm:$0xff]  }
  0x90   : > { %3466 = vmatmul.mubr.msk.bf16.vlgmr.msra.gmra.mrb[0].mxu0 %vm499_vm3, %v3205_v13  ;;  %v2239_v13 = vsel %vm3885_vm4, %v2234_v47, %v2238_v18  ;;  %v2262_v2 = vrot.slane %v2260_v49, 5  ;;  %v1399_v9 = vrot.slane %v1398_v58, 4  ;;  %v1403_v61 = vrot.slane %v1401_v23, 5 }
  0x91   : > { %3482 = vmatpush3.bf16.msra.mxu0 %v2593_v37  ;;  %3469 = vmatprep.mubr.msk.bf16.mxu0 %vm499_vm3, %v3206_v34  ;;  %v2257_v37 = vor.u32 %v2256_v20, %v4496_v59  ;;  %v2488_v6 = vrot.slane %v4293_v31, 5  ;;  %v2271_v7 = vor.u32 %v2270_v62, %v2267_v48  ;;  %v2281_v33 = vor.u32 %v2280_v50, %v4529_v24  ;;  %v3220_v20 = vld [vmem:[%s3846_s24 + $0x18] sm:$0xe]  ;;  %v3222_v62 = vld [vmem:[%s3846_s24 + $0x30] sm:$0xe] }
  0x92   : > { %3384 = vmatmul.mubr.msk.bf16.gmra.mrb[8].mxu1 %vm499_vm3, %v4891_v11  ;;  %v2284_v25 = vshll.u32 %v4535_v60, 16  ;;  %v4893_v53 = vcombine.low %v4374_v19, %v4386_v10  ;;  %v3209_v52 = vcombine.low %v2229_v35, %v2239_v13  ;;  %v2253_v31 = vsel %vm3885_vm4, %v2248_v0, %v4496_v59  ;;  %v3699_v59 = vld [vmem:[%s3846_s24 + $0x18] sm:$0xff]  }
  0x93   : > { %3387 = vmatprep.mubr.msk.bf16.mxu1 %vm499_vm3, %v4892_v4  ;;  %v2258_v34 = vrot.slane %v2257_v37, 4  ;;  %v1382_v26 = vshrl.u32 %v3087_v22, 16  ;;  %v1385_v55 = vshll.u32 %v3087_v22, 16  ;;  %v3228_v19 = vrot.slane %v3220_v20, 9  ;;  %v3084_v4 = vld [vmem:[%s3846_s24 + $0x3c] sm:$0xf] }
  0x94   : > { %v2490_v10 = vrot.slane %v2488_v6, 4  ;;  %v2491_v38 = vrot.slane %v4327_v30, 5  ;;  %v1404_v44 = vsel %vm3885_vm4, %v1399_v9, %v1403_v61  ;;  %v2272_v11 = vrot.slane %v2271_v7, 4  ;;  %v3221_v30 = vld [vmem:[%s3846_s24 + $0x24] sm:$0xe]  ;;  %v3701_v22 = vld [vmem:[%s3846_s24 + $0x30] sm:$0xff]  }
  0x95   : > { %v2263_v39 = vsel %vm3885_vm4, %v2258_v34, %v2262_v2  ;;  %v2282_v15 = vrot.slane %v2281_v33, 4  ;;  %v2286_v41 = vrot.slane %v2284_v25, 5  ;;  %v1384_v40 = vrot.slane %v1382_v26, 4  ;;  %v3702_v20 = vld [vmem:[%s3846_s24 + $0x3c] sm:$0xff]   ;;  %v3090_v26 = vld [vmem:[%s3846_s24 + $0x54] sm:$0xf] }
  0x96   : > { %v3210_v18 = vcombine.low %v2253_v31, %v2263_v39  ;;  %v1387_v47 = vrot.slane %v1385_v55, 5  ;;  %v2489_v37 = vsel %vm4040_vm7, %v3228_v19, %v2488_v6  ;;  %v2492_v49 = vsel %vm4040_vm7, %v2490_v10, %v2491_v38  ;;  %v3224_v38 = vld [vmem:[%s3846_s24 + $0x48] sm:$0xe] }
  0x97   : > { %v2495_v58 = vrot.slane %v4340_v14, 5  ;;  %v2287_v48 = vsel %vm3885_vm4, %v2282_v15, %v2286_v41  ;;  %v2502_v50 = vrot.slane %v4359_v8, 5  ;;  %v1361_v35 = vshll.u32 %v3084_v4, 16 }
  0x98   : > { %3470 = vmatmul.mubr.msk.bf16.gmra.mrb[4].mxu0 %vm499_vm3, %v3207_v54  ;;  %v1388_v23 = vor.u32 %v1387_v47, %v1384_v40  ;;  %v2277_v54 = vsel %vm3885_vm4, %v2272_v11, %v4529_v24  ;;  %v1367_v14 = vshll.u32 %v4143_v42, 16  ;;  %v3229_v24 = vrot.slane %v3221_v30, 9 }
  0x99   : > { %3473 = vmatprep.mubr.msk.bf16.mxu0 %vm499_vm3, %v3208_v29  ;;  %v1358_v29 = vshrl.u32 %v3084_v4, 16  ;;  %v2498_v8 = vrot.slane %v4382_v36, 5  ;;  %v3237_v0 = vcombine.low %v2489_v37, %v2492_v49  ;;  %v2497_v34 = vrot.slane %v2495_v58, 4  ;;  %v3703_v37 = vld [vmem:[%s3846_s24 + $0x48] sm:$0xff]  }
  0x9a   : > { %3388 = vmatmul.mubr.msk.bf16.gmra.mrb[12].mxu1 %vm499_vm3, %v4893_v53  ;;  %v1389_v13 = vrot.slane %v1388_v23, 4  ;;  %v3230_v2 = vrot.slane %v3222_v62, 9  ;;  %v3211_v61 = vcombine.low %v2277_v54, %v2287_v48  ;;  %v2504_v6 = vrot.slane %v2502_v50, 4  ;;  %v3704_v23 = vld [vmem:[%s3846_s24 + $0x54] sm:$0xff]  }
  0x9b   : > { %3393 = vmatprep.mubr.msk.bf16.mxu1 %vm499_vm3, %v3698_v1  ;;  %v1371_v1 = vshrl.u32 %v4143_v42, 16  ;;  %v2505_v42 = vrot.slane %v4389_v21, 5  ;;  %v1360_v7 = vrot.slane %v1358_v29, 4  ;;  %v1363_v33 = vrot.slane %v1361_v35, 5 }
  0x9c   : > { %v1394_v9 = vsel %vm3885_vm4, %v1389_v13, %v4498_v57  ;;  %v4591_v25 = vrot.slane %v1367_v14, 5  ;;  %v2496_v53 = vsel %vm4040_vm7, %v3229_v24, %v2495_v58  ;;  %v2499_v57 = vsel %vm4040_vm7, %v2497_v34, %v2498_v8  ;;  %v3225_v24 = vld [vmem:[%s3846_s24 + $0x54] sm:$0xe]  ;;  %v4894_v8 = vld [vmem:[#allocation5_spill] sm:$0xff] }
  0x9d   : > { %v1373_v36 = vrot.slane %v1371_v1, 4  ;;  %v2503_v21 = vsel %vm4040_vm7, %v3230_v2, %v2502_v50  ;;  %v2509_v31 = vrot.slane %v4400_v43, 5  ;;  %v1377_v39 = vshll.u32 %v4146_v45, 16  ;;  %v3093_v50 = vld [vmem:[%s3846_s24 + $0x60] sm:$0xf] }
  0x9e   : > { %v2506_v55 = vsel %vm4040_vm7, %v2504_v6, %v2505_v42  ;;  %v1364_v19 = vor.u32 %v1363_v33, %v1360_v7  ;;  %v3238_v43 = vcombine.low %v2496_v53, %v2499_v57  ;;  %v2512_v11 = vrot.slane %v4442_v46, 5  ;;  %v4896_v33 = vld [vmem:[#allocation2_spill] sm:$0xff] }
  0x9f   : > { %v1374_v10 = vor.u32 %v1373_v36, %v4591_v25  ;;  %v1406_v15 = vshrl.u32 %v3090_v26, 16  ;;  %v1409_v41 = vshll.u32 %v3090_v26, 16  ;;  %v1415_v40 = vshll.u32 %v4172_v17, 16 }
  0xa0   : > { %3474 = vmatmul.mubr.msk.bf16.gmra.mrb[8].mxu0 %vm499_vm3, %v3209_v52  ;;  %v3223_v52 = vld [vmem:[%s3846_s24 + $0x3c] sm:$0xe]  ;;  %v2511_v4 = vrot.slane %v2509_v31, 4  ;;  %v1379_v47 = vrot.slane %v1377_v39, 5  ;;  %v2519_v58 = vrot.slane %v4447_v63, 5  ;;  %v2523_v63 = vrot.slane %v4432_v27, 5 }
  0xa1   : > { %3477 = vmatprep.mubr.msk.bf16.mxu0 %vm499_vm3, %v3210_v18  ;;  %v3231_v45 = vrot.slane %v3223_v52, 9  ;;  %v3239_v18 = vcombine.low %v2503_v21, %v2506_v55  ;;  %v1375_v49 = vrot.slane %v1374_v10, 4  ;;  %v1408_v46 = vrot.slane %v1406_v15, 4  ;;  %v3226_v27 = vld [vmem:[%s3846_s24 + $0x60] sm:$0xe] }
  0xa2   : > { %3394 = vmatmul.mubr.msk.bf16.vlgmr.msra.gmra.mrb[0].mxu1 %vm499_vm3, %v3699_v59  ;;  %v1419_v59 = vshrl.u32 %v4172_v17, 16  ;;  %v1411_v54 = vrot.slane %v1409_v41, 5  ;;  %v1417_v48 = vrot.slane %v1415_v40, 5  ;;  %v2513_v29 = vsel %vm4040_vm7, %v2511_v4, %v2512_v11  ;;  %v3705_v52 = vld [vmem:[%s3846_s24 + $0x60] sm:$0xff]  }
  0xa3   : > { %3500 = vmatpush3.bf16.msra.mxu1 %v3815_v3  ;;  %3397 = vmatprep.mubr.msk.bf16.mxu1 %vm499_vm3, %v3700_v51  ;;  %v4588_v3 = vcombine.low %v1394_v9, %v1404_v44  ;;  %v2516_v44 = vrot.slane %v4411_v16, 5  ;;  %v3232_v51 = vrot.slane %v3224_v38, 9  ;;  %v1365_v16 = vrot.slane %v1364_v19, 4  ;;  %v4895_v9 = vld [vmem:[#allocation3_spill] sm:$0xff] }
  0xa4   : > { %v1421_v62 = vrot.slane %v1419_v59, 4  ;;  %v2510_v17 = vsel %vm4040_vm7, %v3231_v45, %v2509_v31  ;;  %v1380_v1 = vsel %vm3885_vm4, %v1375_v49, %v1379_v47  ;;  %v1430_v34 = vshrl.u32 %v3093_v50, 16  ;;  %v3227_v47 = vld [vmem:[%s3846_s24 + $0x6c] sm:$0xe] }
  0xa5   : > { %v2518_v30 = vrot.slane %v2516_v44, 4  ;;  %v2517_v35 = vsel %vm4040_vm7, %v3232_v51, %v2516_v44  ;;  %v1370_v14 = vsel %vm3885_vm4, %v1365_v16, %v4591_v25  ;;  %v1433_v2 = vshll.u32 %v3093_v50, 16 }
  0xa6   : > { %v1443_v6 = vshrl.u32 %v4895_v9, 16  ;;  %v3240_v42 = vcombine.low %v2510_v17, %v2513_v29  ;;  %v1422_v7 = vor.u32 %v1421_v62, %v1417_v48  ;;  %v1425_v25 = vshll.u32 %v4896_v33, 16 }
  0xa7   : > { %v2520_v13 = vsel %vm4040_vm7, %v2518_v30, %v2519_v58  ;;  %v2525_v53 = vrot.slane %v2523_v63, 4  ;;  %v2526_v57 = vrot.slane %v4485_v56, 5  ;;  %v3101_v21 = vcombine.low %v1370_v14, %v1380_v1 }
  0xa8   : > { %3478 = vmatmul.mubr.msk.bf16.gmra.mrb[12].mxu0 %vm499_vm3, %v3211_v61  ;;  %v1439_v61 = vshll.u32 %v4895_v9, 16  ;;  %v3241_v36 = vcombine.low %v2517_v35, %v2520_v13  ;;  %v3234_v31 = vrot.slane %v3226_v27, 9  ;;  %v2533_v26 = vrot.slane %v4506_v28, 5 }
  0xa9   : > { %3483 = vmatprep.mubr.msk.bf16.mxu0 %vm499_vm3, %v3237_v0  ;;  %v2530_v0 = vrot.slane %v4894_v8, 5  ;;  %v1432_v55 = vrot.slane %v1430_v34, 4  ;;  %v1435_v19 = vrot.slane %v1433_v2, 5  ;;  %v1445_v38 = vrot.slane %v1443_v6, 4 }
  0xaa   : > { %3398 = vmatmul.mubr.msk.bf16.gmra.mrb[4].mxu1 %vm499_vm3, %v3701_v22  ;;  %v1412_v22 = vor.u32 %v1411_v54, %v1408_v46  ;;  %v1441_v10 = vrot.slane %v1439_v61, 5  ;;  %v1427_v45 = vrot.slane %v1425_v25, 5  ;;  %v2527_v28 = vsel %vm4040_vm7, %v2525_v53, %v2526_v57 }
  0xab   : > { %3401 = vmatprep.mubr.msk.bf16.mxu1 %vm499_vm3, %v3702_v20  ;;  %v3233_v20 = vrot.slane %v3225_v24, 9  ;;  %v2532_v39 = vrot.slane %v2530_v0, 4  ;;  %v2531_v11 = vsel %vm4040_vm7, %v3234_v31, %v2530_v0  ;;  %v2537_v15 = vrot.slane %v4494_v12, 5 }
  0xac   : > { %v1413_v44 = vrot.slane %v1412_v22, 4  ;;  %v1436_v40 = vor.u32 %v1435_v19, %v1432_v55  ;;  %v1446_v59 = vor.u32 %v1445_v38, %v1441_v10  ;;  %v3235_v30 = vrot.slane %v3227_v47, 9 }
  0xad   : > { %v2524_v56 = vsel %vm4040_vm7, %v3233_v20, %v2523_v63  ;;  %v2534_v41 = vsel %vm4040_vm7, %v2532_v39, %v2533_v26  ;;  %v2539_v12 = vrot.slane %v2537_v15, 4  ;;  %v2540_v58 = vrot.slane %v4535_v60, 5 }
  0xae   : > { %v1418_v51 = vsel %vm3885_vm4, %v1413_v44, %v1417_v48  ;;  %v3242_v16 = vcombine.low %v2524_v56, %v2527_v28  ;;  %v3243_v49 = vcombine.low %v2531_v11, %v2534_v41  ;;  %v1437_v46 = vrot.slane %v1436_v40, 4 }
  0xaf   : > { %v1447_v54 = vrot.slane %v1446_v59, 4  ;;  %v2538_v48 = vsel %vm4040_vm7, %v3235_v30, %v2537_v15  ;;  %v2541_v50 = vsel %vm4040_vm7, %v2539_v12, %v2540_v58 }
  0xb0   : > { %3484 = vmatmul.mubr.msk.bf16.vlgmr.msra.gmra.mrb[0].mxu0 %vm499_vm3, %v3238_v43  ;;  %v1423_v43 = vrot.slane %v1422_v7, 4  ;;  %v1442_v60 = vsel %vm3885_vm4, %v1437_v46, %v1441_v10  ;;  %v3244_v29 = vcombine.low %v2538_v48, %v2541_v50 }
  0xb1   : > { %3487 = vmatprep.mubr.msk.bf16.mxu0 %vm499_vm3, %v3239_v18  ;;  %v4897_v18 = vld [vmem:[#allocation4_spill] sm:$0xff] }
  0xb2   : > { %3402 = vmatmul.mubr.msk.bf16.gmra.mrb[8].mxu1 %vm499_vm3, %v3703_v37  ;;  %v1449_v4 = vshll.u32 %v4897_v18, 16  ;;  %v1428_v37 = vsel %vm3885_vm4, %v1423_v43, %v1427_v45 }
  0xb3   : > { %3405 = vmatprep.mubr.msk.bf16.mxu1 %vm499_vm3, %v3704_v23  ;;  %v3103_v23 = vcombine.low %v1418_v51, %v1428_v37  ;;  %v3747_v37 = vmov (!%p3253_p8), 0.0  }
  0xb4   : > { %v1451_v62 = vrot.slane %v1449_v4, 5  ;;  %2730 = vst.msk [vmem:[%s3834_s8] sm:$0x1] (!%p3253_p8), %vm2729_vm9, %v3747_v37  ;;  %2731 = vst.msk [vmem:[%s3841_s12] sm:$0x1] (!%p3253_p8), %vm2729_vm9, %v3747_v37 }
  0xb6   : > { %v1452_v17 = vsel %vm3885_vm4, %v1447_v54, %v1451_v62 }
  0xb7   : > { %v3104_v35 = vcombine.low %v1442_v60, %v1452_v17 }
  0xb8   : > { %3488 = vmatmul.mubr.msk.bf16.gmra.mrb[4].mxu0 %vm499_vm3, %v3240_v42 }
  0xb9   : > { %3491 = vmatprep.mubr.msk.bf16.mxu0 %vm499_vm3, %v3241_v36 }
  0xba   : > { %3406 = vmatmul.mubr.msk.bf16.gmra.mrb[12].mxu1 %vm499_vm3, %v3705_v52 }
  0xbb   : > { %3419 = vmatprep.mubr.msk.bf16.mxu1 %vm499_vm3, %v3101_v21 }
  0xc0   : > { %3492 = vmatmul.mubr.msk.bf16.gmra.mrb[8].mxu0 %vm499_vm3, %v3242_v16 }
  0xc1   : > { %3495 = vmatprep.mubr.msk.bf16.mxu0 %vm499_vm3, %v3243_v49 }
  0xc2   : > { %3420 = vmatmul.mubr.msk.bf16.vlgmr.msra.gmra.mrb[8].mxu1 %vm499_vm3, %v4588_v3 }
  0xc3   : > { %3423 = vmatprep.mubr.msk.bf16.mxu1 %vm499_vm3, %v3103_v23 }
  0xc8   : > { %3496 = vmatmul.mubr.msk.bf16.gmra.mrb[12].mxu0 %vm499_vm3, %v3244_v29 }
  0xca   : > { %3424 = vmatmul.mubr.msk.bf16.gmra.mrb[12].mxu1 %vm499_vm3, %v3104_v35 }
 0x175   : > { %v3395_v3 = vpop.f32.mrb[0].mxu1 }
 0x176   : > { %v1158_v63 = vpop.f32.mrb[1].mxu1 }
 0x177   : > { %v3396_v5 = vpop.f32.mrb[2].mxu1 }
 0x178   : > { %v1161_v14 = vpop.f32.mrb[3].mxu1 }
 0x17d   : > { %v3399_v1 = vpop.f32.mrb[4].mxu1 }
 0x17e   : > { %v1174_v13 = vpop.f32.mrb[5].mxu1 }
 0x17f   : > { %v3400_v24 = vpop.f32.mrb[6].mxu1 }
 0x180   : > { %v1177_v32 = vpop.f32.mrb[7].mxu1 }
 0x183   : > { %v3485_v8 = vpop.f32.mrb[0].mxu0 }
 0x184   : > { %v4689_v0 = vadd.f32 %v3485_v8, %v3395_v3  ;;  %v2629_v27 = vpop.f32.mrb[1].mxu0 }
 0x185   : > { %v4691_v34 = vadd.f32 %v2629_v27, %v1158_v63  ;;  %v3486_v2 = vpop.f32.mrb[2].mxu0 }
 0x186   : > { %2711 = vst.msk [vmem:[%s4687_s26 + $0x10] sm:$0xff] %vm2708_vm8, %v4689_v0  ;;  %v4696_v9 = vadd.f32 %v3486_v2, %v3396_v5  ;;  %v2632_v61 = vpop.f32.mrb[3].mxu0 }
 0x187   : > { %2709 = vst.msk [vmem:[%s4687_s26] sm:$0xff] %vm2708_vm8, %v4691_v34  ;;  %v4701_v6 = vadd.f32 %v2632_v61, %v1161_v14 }
 0x188   : > { %2712 = vst.msk [vmem:[%s4687_s26 + $0x18] sm:$0xff] %vm2708_vm8, %v4696_v9 }
 0x189   : > { %2710 = vst.msk [vmem:[%s4687_s26 + $0x8] sm:$0xff] %vm2708_vm8, %v4701_v6 }
 0x18b   : > { %v3489_v42 = vpop.f32.mrb[4].mxu0 }
 0x18c   : > { %v4709_v22 = vadd.f32 %v3489_v42, %v3399_v1  ;;  %v2645_v7 = vpop.f32.mrb[5].mxu0 }
 0x18d   : > { %v4711_v33 = vadd.f32 %v2645_v7, %v1174_v13  ;;  %v3490_v25 = vpop.f32.mrb[6].mxu0 }
 0x18e   : > { %2715 = vst.msk [vmem:[%s4687_s26 + $0x30] sm:$0xff] %vm2708_vm8, %v4709_v22  ;;  %v4716_v36 = vadd.f32 %v3490_v25, %v3400_v24  ;;  %v2648_v20 = vpop.f32.mrb[7].mxu0 }
 0x18f   : > { %2713 = vst.msk [vmem:[%s4687_s26 + $0x20] sm:$0xff] %vm2708_vm8, %v4711_v33  ;;  %v4721_v53 = vadd.f32 %v2648_v20, %v1177_v32 }
 0x190   : > { %2716 = vst.msk [vmem:[%s4687_s26 + $0x38] sm:$0xff] %vm2708_vm8, %v4716_v36 }
 0x191   : > { %2714 = vst.msk [vmem:[%s4687_s26 + $0x28] sm:$0xff] %vm2708_vm8, %v4721_v53 }
 0x193   : > { %v3493_v57 = vpop.f32.mrb[8].mxu0 }
 0x194   : > { %v2661_v21 = vpop.f32.mrb[9].mxu0 }
 0x195   : > { %v3421_v52 = vpop.f32.mrb[8].mxu1  ;;  %v3494_v26 = vpop.f32.mrb[10].mxu0 }
 0x196   : > { %v4729_v31 = vadd.f32 %v3493_v57, %v3421_v52  ;;  %v1572_v39 = vpop.f32.mrb[9].mxu1  ;;  %v2664_v10 = vpop.f32.mrb[11].mxu0 }
 0x197   : > { %v4731_v55 = vadd.f32 %v2661_v21, %v1572_v39  ;;  %v3422_v19 = vpop.f32.mrb[10].mxu1 }
 0x198   : > { %2719 = vst.msk [vmem:[%s4687_s26 + $0x50] sm:$0xff] %vm2708_vm8, %v4729_v31  ;;  %v4736_v38 = vadd.f32 %v3494_v26, %v3422_v19  ;;  %v1575_v44 = vpop.f32.mrb[11].mxu1 }
 0x199   : > { %2717 = vst.msk [vmem:[%s4687_s26 + $0x40] sm:$0xff] %vm2708_vm8, %v4731_v55  ;;  %v4741_v43 = vadd.f32 %v2664_v10, %v1575_v44 }
 0x19a   : > { %2720 = vst.msk [vmem:[%s4687_s26 + $0x58] sm:$0xff] %vm2708_vm8, %v4736_v38 }
 0x19b   : > { %2718 = vst.msk [vmem:[%s4687_s26 + $0x48] sm:$0xff] %vm2708_vm8, %v4741_v43  ;;  %v3497_v45 = vpop.f32.mrb[12].mxu0 }
 0x19c   : > { %v2677_v28 = vpop.f32.mrb[13].mxu0 }
 0x19d   : > { %v3425_v56 = vpop.f32.mrb[12].mxu1  ;;  %v3498_v41 = vpop.f32.mrb[14].mxu0  ;;  %2728 = sbr.rel (%p3253_p8) target bundleno = 420 (0x1a4), region = 32 }
 0x19e   : > { %v4749_v11 = vadd.f32 %v3497_v45, %v3425_v56  ;;  %v1588_v15 = vpop.f32.mrb[13].mxu1  ;;  %v2680_v18 = vpop.f32.mrb[15].mxu0 }
 0x19f   : > { %v4751_v40 = vadd.f32 %v2677_v28, %v1588_v15  ;;  %v3426_v59 = vpop.f32.mrb[14].mxu1 }
 0x1a0   : > { %2723 = vst.msk [vmem:[%s4687_s26 + $0x70] sm:$0xff] %vm2708_vm8, %v4749_v11  ;;  %v4756_v4 = vadd.f32 %v3498_v41, %v3426_v59  ;;  %v1591_v47 = vpop.f32.mrb[15].mxu1 }
 0x1a1   : > { %2721 = vst.msk [vmem:[%s4687_s26 + $0x60] sm:$0xff] %vm2708_vm8, %v4751_v40  ;;  %v4761_v51 = vadd.f32 %v2680_v18, %v1591_v47 }
 0x1a2   : > { %2724 = vst.msk [vmem:[%s4687_s26 + $0x78] sm:$0xff] %vm2708_vm8, %v4756_v4 }
 0x1a3   : > { %2722 = vst.msk [vmem:[%s4687_s26 + $0x68] sm:$0xff] %vm2708_vm8, %v4761_v51 }
 0x1a4 PF: > { %v2733_v16 = vsel %vm2708_vm8, %v4691_v34, 0.0  ;;  %v2734_v49 = vsel %vm2708_vm8, %v4701_v6, 0.0  ;;  %v2736_v30 = vsel %vm2708_vm8, %v4689_v0, 0.0  ;;  %v2738_v58 = vsel %vm2708_vm8, %v4696_v9, 0.0 }
 0x1a5   : > { %v2735_v12 = vadd.f32 %v2734_v49, %v2733_v16  ;;  %v2740_v46 = vsel %vm2708_vm8, %v4711_v33, 0.0  ;;  %v2774_v62 = vmul.f32 %v4691_v34, %v4691_v34  ;;  %v2775_v48 = vmul.f32 %v4701_v6, %v4701_v6 }
 0x1a6   : > { %v2742_v50 = vsel %vm2708_vm8, %v4721_v53, 0.0  ;;  %v2776_v60 = vmul.f32 %v4689_v0, %v4689_v0  ;;  %v2777_v29 = vmul.f32 %v4696_v9, %v4696_v9  ;;  %v2744_v35 = vsel %vm2708_vm8, %v4709_v22, 0.0 }
 0x1a7   : > { %v2737_v23 = vadd.f32 %v2736_v30, %v2735_v12  ;;  %v2778_v63 = vmul.f32 %v4711_v33, %v4711_v33  ;;  %v2790_v5 = vsel %vm2708_vm8, %v2774_v62, 0.0  ;;  %v2791_v14 = vsel %vm2708_vm8, %v2775_v48, 0.0 }
 0x1a8   : > { %v2746_v1 = vsel %vm2708_vm8, %v4716_v36, 0.0  ;;  %v2792_v13 = vadd.f32 %v2791_v14, %v2790_v5  ;;  %v2793_v24 = vsel %vm2708_vm8, %v2776_v60, 0.0  ;;  %v2779_v8 = vmul.f32 %v4721_v53, %v4721_v53 }
 0x1a9   : > { %v2739_v54 = vadd.f32 %v2738_v58, %v2737_v23  ;;  %v2795_v0 = vsel %vm2708_vm8, %v2777_v29, 0.0  ;;  %v2748_v27 = vsel %vm2708_vm8, %v4731_v55, 0.0  ;;  %v2780_v9 = vmul.f32 %v4709_v22, %v4709_v22 }
 0x1aa   : > { %v2794_v34 = vadd.f32 %v2793_v24, %v2792_v13  ;;  %v2797_v61 = vsel %vm2708_vm8, %v2778_v63, 0.0  ;;  %v2750_v6 = vsel %vm2708_vm8, %v4741_v43, 0.0  ;;  %v2781_v33 = vmul.f32 %v4716_v36, %v4716_v36  ;;  %v2732_v13 = vld [vmem:[%s3834_s8] sm:$0x1] }
 0x1ab   : > { %v2741_v17 = vadd.f32 %v2740_v46, %v2739_v54  ;;  %v2799_v25 = vsel %vm2708_vm8, %v2779_v8, 0.0  ;;  %v2752_v20 = vsel %vm2708_vm8, %v4729_v31, 0.0  ;;  %v2782_v22 = vmul.f32 %v4731_v55, %v4731_v55 }
 0x1ac   : > { %v2796_v42 = vadd.f32 %v2795_v0, %v2794_v34  ;;  %v2801_v52 = vsel %vm2708_vm8, %v2780_v9, 0.0  ;;  %v2754_v21 = vsel %vm2708_vm8, %v4736_v38, 0.0  ;;  %v2783_v36 = vmul.f32 %v4741_v43, %v4741_v43 }
 0x1ad   : > { %v2743_v3 = vadd.f32 %v2742_v50, %v2741_v17  ;;  %v2803_v19 = vsel %vm2708_vm8, %v2781_v33, 0.0  ;;  %v2756_v10 = vsel %vm2708_vm8, %v4751_v40, 0.0  ;;  %v2784_v55 = vmul.f32 %v4729_v31, %v4729_v31 }
 0x1ae   : > { %v2798_v53 = vadd.f32 %v2797_v61, %v2796_v42  ;;  %v2805_v56 = vsel %vm2708_vm8, %v2782_v22, 0.0  ;;  %v2758_v28 = vsel %vm2708_vm8, %v4761_v51, 0.0  ;;  %v2785_v43 = vmul.f32 %v4736_v38, %v4736_v38 }
 0x1af   : > { %v2745_v32 = vadd.f32 %v2744_v35, %v2743_v3  ;;  %v2807_v59 = vsel %vm2708_vm8, %v2783_v36, 0.0  ;;  %v2760_v18 = vsel %vm2708_vm8, %v4749_v11, 0.0  ;;  %v2786_v31 = vmul.f32 %v4751_v40, %v4751_v40 }
 0x1b0   : > { %v2800_v39 = vadd.f32 %v2799_v25, %v2798_v53  ;;  %v2809_v16 = vsel %vm2708_vm8, %v2784_v55, 0.0  ;;  %v2762_v49 = vsel %vm2708_vm8, %v4756_v4, 0.0  ;;  %v2787_v38 = vmul.f32 %v4761_v51, %v4761_v51 }
 0x1b1   : > { %v2747_v2 = vadd.f32 %v2746_v1, %v2745_v32  ;;  %v2811_v58 = vsel %vm2708_vm8, %v2785_v43, 0.0  ;;  %v2788_v54 = vmul.f32 %v4749_v11, %v4749_v11  ;;  %v2813_v40 = vsel %vm2708_vm8, %v2786_v31, 0.0 }
 0x1b2   : > { %v2802_v44 = vadd.f32 %v2801_v52, %v2800_v39  ;;  %v2789_v50 = vmul.f32 %v4756_v4, %v4756_v4  ;;  %v2815_v60 = vsel %vm2708_vm8, %v2787_v38, 0.0  ;;  %vm2771_vm10 = vcmask 57344  }
 0x1b3   : > { %v2749_v7 = vadd.f32 %v2748_v27, %v2747_v2  ;;  %v2817_v51 = vsel %vm2708_vm8, %v2788_v54, 0.0  ;;  %v2773_v2 = vld [vmem:[%s3841_s12] sm:$0x1] }
 0x1b4   : > { %v2804_v15 = vadd.f32 %v2803_v19, %v2802_v44  ;;  %v2819_v11 = vsel %vm2708_vm8, %v2789_v50, 0.0 }
 0x1b5   : > { %v2751_v57 = vadd.f32 %v2750_v6, %v2749_v7 }
 0x1b6   : > { %v2806_v47 = vadd.f32 %v2805_v56, %v2804_v15 }
 0x1b7   : > { %v2753_v26 = vadd.f32 %v2752_v20, %v2751_v57 }
 0x1b8   : > { %v2808_v30 = vadd.f32 %v2807_v59, %v2806_v47 }
 0x1b9   : > { %v2755_v45 = vadd.f32 %v2754_v21, %v2753_v26 }
 0x1ba   : > { %v2810_v23 = vadd.f32 %v2809_v16, %v2808_v30 }
 0x1bb   : > { %v2757_v41 = vadd.f32 %v2756_v10, %v2755_v45 }
 0x1bc   : > { %v2812_v62 = vadd.f32 %v2811_v58, %v2810_v23 }
 0x1bd   : > { %v2759_v37 = vadd.f32 %v2758_v28, %v2757_v41 }
 0x1be   : > { %v2814_v17 = vadd.f32 %v2813_v40, %v2812_v62 }
 0x1bf   : > { %v2761_v12 = vadd.f32 %v2760_v18, %v2759_v37 }
 0x1c0   : > { %v2816_v35 = vadd.f32 %v2815_v60, %v2814_v17 }
 0x1c1   : > { %v2763_v46 = vadd.f32 %v2762_v49, %v2761_v12 }
 0x1c2   : > { %v2818_v63 = vadd.f32 %v2817_v51, %v2816_v35 }
 0x1c3   : > { %v2764_v48 = vrot.slane %v2763_v46, 4 }
 0x1c4   : > { %v2820_v14 = vadd.f32 %v2819_v11, %v2818_v63 }
 0x1c5   : > { %v2765_v29 = vadd.f32 %v2764_v48, %v2763_v46 }
 0x1c6   : > { %v2821_v24 = vrot.slane %v2820_v14, 4 }
 0x1c7   : > { %v2766_v3 = vrot.slane %v2765_v29, 2 }
 0x1c8   : > { %v2822_v32 = vadd.f32 %v2821_v24, %v2820_v14 }
 0x1c9   : > { %v2767_v5 = vadd.f32 %v2766_v3, %v2765_v29 }
 0x1ca   : > { %v2823_v0 = vrot.slane %v2822_v32, 2 }
 0x1cb   : > { %v2768_v1 = vrot.slane %v2767_v5, 1 }
 0x1cc   : > { %v2824_v27 = vadd.f32 %v2823_v0, %v2822_v32 }
 0x1cd   : > { %v2769_v4 = vadd.f32 %v2768_v1, %v2767_v5 }
 0x1ce   : > { %v2825_v34 = vrot.slane %v2824_v27, 1 }
 0x1cf   : > { %v2770_v8 = vadd.f32 %v2769_v4, %v2732_v13 }
 0x1d0   : > { %v2826_v9 = vadd.f32 %v2825_v34, %v2824_v27 }
 0x1d1   : > { %2772 = vst.msk [vmem:[%s3834_s8] sm:$0x1] %vm2771_vm10, %v2770_v8 }
 0x1d2   : > { %v2827_v61 = vadd.f32 %v2826_v9, %v2773_v2 }
 0x1d4   : > { %2828 = vst.msk [vmem:[%s3841_s12] sm:$0x1] %vm2771_vm10, %v2827_v61 }
 0x1d5 PF: > { %s15_s19 = sadd.s32 1, %s3745_s19   ;;  %s4898_s15 = smov %s3737_s17 }
 0x1d6   : > { %p12_p9 = scmp.ge.s32.totalorder %s15_s19, 6   ;;  %s4899_s16 = smov %s3741_s18 }
 0x1d7   : > { %s4900_s17 = smov %s4903_s20  ;;  %s4901_s18 = smov %s4907_s21 }
 0x1d8   :  { %14 = sbr.rel (!%p12_p9) target bundleno = 3 (0x3), region = 96 }

// kernel: residual_block_forward.8
= control target key start
LH: loop header
LB: loop body
LE: loop exit
PB: predicated region body
PF: predicated region fallthrough
CT: control target
= control target key end

     0   :  { %s1483_s30 = smov 0   ;;  %s1485_s10 = smov 0   ;;  %s1835_s0 = inlined_call_operand.vmem [shape: f32[2,256,8], index: 0, kind: input, shape index: {}]   ;;  %s1836_s1 = inlined_call_operand.vmem [shape: f32[2,1,8], index: 1, kind: input, shape index: {}]   ;;  %s1837_s2 = inlined_call_operand.vmem [shape: f32[2,1,8], index: 2, kind: input, shape index: {}]   ;;  %s1838_s3 = inlined_call_operand.vmem [shape: bf16[2,256,4], index: 3, kind: input, shape index: {}]   ;;  %s1839_s4 = inlined_call_operand.vmem [shape: bf16[8,8], index: 4, kind: input, shape index: {}]   ;;  %s1840_s5 = inlined_call_operand.vmem [shape: bf16[4,8], index: 5, kind: input, shape index: {}]   ;;  %s1841_s6 = inlined_call_operand.vmem [shape: f32[2,256,8], index: 6, kind: output, shape index: {0}]   ;;  %s1842_s7 = inlined_call_operand.vmem [shape: f32[2,256,8], index: 7, kind: output, shape index: {1}]   ;;  %s1843_s8 = inlined_call_operand.vmem [shape: f32[2,1,8], index: 8, kind: output, shape index: {2}]   ;;  %s1844_s9 = inlined_call_operand.vmem [shape: f32[2,1,8], index: 9, kind: output, shape index: {3}]  }
   0x1   :  { %1845 = sst [smem:[#allocation2_spill]] %s1839_s4  ;;  %s1487_s11 = smov 0  }
   0x2   :  { %s1489_s12 = smov 0   ;;  %s1491_s13 = smov 0  }
   0x3 LB: > { %s29_s14 = sadd.s32 1, %s1422_s11  ;;  %s32_s15 = sadd.s32 1, %s1426_s12  ;;  %s1430_s13 = sphi %s1491_s13, %s20_s13   ;;  %s1426_s12 = sphi %s1489_s12, %s1850_s12   ;;  %s1422_s11 = sphi %s1487_s11, %s1849_s11   ;;  %s1418_s10 = sphi %s1485_s10, %s1848_s10   ;;  %s1414_s30 = sphi %s1483_s30, %s1847_s30  }
   0x4   : > { %p30_p0 = scmp.ge.s32.totalorder %s29_s14, 2  ;;  %p1245_p1 = scmp.ge.s32.totalorder %s1430_s13, 1 }
   0x5   : > { %p350_p2 = scmp.lt.s32.totalorder %s1430_s13, 5 }
   0x6   : > { %s1852_s14 = smov (%p30_p0, %s29_s14), 0  ;;  %s1854_s15 = smov (!%p30_p0, %s32_s15), %s1426_s12 }
   0x7   : > { %p351_p3 = pnand %p1245_p1, %p350_p2  ;;  %p34_p4 = scmp.ge.s32.totalorder %s1854_s15, 2 }
   0x8   : > { %v712_v0 = vld [vmem:[%s1840_s5] sm:$0x3] (!%p351_p3)  ;;  %vm778_vm0 = vcmask (!%p351_p3), 1041408   ;;  %s1846_s4 = sld [smem:[#allocation2_spill]] (!%p351_p3)  ;;  %vm595_vm1 = vcmask (!%p351_p3), 1043456   ;;  %s1246_s20 = sshll.u32 (!%p351_p3), %s1414_s30, 4  ;;  %v500_v8 = vlaneseq (!%p351_p3) }
   0x9   : > { %s1856_s15 = smov (%p34_p4, %s1854_s15), 0  ;;  %354 = sbr.rel (%p351_p3) target bundleno = 336 (0x150), region = 44 }
   0xa   : > { %1340 = vmatprep.subr.msk.bf16.mxu1 (!%p351_p3), %vm778_vm0, %v712_v0  ;;  %v780_v2 = vsel (!%p351_p3), %vm778_vm0, %v712_v0, 0  ;;  %p425_p5 = scmp.lt.s32.totalorder (!%p351_p3), %s1418_s10, 1  ;;  %p427_p6 = scmp.lt.s32.totalorder (!%p351_p3), %s1246_s20, 31  ;;  %vm753_vm2 = vcmask (!%p351_p3), 31744   ;;  %v501_v13 = vshrl.u32 (!%p351_p3), %v500_v8, 7  ;;  %vm570_vm3 = vcmask (!%p351_p3), 64512  }
   0xb   : > { %1322 = vmatpush3.bf16.msra.mxu1 (!%p351_p3), %v780_v2  ;;  %p1282_p7 = scmp.ne.s32.totalorder (!%p351_p3), %s1414_s30, 0 }
   0xc   : > { %v502_v16 = vsub.s32 (!%p351_p3), 0, %v501_v13 }
   0xe   : > { %v569_v1 = vld [vmem:[%s1846_s4] sm:$0xf] (!%p351_p3) }
   0xf   : > { %1339 = vmatprep.subr.msk.bf16.mxu0 (!%p351_p3), %vm595_vm1, %v569_v1  ;;  %v597_v3 = vsel (!%p351_p3), %vm595_vm1, %v569_v1, 0 }
  0x10   : > { %1304 = vmatpush3.bf16.msra.mxu0 %v597_v3  ;;  %s1858_s10 = smov (!%p425_p5, %s1418_s10), 1  ;;  %s1860_s20 = smov (!%p427_p6, %s1246_s20), 31 }
  0x11   : > { %s1247_s21 = sshll.u32 %s1858_s10, 5  ;;  %s436_s24 = scalar_lea.vmem %s1836_s1, %s1858_s10  ;;  %vm915_vm4 = vcmask (!%p1282_p7), 57344  }
  0x12   : > { %s430_s25 = sadd.s32 %s1247_s21, %s1860_s20  ;;  %s439_s28 = scalar_lea.vmem %s1837_s2, %s1858_s10  ;;  %v477_v4 = vld [vmem:[%s436_s24] sm:$0x1] }
  0x13   : > { %s1251_s29 = sshll.u32 %s430_s25, 2  ;;  %v478_v5 = vmul.f32 0.00390625, %v477_v4  ;;  %v479_v6 = vld [vmem:[%s439_s28] sm:$0x1]  ;;  %s1536_s20 = scalar_lea.vmem %s1843_s8, %s1858_s10 }
  0x14   : > { %s1531_s18 = scalar_lea.vmem %s1838_s3, %s1251_s29  ;;  %v480_v7 = vmul.f32 0.00390625, %v479_v6  ;;  %s1541_s23 = scalar_lea.vmem %s1844_s9, %s1858_s10 }
  0x15   : > { %v481_v9 = vmul.f32 %v478_v5, %v478_v5  ;;  %v1382_v10 = vld [vmem:[%s1531_s18] sm:$0xff]   ;;  %v1383_v11 = vld [vmem:[%s1531_s18 + $0x8] sm:$0xff]   ;;  %v1384_v15 = vld [vmem:[%s1531_s18 + $0x10] sm:$0xff]   ;;  %s1548_s4 = sshll.u32 %s430_s25, 3  ;;  %v1559_v19 = vrot.slane %v478_v5, %v502_v16 }
  0x16   : > { %1323 = vmatprep.mubr.msk.bf16.mxu1 %vm753_vm2, %v1382_v10  ;;  %v1385_v17 = vld [vmem:[%s1531_s18 + $0x18] sm:$0xff]   ;;  %s1556_s26 = scalar_lea.vmem %s1835_s0, %s1548_s4  ;;  %v1386_v18 = vld [vmem:[%s1531_s18 + $0x20] sm:$0xff]   ;;  %v1387_v32 = vld [vmem:[%s1531_s18 + $0x28] sm:$0xff]   ;;  %s1613_s28 = scalar_lea.vmem %s1842_s7, %s1548_s4 }
  0x17   : > { %v482_v12 = vsub.f32 %v480_v7, %v481_v9  ;;  %1324 = vmatmul.mubr.msk.bf16.vlgmr.msra.gmra.mrb[0].mxu1 %vm753_vm2, %v1383_v11  ;;  %v483_v20 = vld [vmem:[%s1556_s26] sm:$0xff]  ;;  %v484_v21 = vld [vmem:[%s1556_s26 + $0x8] sm:$0xff]  ;;  %v485_v22 = vld [vmem:[%s1556_s26 + $0x10] sm:$0xff]  ;;  %s1679_s17 = scalar_lea.vmem %s1841_s6, %s1548_s4 }
  0x18   : > { %1327 = vmatprep.mubr.msk.bf16.mxu1 %vm753_vm2, %v1384_v15  ;;  %v486_v23 = vld [vmem:[%s1556_s26 + $0x18] sm:$0xff]  ;;  %v487_v24 = vld [vmem:[%s1556_s26 + $0x20] sm:$0xff]  ;;  %v488_v25 = vld [vmem:[%s1556_s26 + $0x28] sm:$0xff]  ;;  %v505_v28 = vsub.f32 %v483_v20, %v1559_v19  ;;  %v506_v29 = vsub.f32 %v484_v21, %v1559_v19  ;;  %v507_v30 = vsub.f32 %v485_v22, %v1559_v19 }
  0x19   : > { %v521_v14 = vadd.f32 1e-05, %v482_v12  ;;  %v489_v26 = vld [vmem:[%s1556_s26 + $0x30] sm:$0xff]  ;;  %v490_v27 = vld [vmem:[%s1556_s26 + $0x38] sm:$0xff]  ;;  %v508_v31 = vsub.f32 %v486_v23, %v1559_v19  ;;  %v491_v33 = vld [vmem:[%s1556_s26 + $0x40] sm:$0xff]  ;;  %v509_v36 = vsub.f32 %v487_v24, %v1559_v19  ;;  %v510_v37 = vsub.f32 %v488_v25, %v1559_v19 }
  0x1a   : > { %v492_v34 = vld [vmem:[%s1556_s26 + $0x48] sm:$0xff]  ;;  %v1388_v38 = vld [vmem:[%s1531_s18 + $0x30] sm:$0xff]   ;;  %v511_v40 = vsub.f32 %v489_v26, %v1559_v19  ;;  %v512_v41 = vsub.f32 %v490_v27, %v1559_v19  ;;  %v513_v42 = vsub.f32 %v491_v33, %v1559_v19  ;;  %v494_v63 = vld [vmem:[%s1556_s26 + $0x58] sm:$0xff] }
  0x1b   : > { %1390 = vrsqrt.f32 %v521_v14  ;;  %v514_v43 = vsub.f32 %v492_v34, %v1559_v19  ;;  %v493_v62 = vld [vmem:[%s1556_s26 + $0x50] sm:$0xff]  ;;  %v1389_v0 = vld [vmem:[%s1531_s18 + $0x38] sm:$0xff]   ;;  %v495_v2 = vld [vmem:[%s1556_s26 + $0x60] sm:$0xff]  ;;  %v516_v7 = vsub.f32 %v494_v63, %v1559_v19 }
  0x1c   : > { %v496_v3 = vld [vmem:[%s1556_s26 + $0x68] sm:$0xff]  ;;  %v515_v6 = vsub.f32 %v493_v62, %v1559_v19  ;;  %v517_v10 = vsub.f32 %v495_v2, %v1559_v19  ;;  %v498_v20 = vld [vmem:[%s1556_s26 + $0x78] sm:$0xff] }
  0x1d   : > { %v518_v11 = vsub.f32 %v496_v3, %v1559_v19  ;;  %v520_v24 = vsub.f32 %v498_v20, %v1559_v19 }
  0x1f   : > { %1328 = vmatmul.mubr.msk.bf16.gmra.mrb[4].mxu1 %vm753_vm2, %v1385_v17 }
  0x20   : > { %1331 = vmatprep.mubr.msk.bf16.mxu1 %vm753_vm2, %v1386_v18  ;;  %v497_v18 = vld [vmem:[%s1556_s26 + $0x70] sm:$0xff] }
  0x21   : > { %v519_v23 = vsub.f32 %v497_v18, %v1559_v19 }
  0x25   : > { %v1391_v35 = vpop.eup %1390 }
  0x26   : > { %v527_v39 = vrot.slane %v1391_v35, %v502_v16 }
  0x27   : > { %1332 = vmatmul.mubr.msk.bf16.gmra.mrb[8].mxu1 %vm753_vm2, %v1387_v32 }
  0x28   : > { %v529_v44 = vmul.f32 %v527_v39, %v505_v28  ;;  %v530_v45 = vmul.f32 %v527_v39, %v506_v29  ;;  %v531_v46 = vmul.f32 %v527_v39, %v507_v30  ;;  %v532_v47 = vmul.f32 %v527_v39, %v508_v31  ;;  %1335 = vmatprep.mubr.msk.bf16.mxu1 %vm753_vm2, %v1388_v38 }
  0x29   : > { %v533_v48 = vmul.f32 %v527_v39, %v509_v36  ;;  %v534_v49 = vmul.f32 %v527_v39, %v510_v37  ;;  %v535_v56 = vmul.f32 %v527_v39, %v511_v40  ;;  %v536_v57 = vmul.f32 %v527_v39, %v512_v41 }
  0x2a   : > { %v545_v50 = vmax.f32 %v529_v44, 0.0  ;;  %v546_v51 = vmax.f32 %v530_v45, 0.0  ;;  %v547_v52 = vmax.f32 %v531_v46, 0.0  ;;  %v548_v53 = vmax.f32 %v532_v47, 0.0 }
  0x2b   : > { %v549_v54 = vmax.f32 %v533_v48, 0.0  ;;  %v550_v55 = vmax.f32 %v534_v49, 0.0  ;;  %v537_v60 = vmul.f32 %v527_v39, %v513_v42  ;;  %v538_v61 = vmul.f32 %v527_v39, %v514_v43 }
  0x2c   : > { %v561_v58 = vpack.c.bf16 %v546_v51, %v545_v50  ;;  %v562_v59 = vpack.c.bf16 %v548_v53, %v547_v52  ;;  %v551_v4 = vmax.f32 %v535_v56, 0.0  ;;  %v552_v5 = vmax.f32 %v536_v57, 0.0 }
  0x2d   : > { %v563_v1 = vpack.c.bf16 %v550_v55, %v549_v54  ;;  %v553_v8 = vmax.f32 %v537_v60, 0.0  ;;  %v554_v9 = vmax.f32 %v538_v61, 0.0  ;;  %v539_v13 = vmul.f32 %v527_v39, %v515_v6 }
  0x2e   : > { %1305 = vmatprep.mubr.msk.bf16.mxu0 %vm570_vm3, %v561_v58  ;;  %v564_v12 = vpack.c.bf16 %v552_v5, %v551_v4  ;;  %v540_v14 = vmul.f32 %v527_v39, %v516_v7  ;;  %v541_v16 = vmul.f32 %v527_v39, %v517_v10  ;;  %v542_v17 = vmul.f32 %v527_v39, %v518_v11 }
  0x2f   : > { %1306 = vmatmul.mubr.msk.bf16.vlgmr.msra.gmra.mrb[0].mxu0 %vm570_vm3, %v562_v59  ;;  %1336 = vmatmul.mubr.msk.bf16.gmra.mrb[12].mxu1 %vm753_vm2, %v1389_v0  ;;  %v565_v15 = vpack.c.bf16 %v554_v9, %v553_v8  ;;  %v555_v21 = vmax.f32 %v539_v13, 0.0  ;;  %v543_v28 = vmul.f32 %v527_v39, %v519_v23  ;;  %v544_v29 = vmul.f32 %v527_v39, %v520_v24 }
  0x30   : > { %1309 = vmatprep.mubr.msk.bf16.mxu0 %vm570_vm3, %v563_v1  ;;  %v556_v22 = vmax.f32 %v540_v14, 0.0  ;;  %v557_v25 = vmax.f32 %v541_v16, 0.0  ;;  %v558_v26 = vmax.f32 %v542_v17, 0.0  ;;  %v1432_v1 = vmov (!%p1282_p7), 0.0  }
  0x31   : > { %v559_v31 = vmax.f32 %v543_v28, 0.0  ;;  %v560_v32 = vmax.f32 %v544_v29, 0.0  ;;  %916 = vst.msk [vmem:[%s1536_s20] sm:$0x1] (!%p1282_p7), %vm915_vm4, %v1432_v1  ;;  %917 = vst.msk [vmem:[%s1541_s23] sm:$0x1] (!%p1282_p7), %vm915_vm4, %v1432_v1 }
  0x32   : > { %v566_v27 = vpack.c.bf16 %v556_v22, %v555_v21  ;;  %v567_v30 = vpack.c.bf16 %v558_v26, %v557_v25 }
  0x33   : > { %v568_v33 = vpack.c.bf16 %v560_v32, %v559_v31 }
  0x37   : > { %1310 = vmatmul.mubr.msk.bf16.gmra.mrb[4].mxu0 %vm570_vm3, %v564_v12 }
  0x38   : > { %1313 = vmatprep.mubr.msk.bf16.mxu0 %vm570_vm3, %v565_v15 }
  0x3f   : > { %1314 = vmatmul.mubr.msk.bf16.gmra.mrb[8].mxu0 %vm570_vm3, %v566_v27 }
  0x40   : > { %1317 = vmatprep.mubr.msk.bf16.mxu0 %vm570_vm3, %v567_v30 }
  0x47   : > { %1318 = vmatmul.mubr.msk.bf16.gmra.mrb[12].mxu0 %vm570_vm3, %v568_v33 }
  0xea   : > { %v1615_v19 = vpop.f32.mrb[0].mxu1 }
  0xeb   : > { %897 = vst.msk [vmem:[%s1613_s28 + $0x10] sm:$0xff] %vm570_vm3, %v1615_v19  ;;  %v1620_v34 = vpop.f32.mrb[1].mxu1 }
  0xec   : > { %895 = vst.msk [vmem:[%s1613_s28] sm:$0xff] %vm570_vm3, %v1620_v34  ;;  %v1625_v35 = vpop.f32.mrb[2].mxu1 }
  0xed   : > { %898 = vst.msk [vmem:[%s1613_s28 + $0x18] sm:$0xff] %vm570_vm3, %v1625_v35  ;;  %v1630_v36 = vpop.f32.mrb[3].mxu1 }
  0xee   : > { %896 = vst.msk [vmem:[%s1613_s28 + $0x8] sm:$0xff] %vm570_vm3, %v1630_v36 }
  0xf2   : > { %v1635_v37 = vpop.f32.mrb[4].mxu1 }
  0xf3   : > { %901 = vst.msk [vmem:[%s1613_s28 + $0x30] sm:$0xff] %vm570_vm3, %v1635_v37  ;;  %v1640_v38 = vpop.f32.mrb[5].mxu1 }
  0xf4   : > { %899 = vst.msk [vmem:[%s1613_s28 + $0x20] sm:$0xff] %vm570_vm3, %v1640_v38  ;;  %v1645_v39 = vpop.f32.mrb[6].mxu1 }
  0xf5   : > { %902 = vst.msk [vmem:[%s1613_s28 + $0x38] sm:$0xff] %vm570_vm3, %v1645_v39  ;;  %v1650_v40 = vpop.f32.mrb[7].mxu1 }
  0xf6   : > { %900 = vst.msk [vmem:[%s1613_s28 + $0x28] sm:$0xff] %vm570_vm3, %v1650_v40 }
  0xfa   : > { %v1655_v41 = vpop.f32.mrb[8].mxu1 }
  0xfb   : > { %905 = vst.msk [vmem:[%s1613_s28 + $0x50] sm:$0xff] %vm570_vm3, %v1655_v41  ;;  %v1660_v42 = vpop.f32.mrb[9].mxu1 }
  0xfc   : > { %903 = vst.msk [vmem:[%s1613_s28 + $0x40] sm:$0xff] %vm570_vm3, %v1660_v42  ;;  %v1665_v43 = vpop.f32.mrb[10].mxu1 }
  0xfd   : > { %906 = vst.msk [vmem:[%s1613_s28 + $0x58] sm:$0xff] %vm570_vm3, %v1665_v43  ;;  %v1670_v44 = vpop.f32.mrb[11].mxu1 }
  0xfe   : > { %904 = vst.msk [vmem:[%s1613_s28 + $0x48] sm:$0xff] %vm570_vm3, %v1670_v44 }
 0x102   : > { %v1307_v45 = vpop.f32.mrb[0].mxu0  ;;  %v1683_v47 = vpop.f32.mrb[12].mxu1 }
 0x103   : > { %881 = vst.msk [vmem:[%s1679_s17 + $0x10] sm:$0xff] %vm570_vm3, %v1307_v45  ;;  %v633_v46 = vpop.f32.mrb[1].mxu0  ;;  %909 = vst.msk [vmem:[%s1613_s28 + $0x70] sm:$0xff] %vm570_vm3, %v1683_v47  ;;  %v1690_v49 = vpop.f32.mrb[13].mxu1 }
 0x104   : > { %879 = vst.msk [vmem:[%s1679_s17] sm:$0xff] %vm570_vm3, %v633_v46  ;;  %v1308_v48 = vpop.f32.mrb[2].mxu0  ;;  %907 = vst.msk [vmem:[%s1613_s28 + $0x60] sm:$0xff] %vm570_vm3, %v1690_v49  ;;  %v1697_v51 = vpop.f32.mrb[14].mxu1 }
 0x105   : > { %882 = vst.msk [vmem:[%s1679_s17 + $0x18] sm:$0xff] %vm570_vm3, %v1308_v48  ;;  %v636_v50 = vpop.f32.mrb[3].mxu0  ;;  %910 = vst.msk [vmem:[%s1613_s28 + $0x78] sm:$0xff] %vm570_vm3, %v1697_v51  ;;  %v1704_v52 = vpop.f32.mrb[15].mxu1 }
 0x106   : > { %880 = vst.msk [vmem:[%s1679_s17 + $0x8] sm:$0xff] %vm570_vm3, %v636_v50  ;;  %908 = vst.msk [vmem:[%s1613_s28 + $0x68] sm:$0xff] %vm570_vm3, %v1704_v52 }
 0x10a   : > { %v1311_v53 = vpop.f32.mrb[4].mxu0 }
 0x10b   : > { %885 = vst.msk [vmem:[%s1679_s17 + $0x30] sm:$0xff] %vm570_vm3, %v1311_v53  ;;  %v649_v54 = vpop.f32.mrb[5].mxu0 }
 0x10c   : > { %883 = vst.msk [vmem:[%s1679_s17 + $0x20] sm:$0xff] %vm570_vm3, %v649_v54  ;;  %v1312_v55 = vpop.f32.mrb[6].mxu0 }
 0x10d   : > { %886 = vst.msk [vmem:[%s1679_s17 + $0x38] sm:$0xff] %vm570_vm3, %v1312_v55  ;;  %v652_v56 = vpop.f32.mrb[7].mxu0 }
 0x10e   : > { %884 = vst.msk [vmem:[%s1679_s17 + $0x28] sm:$0xff] %vm570_vm3, %v652_v56 }
 0x112   : > { %v1315_v57 = vpop.f32.mrb[8].mxu0 }
 0x113   : > { %889 = vst.msk [vmem:[%s1679_s17 + $0x50] sm:$0xff] %vm570_vm3, %v1315_v57  ;;  %v665_v58 = vpop.f32.mrb[9].mxu0 }
 0x114   : > { %887 = vst.msk [vmem:[%s1679_s17 + $0x40] sm:$0xff] %vm570_vm3, %v665_v58  ;;  %v1316_v59 = vpop.f32.mrb[10].mxu0 }
 0x115   : > { %890 = vst.msk [vmem:[%s1679_s17 + $0x58] sm:$0xff] %vm570_vm3, %v1316_v59  ;;  %v668_v60 = vpop.f32.mrb[11].mxu0 }
 0x116   : > { %888 = vst.msk [vmem:[%s1679_s17 + $0x48] sm:$0xff] %vm570_vm3, %v668_v60 }
 0x118   : > { %914 = sbr.rel (%p1282_p7) target bundleno = 287 (0x11f), region = 48 }
 0x11a   : > { %v1319_v61 = vpop.f32.mrb[12].mxu0 }
 0x11b   : > { %893 = vst.msk [vmem:[%s1679_s17 + $0x70] sm:$0xff] %vm570_vm3, %v1319_v61  ;;  %v681_v62 = vpop.f32.mrb[13].mxu0 }
 0x11c   : > { %891 = vst.msk [vmem:[%s1679_s17 + $0x60] sm:$0xff] %vm570_vm3, %v681_v62  ;;  %v1320_v63 = vpop.f32.mrb[14].mxu0 }
 0x11d   : > { %894 = vst.msk [vmem:[%s1679_s17 + $0x78] sm:$0xff] %vm570_vm3, %v1320_v63  ;;  %v684_v0 = vpop.f32.mrb[15].mxu0 }
 0x11e   : > { %892 = vst.msk [vmem:[%s1679_s17 + $0x68] sm:$0xff] %vm570_vm3, %v684_v0 }
 0x11f PF: > { %v919_v2 = vsel %vm570_vm3, %v1620_v34, 0.0  ;;  %v920_v3 = vsel %vm570_vm3, %v1630_v36, 0.0  ;;  %v922_v4 = vsel %vm570_vm3, %v1615_v19, 0.0  ;;  %v924_v6 = vsel %vm570_vm3, %v1625_v35, 0.0 }
 0x120   : > { %v921_v5 = vadd.f32 %v920_v3, %v919_v2  ;;  %v926_v8 = vsel %vm570_vm3, %v1640_v38, 0.0  ;;  %v960_v10 = vmul.f32 %v1620_v34, %v1620_v34  ;;  %v961_v11 = vmul.f32 %v1630_v36, %v1630_v36 }
 0x121   : > { %v928_v12 = vsel %vm570_vm3, %v1650_v40, 0.0  ;;  %v962_v13 = vmul.f32 %v1615_v19, %v1615_v19  ;;  %v963_v15 = vmul.f32 %v1625_v35, %v1625_v35  ;;  %v930_v16 = vsel %vm570_vm3, %v1635_v37, 0.0 }
 0x122   : > { %v923_v7 = vadd.f32 %v922_v4, %v921_v5  ;;  %v964_v18 = vmul.f32 %v1640_v38, %v1640_v38  ;;  %v976_v20 = vsel %vm570_vm3, %v960_v10, 0.0  ;;  %v977_v21 = vsel %vm570_vm3, %v961_v11, 0.0 }
 0x123   : > { %v932_v22 = vsel %vm570_vm3, %v1645_v39, 0.0  ;;  %v978_v23 = vadd.f32 %v977_v21, %v976_v20  ;;  %v979_v24 = vsel %vm570_vm3, %v962_v13, 0.0  ;;  %v965_v26 = vmul.f32 %v1650_v40, %v1650_v40 }
 0x124   : > { %v925_v9 = vadd.f32 %v924_v6, %v923_v7  ;;  %v981_v27 = vsel %vm570_vm3, %v963_v15, 0.0  ;;  %v934_v28 = vsel %vm570_vm3, %v1660_v42, 0.0  ;;  %v966_v31 = vmul.f32 %v1635_v37, %v1635_v37 }
 0x125   : > { %v980_v29 = vadd.f32 %v979_v24, %v978_v23  ;;  %v983_v32 = vsel %vm570_vm3, %v964_v18, 0.0  ;;  %v936_v33 = vsel %vm570_vm3, %v1670_v44, 0.0  ;;  %v967_v35 = vmul.f32 %v1645_v39, %v1645_v39  ;;  %v918_v23 = vld [vmem:[%s1536_s20] sm:$0x1] }
 0x126   : > { %v927_v14 = vadd.f32 %v926_v8, %v925_v9  ;;  %v985_v36 = vsel %vm570_vm3, %v965_v26, 0.0  ;;  %v938_v38 = vsel %vm570_vm3, %v1655_v41, 0.0  ;;  %v968_v37 = vmul.f32 %v1660_v42, %v1660_v42 }
 0x127   : > { %v982_v19 = vadd.f32 %v981_v27, %v980_v29  ;;  %v987_v46 = vsel %vm570_vm3, %v966_v31, 0.0  ;;  %v940_v48 = vsel %vm570_vm3, %v1665_v43, 0.0  ;;  %v969_v39 = vmul.f32 %v1670_v44, %v1670_v44 }
 0x128   : > { %v929_v17 = vadd.f32 %v928_v12, %v927_v14  ;;  %v989_v54 = vsel %vm570_vm3, %v967_v35, 0.0  ;;  %v942_v55 = vsel %vm570_vm3, %v1690_v49, 0.0  ;;  %v970_v42 = vmul.f32 %v1655_v41, %v1655_v41 }
 0x129   : > { %v984_v40 = vadd.f32 %v983_v32, %v982_v19  ;;  %v991_v58 = vsel %vm570_vm3, %v968_v37, 0.0  ;;  %v944_v59 = vsel %vm570_vm3, %v1704_v52, 0.0  ;;  %v971_v44 = vmul.f32 %v1665_v43, %v1665_v43 }
 0x12a   : > { %v931_v25 = vadd.f32 %v930_v16, %v929_v17  ;;  %v993_v62 = vsel %vm570_vm3, %v969_v39, 0.0  ;;  %v946_v63 = vsel %vm570_vm3, %v1683_v47, 0.0  ;;  %v972_v41 = vmul.f32 %v1690_v49, %v1690_v49 }
 0x12b   : > { %v986_v50 = vadd.f32 %v985_v36, %v984_v40  ;;  %v995_v2 = vsel %vm570_vm3, %v970_v42, 0.0  ;;  %v948_v3 = vsel %vm570_vm3, %v1697_v51, 0.0  ;;  %v973_v43 = vmul.f32 %v1704_v52, %v1704_v52 }
 0x12c   : > { %v933_v30 = vadd.f32 %v932_v22, %v931_v25  ;;  %v997_v6 = vsel %vm570_vm3, %v971_v44, 0.0  ;;  %v974_v9 = vmul.f32 %v1683_v47, %v1683_v47  ;;  %v999_v49 = vsel %vm570_vm3, %v972_v41, 0.0 }
 0x12d   : > { %v988_v56 = vadd.f32 %v987_v46, %v986_v50  ;;  %v975_v12 = vmul.f32 %v1697_v51, %v1697_v51  ;;  %v1001_v13 = vsel %vm570_vm3, %v973_v43, 0.0  ;;  %vm957_vm5 = vcmask 57344  }
 0x12e   : > { %v935_v34 = vadd.f32 %v934_v28, %v933_v30  ;;  %v1003_v52 = vsel %vm570_vm3, %v974_v9, 0.0  ;;  %v959_v30 = vld [vmem:[%s1541_s23] sm:$0x1] }
 0x12f   : > { %v990_v60 = vadd.f32 %v989_v54, %v988_v56  ;;  %v1005_v47 = vsel %vm570_vm3, %v975_v12, 0.0 }
 0x130   : > { %v937_v45 = vadd.f32 %v936_v33, %v935_v34 }
 0x131   : > { %v992_v0 = vadd.f32 %v991_v58, %v990_v60 }
 0x132   : > { %v939_v53 = vadd.f32 %v938_v38, %v937_v45 }
 0x133   : > { %v994_v4 = vadd.f32 %v993_v62, %v992_v0 }
 0x134   : > { %v941_v57 = vadd.f32 %v940_v48, %v939_v53 }
 0x135   : > { %v996_v7 = vadd.f32 %v995_v2, %v994_v4 }
 0x136   : > { %v943_v61 = vadd.f32 %v942_v55, %v941_v57 }
 0x137   : > { %v998_v10 = vadd.f32 %v997_v6, %v996_v7 }
 0x138   : > { %v945_v1 = vadd.f32 %v944_v59, %v943_v61 }
 0x139   : > { %v1000_v14 = vadd.f32 %v999_v49, %v998_v10 }
 0x13a   : > { %v947_v5 = vadd.f32 %v946_v63, %v945_v1 }
 0x13b   : > { %v1002_v16 = vadd.f32 %v1001_v13, %v1000_v14 }
 0x13c   : > { %v949_v8 = vadd.f32 %v948_v3, %v947_v5 }
 0x13d   : > { %v1004_v18 = vadd.f32 %v1003_v52, %v1002_v16 }
 0x13e   : > { %v950_v11 = vrot.slane %v949_v8, 4 }
 0x13f   : > { %v1006_v21 = vadd.f32 %v1005_v47, %v1004_v18 }
 0x140   : > { %v951_v15 = vadd.f32 %v950_v11, %v949_v8 }
 0x141   : > { %v1007_v24 = vrot.slane %v1006_v21, 4 }
 0x142   : > { %v952_v17 = vrot.slane %v951_v15, 2 }
 0x143   : > { %v1008_v25 = vadd.f32 %v1007_v24, %v1006_v21 }
 0x144   : > { %v953_v20 = vadd.f32 %v952_v17, %v951_v15 }
 0x145   : > { %v1009_v27 = vrot.slane %v1008_v25, 2 }
 0x146   : > { %v954_v22 = vrot.slane %v953_v20, 1 }
 0x147   : > { %v1010_v28 = vadd.f32 %v1009_v27, %v1008_v25 }
 0x148   : > { %v955_v51 = vadd.f32 %v954_v22, %v953_v20 }
 0x149   : > { %v1011_v29 = vrot.slane %v1010_v28, 1 }
 0x14a   : > { %v956_v26 = vadd.f32 %v955_v51, %v918_v23 }
 0x14b   : > { %v1012_v31 = vadd.f32 %v1011_v29, %v1010_v28 }
 0x14c   : > { %958 = vst.msk [vmem:[%s1536_s20] sm:$0x1] %vm957_vm5, %v956_v26 }
 0x14d   : > { %v1013_v32 = vadd.f32 %v1012_v31, %v959_v30 }
 0x14f   : > { %1014 = vst.msk [vmem:[%s1541_s23] sm:$0x1] %vm957_vm5, %v1013_v32 }
 0x150 PF: > { %s20_s13 = sadd.s32 1, %s1430_s13   ;;  %s1847_s30 = smov %s1422_s11 }
 0x151   : > { %p17_p8 = scmp.ge.s32.totalorder %s20_s13, 6   ;;  %s1848_s10 = smov %s1426_s12 }
 0x152   : > { %s1849_s11 = smov %s1852_s14  ;;  %s1850_s12 = smov %s1856_s15 }
 0x153   :  { %19 = sbr.rel (!%p17_p8) target bundleno = 3 (0x3), region = 123 }

// kernel: residual_block_forward.7
= control target key start
LH: loop header
LB: loop body
LE: loop exit
PB: predicated region body
PF: predicated region fallthrough
CT: control target
= control target key end

     0   :  { %s3772_s15 = smov 0   ;;  %s3774_s16 = smov 0   ;;  %s4870_s0 = inlined_call_operand.vmem [shape: bf16[2,2,10,18,8], index: 0, kind: input, shape index: {}]   ;;  %s4871_s1 = inlined_call_operand.vmem [shape: bf16[9,8,8], index: 1, kind: input, shape index: {}]   ;;  %s4872_s2 = inlined_call_operand.vmem [shape: f32[2,256,8], index: 2, kind: output, shape index: {0}]   ;;  %s4873_s3 = inlined_call_operand.vmem [shape: f32[2,1,8], index: 3, kind: output, shape index: {1}]   ;;  %s4874_s4 = inlined_call_operand.vmem [shape: f32[2,1,8], index: 4, kind: output, shape index: {2}]  }
   0x1   :  { %s3776_s17 = smov 0   ;;  %s3778_s18 = smov 0  }
   0x2   :  { %s3780_s19 = smov 0  }
   0x3 LB: > { %s24_s20 = sadd.s32 1, %s3736_s17  ;;  %s27_s21 = sadd.s32 1, %s3740_s18  ;;  %s3744_s19 = sphi %s3780_s19, %s15_s19   ;;  %s3740_s18 = sphi %s3778_s18, %s4900_s18   ;;  %s3736_s17 = sphi %s3776_s17, %s4899_s17   ;;  %s3732_s16 = sphi %s3774_s16, %s4898_s16   ;;  %s3728_s15 = sphi %s3772_s15, %s4897_s15  }
   0x4   : > { %p25_p0 = scmp.ge.s32.totalorder %s24_s20, 2  ;;  %p2975_p1 = scmp.ge.s32.totalorder %s3744_s19, 1 }
   0x5   : > { %p187_p2 = scmp.lt.s32.totalorder %s3744_s19, 5 }
   0x6   : > { %s4902_s20 = smov (%p25_p0, %s24_s20), 0  ;;  %s4904_s21 = smov (!%p25_p0, %s27_s21), %s3740_s18 }
   0x7   : > { %p188_p3 = pnand %p2975_p1, %p187_p2  ;;  %p29_p4 = scmp.ge.s32.totalorder %s4904_s21, 2 }
   0x9   : > { %s4906_s21 = smov (%p29_p4, %s4904_s21), 0  ;;  %191 = sbr.rel (%p188_p3) target bundleno = 469 (0x1d5), region = 28 }
  0x10   : > { %v2980_v0 = vld [vmem:[%s4871_s1 + $0x4] sm:$0xf]  ;;  %vm524_vm0 = vcmask 1043456   ;;  %v3095_v1 = vld [vmem:[%s4871_s1 + $0x10] sm:$0xf]  ;;  %p227_p5 = scmp.lt.s32.totalorder %s3732_s16, 1 }
  0x11   : > { %3628 = vmatprep.subr.msk.bf16.mxu1 %vm524_vm0, %v2980_v0  ;;  %3632 = vmatprep.subr.msk.bf16.mxu0 %vm524_vm0, %v3095_v1  ;;  %v526_v2 = vsel %vm524_vm0, %v2980_v0, 0  ;;  %v3814_v3 = vsel %vm524_vm0, %v3095_v1, 0  ;;  %p229_p6 = scmp.lt.s32.totalorder %s3728_s15, 1  ;;  %v269_v4 = vld [vmem:[%s4871_s1] sm:$0xf]  ;;  %vm499_vm3 = vcmask 64512  }
  0x12   : > { %3337 = vmatpush3.bf16.msra.mxu1 %v526_v2  ;;  %3409 = vmatpush3.bf16.msra.mxu0 %v3814_v3  ;;  %s4908_s16 = smov (!%p227_p5, %s3732_s16), 1  ;;  %v3128_v5 = vld [vmem:[%s4871_s1 + $0x14] sm:$0xf]  ;;  %vm278_vm1 = vsmask.f32 3328  ;;  %v3869_v17 = vsel %vm524_vm0, %v269_v4, 0 }
  0x13   : > { %s230_s28 = scalar_select %p229_p6, %s3728_s15, 1  ;;  %3629 = vmatprep.subr.msk.bf16.mxu1 %vm524_vm0, %v269_v4  ;;  %3634 = vmatprep.subr.msk.bf16.mxu0 %vm524_vm0, %v3128_v5  ;;  %vm279_vm2 = vsmask.f32 7440  ;;  %v3875_v26 = vld [vmem:[%s4871_s1 + $0x18] sm:$0xf]  ;;  %v3892_v37 = vsel %vm524_vm0, %v3128_v5, 0 }
  0x14   : > { %s3639_s5 = smul.u32 60, %s4908_s16  ;;  %s3833_s8 = scalar_lea.vmem %s4873_s3, %s4908_s16  ;;  %vm3884_vm4 = vmor %vm278_vm1, %vm279_vm2  ;;  %v3896_v41 = vsel %vm524_vm0, %v3875_v26, 0  ;;  %vm813_vm5 = vcmask 1042432   ;;  %vm814_vm6 = vcmask 1046532  }
  0x15   : > { %s3638_s9 = smul.u32 30, %s230_s28  ;;  %s3840_s12 = scalar_lea.vmem %s4874_s4, %s4908_s16  ;;  %vm4039_vm7 = vmor %vm813_vm5, %vm814_vm6 }
  0x16   : > { %p3252_p8 = scmp.ne.s32.totalorder %s3728_s15, 0 }
  0x17   : > { %s233_s13 = sadd.s32 %s3639_s5, %s3638_s9  ;;  %vm2728_vm8 = vcmask (!%p3252_p8), 57344  }
  0x18   : > { %s2976_s14 = sshll.u32 %s233_s13, 2  ;;  %s2977_s13 = sshll.u32 %s3728_s15, 4 }
  0x19   : > { %s3845_s24 = scalar_lea.vmem %s4870_s0, %s2976_s14  ;;  %p239_p7 = scmp.lt.s32.totalorder %s2977_s13, 31 }
  0x1a   : > { %v3848_v6 = vld [vmem:[%s3845_s24] sm:$0xf]  ;;  %v3851_v7 = vld [vmem:[%s3845_s24 + $0x4] sm:$0xf]  ;;  %v3854_v8 = vld [vmem:[%s3845_s24 + $0x8] sm:$0x1] }
  0x1b   : > { %v282_v9 = vshrl.u32 %v3848_v6, 16  ;;  %v285_v10 = vshll.u32 %v3848_v6, 16  ;;  %v291_v11 = vshll.u32 %v3851_v7, 16  ;;  %v295_v12 = vshrl.u32 %v3851_v7, 16  ;;  %v3071_v13 = vld [vmem:[%s3845_s24 + $0xc] sm:$0xf] }
  0x1c   : > { %v301_v14 = vshll.u32 %v3854_v8, 16  ;;  %v3863_v15 = vld [vmem:[%s3845_s24 + $0x10] sm:$0xf]  ;;  %v3866_v16 = vld [vmem:[%s3845_s24 + $0x14] sm:$0x1]  ;;  %v1262_v23 = vshrl.u32 %v3071_v13, 16 }
  0x1d   : > { %v284_v18 = vrot.slane %v282_v9, 4  ;;  %v287_v19 = vrot.slane %v285_v10, 5  ;;  %v293_v20 = vrot.slane %v291_v11, 5  ;;  %v297_v21 = vrot.slane %v295_v12, 4  ;;  %v3880_v31 = vld [vmem:[%s3845_s24 + $0xc] sm:$0xf] }
  0x1e   : > { %v303_v22 = vrot.slane %v301_v14, 5  ;;  %v1265_v24 = vshll.u32 %v3071_v13, 16  ;;  %v1271_v25 = vshll.u32 %v3863_v15, 16  ;;  %v1275_v29 = vshrl.u32 %v3863_v15, 16  ;;  %v3889_v36 = vld [vmem:[%s3845_s24 + $0x10] sm:$0xf] }
  0x1f   : > { %v288_v27 = vor.u32 %v287_v19, %v284_v18  ;;  %v298_v28 = vor.u32 %v297_v21, %v293_v20  ;;  %v1281_v30 = vshll.u32 %v3866_v16, 16  ;;  %v1264_v33 = vrot.slane %v1262_v23, 4  ;;  %v3899_v44 = vld [vmem:[%s3845_s24 + $0x14] sm:$0x1]  ;;  %v3074_v55 = vld [vmem:[%s3845_s24 + $0x18] sm:$0xf] }
  0x20   : > { %v1267_v34 = vrot.slane %v1265_v24, 5  ;;  %v1273_v35 = vrot.slane %v1271_v25, 5  ;;  %v1277_v40 = vrot.slane %v1275_v29, 4  ;;  %v306_v45 = vshrl.u32 %v3880_v31, 16  ;;  %v3912_v60 = vld [vmem:[%s3845_s24 + $0x1c] sm:$0xf] }
  0x21   : > { %v289_v38 = vrot.slane %v288_v27, 4  ;;  %v299_v39 = vrot.slane %v298_v28, 4  ;;  %v1283_v43 = vrot.slane %v1281_v30, 5  ;;  %v309_v46 = vshll.u32 %v3880_v31, 16  ;;  %v3920_v1 = vld [vmem:[%s3845_s24 + $0x20] sm:$0x1] }
  0x22   : > { %v1268_v42 = vor.u32 %v1267_v34, %v1264_v33  ;;  %v1278_v49 = vor.u32 %v1277_v40, %v1273_v35  ;;  %v315_v50 = vshll.u32 %v3889_v36, 16  ;;  %v308_v53 = vrot.slane %v306_v45, 4  ;;  %v3928_v21 = vld [vmem:[%s3845_s24 + $0x18] sm:$0xf]  ;;  %v3935_v27 = vld [vmem:[%s3845_s24 + $0x1c] sm:$0xf] }
  0x23   : > { %v294_v47 = vsel %vm3884_vm4, %v289_v38, %v293_v20  ;;  %v304_v48 = vsel %vm3884_vm4, %v299_v39, %v303_v22  ;;  %v311_v54 = vrot.slane %v309_v46, 5  ;;  %v319_v58 = vshrl.u32 %v3889_v36, 16  ;;  %v3943_v38 = vld [vmem:[%s3845_s24 + $0x20] sm:$0x1]  ;;  %s4910_s13 = smov (!%p239_p7, %s2977_s13), 31  ;;  %s2978_s14 = sshll.u32 %s4908_s16, 5 }
  0x24   : > { %v2981_v51 = vcombine.low %v294_v47, %v304_v48  ;;  %v1269_v52 = vrot.slane %v1268_v42, 4  ;;  %v1279_v56 = vrot.slane %v1278_v49, 4  ;;  %v317_v57 = vrot.slane %v315_v50, 5  ;;  %v3077_v47 = vld [vmem:[%s3845_s24 + $0x24] sm:$0xf]  ;;  %s242_s22 = sadd.s32 %s2978_s14, %s4910_s13 }
  0x25   : > { %v325_v59 = vshll.u32 %v3899_v44, 16  ;;  %v1653_v62 = vrot.slane %v3863_v15, 5  ;;  %v1656_v63 = vrot.slane %v3866_v16, 5  ;;  %v312_v0 = vor.u32 %v311_v54, %v308_v53  ;;  %s2979_s23 = sshll.u32 %s242_s22, 3 }
  0x26   : > { %3338 = vmatprep.mubr.msk.bf16.mxu1 %vm499_vm3, %v2981_v51  ;;  %v1274_v61 = vsel %vm3884_vm4, %v1269_v52, %v1273_v35  ;;  %v1284_v2 = vsel %vm3884_vm4, %v1279_v56, %v1283_v43  ;;  %v321_v4 = vrot.slane %v319_v58, 4  ;;  %v1286_v9 = vshrl.u32 %v3074_v55, 16  ;;  %v3953_v52 = vld [vmem:[%s3845_s24 + $0x28] sm:$0xf]  ;;  %s4686_s26 = scalar_lea.vmem %s4872_s2, %s2979_s23 }
  0x27   : > { %v327_v5 = vrot.slane %v325_v59, 5  ;;  %v3096_v10 = vcombine.low %v1274_v61, %v1284_v2  ;;  %v313_v11 = vrot.slane %v312_v0, 4  ;;  %v1289_v12 = vshll.u32 %v3074_v55, 16  ;;  %v3965_v61 = vld [vmem:[%s3845_s24 + $0x2c] sm:$0x1] }
  0x28   : > { %v1295_v13 = vshll.u32 %v3912_v60, 16  ;;  %v322_v14 = vor.u32 %v321_v4, %v317_v57  ;;  %v1288_v18 = vrot.slane %v1286_v9, 4  ;;  %v1299_v19 = vshrl.u32 %v3912_v60, 16 }
  0x29   : > { %v1305_v20 = vshll.u32 %v3920_v1, 16  ;;  %3410 = vmatprep.mubr.msk.bf16.mxu0 %vm499_vm3, %v3096_v10  ;;  %v318_v22 = vsel %vm3884_vm4, %v313_v11, %v317_v57  ;;  %v1291_v23 = vrot.slane %v1289_v12, 5  ;;  %v1660_v25 = vrot.slane %v3912_v60, 5  ;;  %v3959_v57 = vld [vmem:[%s4871_s1 + $0x8] sm:$0xf] }
  0x2a   : > { %v1297_v24 = vrot.slane %v1295_v13, 5  ;;  %v323_v28 = vrot.slane %v322_v14, 4  ;;  %v1301_v29 = vrot.slane %v1299_v19, 4  ;;  %v1663_v33 = vrot.slane %v3920_v1, 5  ;;  %v3972_v11 = vld [vmem:[%s3845_s24 + $0x24] sm:$0xf] }
  0x2b   : > { %v1307_v30 = vrot.slane %v1305_v20, 5  ;;  %v1292_v34 = vor.u32 %v1291_v23, %v1288_v18  ;;  %v3940_v35 = vrot.slane %v1660_v25, 4  ;;  %v330_v39 = vshrl.u32 %v3928_v21, 16  ;;  %v3975_v19 = vld [vmem:[%s3845_s24 + $0x28] sm:$0xf] }
  0x2c   : > { %v333_v40 = vshll.u32 %v3928_v21, 16  ;;  %v328_v42 = vsel %vm3884_vm4, %v323_v28, %v327_v5  ;;  %v1302_v43 = vor.u32 %v1301_v29, %v1297_v24  ;;  %v339_v45 = vshll.u32 %v3935_v27, 16  ;;  %v3985_v29 = vld [vmem:[%s3845_s24 + $0x2c] sm:$0x1] }
  0x2d   : > { %v343_v46 = vshrl.u32 %v3935_v27, 16  ;;  %v2982_v48 = vcombine.low %v318_v22, %v328_v42  ;;  %v1293_v49 = vrot.slane %v1292_v34, 4  ;;  %v332_v50 = vrot.slane %v330_v39, 4 }
  0x2e   : > { %v335_v51 = vrot.slane %v333_v40, 5  ;;  %v1303_v53 = vrot.slane %v1302_v43, 4  ;;  %v341_v54 = vrot.slane %v339_v45, 5  ;;  %v349_v56 = vshll.u32 %v3943_v38, 16  ;;  %v3080_v45 = vld [vmem:[%s3845_s24 + $0x30] sm:$0xf] }
  0x2f   : > { %v345_v55 = vrot.slane %v343_v46, 4  ;;  %3339 = vmatmul.mubr.msk.bf16.vlgmr.msra.gmra.mrb[0].mxu1 %vm499_vm3, %v2982_v48  ;;  %v1298_v58 = vsel %vm3884_vm4, %v1293_v49, %v1297_v24  ;;  %v1310_v0 = vshrl.u32 %v3077_v47, 16  ;;  %v1313_v2 = vshll.u32 %v3077_v47, 16 }
  0x30   : > { %v336_v59 = vor.u32 %v335_v51, %v332_v50  ;;  %3355 = vmatpush3.bf16.msra.mxu1 %v3869_v17  ;;  %v1308_v4 = vsel %vm3884_vm4, %v1303_v53, %v1307_v30  ;;  %v351_v9 = vrot.slane %v349_v56, 5  ;;  %v1319_v10 = vshll.u32 %v3953_v52, 16  ;;  %v3995_v50 = vld [vmem:[%s3845_s24 + $0x34] sm:$0xf] }
  0x31   : > { %v346_v5 = vor.u32 %v345_v55, %v341_v54  ;;  %v3097_v12 = vcombine.low %v1298_v58, %v1308_v4  ;;  %v1312_v14 = vrot.slane %v1310_v0, 4  ;;  %v1315_v18 = vrot.slane %v1313_v2, 5  ;;  %3630 = vmatprep.subr.msk.bf16.mxu1 %vm524_vm0, %v3959_v57  ;;  %v4005_v58 = vld [vmem:[%s3845_s24 + $0x38] sm:$0x1] }
  0x32   : > { %v337_v13 = vrot.slane %v336_v59, 4  ;;  %v1321_v20 = vrot.slane %v1319_v10, 5  ;;  %v1323_v22 = vshrl.u32 %v3953_v52, 16  ;;  %v1329_v23 = vshll.u32 %v3965_v61, 16 }
  0x33   : > { %v347_v17 = vrot.slane %v346_v5, 4  ;;  %3411 = vmatmul.mubr.msk.bf16.vlgmr.msra.gmra.mrb[0].mxu0 %vm499_vm3, %v3097_v12  ;;  %v1316_v28 = vor.u32 %v1315_v18, %v1312_v14  ;;  %v354_v30 = vshrl.u32 %v3972_v11, 16  ;;  %v357_v34 = vshll.u32 %v3972_v11, 16  ;;  %v4010_v14 = vld [vmem:[%s3845_s24 + $0x30] sm:$0xf] }
  0x34   : > { %v342_v24 = vsel %vm3884_vm4, %v337_v13, %v341_v54  ;;  %3427 = vmatpush3.bf16.msra.mxu0 %v3892_v37  ;;  %v1325_v40 = vrot.slane %v1323_v22, 4  ;;  %v1331_v42 = vrot.slane %v1329_v23, 5  ;;  %v363_v43 = vshll.u32 %v3975_v19, 16  ;;  %v4016_v23 = vld [vmem:[%s3845_s24 + $0x34] sm:$0xf] }
  0x35   : > { %v352_v39 = vsel %vm3884_vm4, %v347_v17, %v351_v9  ;;  %v1317_v47 = vrot.slane %v1316_v28, 4  ;;  %v356_v48 = vrot.slane %v354_v30, 4  ;;  %v359_v49 = vrot.slane %v357_v34, 5  ;;  %3635 = vmatprep.subr.msk.bf16.mxu0 %vm524_vm0, %v3875_v26 }
  0x36   : > { %v2983_v46 = vcombine.low %v342_v24, %v352_v39  ;;  %v1326_v37 = vor.u32 %v1325_v40, %v1321_v20  ;;  %v365_v51 = vrot.slane %v363_v43, 5  ;;  %v367_v53 = vshrl.u32 %v3975_v19, 16  ;;  %v4021_v39 = vld [vmem:[%s3845_s24 + $0x38] sm:$0x1] }
  0x37   : > { %v373_v54 = vshll.u32 %v3985_v29, 16  ;;  %v1322_v55 = vsel %vm3884_vm4, %v1317_v47, %v1321_v20  ;;  %v360_v56 = vor.u32 %v359_v49, %v356_v48  ;;  %v1334_v59 = vshrl.u32 %v3080_v45, 16 }
  0x38   : > { %3342 = vmatprep.mubr.msk.bf16.mxu1 %vm499_vm3, %v2983_v46  ;;  %v1337_v0 = vshll.u32 %v3080_v45, 16  ;;  %v1327_v2 = vrot.slane %v1326_v37, 4  ;;  %v369_v26 = vrot.slane %v367_v53, 4  ;;  %v1343_v5 = vshll.u32 %v3995_v50, 16  ;;  %v3112_v37 = vld [vmem:[%s3845_s24 + $0xc] sm:$0xe] }
  0x39   : > { %v375_v4 = vrot.slane %v373_v54, 5  ;;  %v361_v9 = vrot.slane %v360_v56, 4  ;;  %v1336_v10 = vrot.slane %v1334_v59, 4  ;;  %v1347_v13 = vshrl.u32 %v3995_v50, 16  ;;  %v4033_v56 = vld [vmem:[%s3845_s24 + $0x3c] sm:$0xf] }
  0x3a   : > { %v1339_v12 = vrot.slane %v1337_v0, 5  ;;  %v1332_v18 = vsel %vm3884_vm4, %v1327_v2, %v1331_v42  ;;  %v370_v17 = vor.u32 %v369_v26, %v365_v51  ;;  %v1345_v20 = vrot.slane %v1343_v5, 5 }
  0x3b   : > { %v1353_v22 = vshll.u32 %v4005_v58, 16  ;;  %v3098_v24 = vcombine.low %v1322_v55, %v1332_v18  ;;  %v366_v28 = vsel %vm3884_vm4, %v361_v9, %v365_v51  ;;  %v1349_v34 = vrot.slane %v1347_v13, 4  ;;  %v4047_v18 = vld [vmem:[%s3845_s24 + $0x44] sm:$0x1] }
  0x3c   : > { %v1340_v30 = vor.u32 %v1339_v12, %v1336_v10  ;;  %v371_v40 = vrot.slane %v370_v17, 4  ;;  %v378_v42 = vshrl.u32 %v4010_v14, 16  ;;  %v381_v45 = vshll.u32 %v4010_v14, 16  ;;  %v3113_v17 = vld [vmem:[%s3845_s24 + $0x18] sm:$0xe] }
  0x3d   : > { %v1355_v43 = vrot.slane %v1353_v22, 5  ;;  %3414 = vmatprep.mubr.msk.bf16.mxu0 %vm499_vm3, %v3098_v24  ;;  %v1350_v47 = vor.u32 %v1349_v34, %v1345_v20  ;;  %v387_v48 = vshll.u32 %v4016_v23, 16  ;;  %v391_v49 = vshrl.u32 %v4016_v23, 16 }
  0x3e   : > { %v1341_v46 = vrot.slane %v1340_v30, 4  ;;  %v376_v51 = vsel %vm3884_vm4, %v371_v40, %v375_v4  ;;  %v380_v53 = vrot.slane %v378_v42, 4  ;;  %v383_v54 = vrot.slane %v381_v45, 5  ;;  %v4044_v4 = vld [vmem:[%s3845_s24 + $0x40] sm:$0xf] }
  0x3f   : > { %v397_v55 = vshll.u32 %v4021_v39, 16  ;;  %v2984_v59 = vcombine.low %v366_v28, %v376_v51  ;;  %v1351_v2 = vrot.slane %v1350_v47, 4  ;;  %v389_v26 = vrot.slane %v387_v48, 5  ;;  %v4058_v30 = vld [vmem:[%s3845_s24 + $0x48] sm:$0xf] }
  0x40   : > { %v1346_v0 = vsel %vm3884_vm4, %v1341_v46, %v1345_v20  ;;  %v384_v9 = vor.u32 %v383_v54, %v380_v53  ;;  %v393_v10 = vrot.slane %v391_v49, 4  ;;  %v3120_v13 = vrot.slane %v3112_v37, 9 }
  0x41   : > { %v399_v12 = vrot.slane %v397_v55, 5  ;;  %3343 = vmatmul.mubr.msk.bf16.gmra.mrb[4].mxu1 %vm499_vm3, %v2984_v59  ;;  %v1356_v20 = vsel %vm3884_vm4, %v1351_v2, %v1355_v43  ;;  %v1655_v22 = vrot.slane %v1653_v62, 4  ;;  %v402_v24 = vshrl.u32 %v4033_v56, 16  ;;  %v4078_v55 = vld [vmem:[%s3845_s24 + $0x50] sm:$0x1] }
  0x42   : > { %v405_v28 = vshll.u32 %v4033_v56, 16  ;;  %v3099_v34 = vcombine.low %v1346_v0, %v1356_v20  ;;  %v385_v40 = vrot.slane %v384_v9, 4  ;;  %v394_v42 = vor.u32 %v393_v10, %v389_v26 }
  0x43   : > { %v1654_v45 = vsel %vm4039_vm7, %v3120_v13, %v1653_v62  ;;  %v1657_v43 = vsel %vm4039_vm7, %v1655_v22, %v1656_v63  ;;  %v404_v46 = vrot.slane %v402_v24, 4  ;;  %v411_v48 = vshll.u32 %v4044_v4, 16  ;;  %v4074_v62 = vld [vmem:[%s3845_s24 + $0x4c] sm:$0xf] }
  0x44   : > { %v407_v47 = vrot.slane %v405_v28, 5  ;;  %3415 = vmatmul.mubr.msk.bf16.gmra.mrb[4].mxu0 %vm499_vm3, %v3099_v34  ;;  %v390_v49 = vsel %vm3884_vm4, %v385_v40, %v389_v26  ;;  %v395_v37 = vrot.slane %v394_v42, 4  ;;  %v3129_v15 = vcombine.low %v1654_v45, %v1657_v43  ;;  %v4096_v28 = vld [vmem:[%s3845_s24 + $0x54] sm:$0xf]  ;;  %v4107_v34 = vld [vmem:[%s4871_s1 + $0x1c] sm:$0xf] }
  0x45   : > { %v415_v51 = vshrl.u32 %v4044_v4, 16  ;;  %v413_v53 = vrot.slane %v411_v48, 5  ;;  %v421_v63 = vshll.u32 %v4047_v18, 16  ;;  %v3121_v54 = vrot.slane %v3113_v17, 9 }
  0x46   : > { %v408_v16 = vor.u32 %v407_v47, %v404_v46  ;;  %v400_v59 = vsel %vm3884_vm4, %v395_v37, %v399_v12  ;;  %3428 = vmatprep.mubr.msk.bf16.mxu0 %vm499_vm3, %v3129_v15  ;;  %v1664_v2 = vsel %vm4039_vm7, %v3940_v35, %v1663_v33  ;;  %v426_v26 = vshrl.u32 %v4058_v30, 16  ;;  %v3114_v12 = vld [vmem:[%s3845_s24 + $0x24] sm:$0xe]  ;;  %v4112_v37 = vld [vmem:[%s3845_s24 + $0x58] sm:$0xf] }
  0x47   : > { %v417_v0 = vrot.slane %v415_v51, 4  ;;  %v2985_v9 = vcombine.low %v390_v49, %v400_v59  ;;  %v423_v13 = vrot.slane %v421_v63, 5  ;;  %v1661_v17 = vsel %vm4039_vm7, %v3121_v54, %v1660_v25  ;;  %v4121_v54 = vld [vmem:[%s3845_s24 + $0x5c] sm:$0x1] }
  0x48   : > { %v409_v10 = vrot.slane %v408_v16, 4  ;;  %v3130_v22 = vcombine.low %v1661_v17, %v1664_v2  ;;  %v428_v24 = vrot.slane %v426_v26, 4  ;;  %v429_v1 = vshll.u32 %v4058_v30, 16 }
  0x49   : > { %v418_v20 = vor.u32 %v417_v0, %v413_v53  ;;  %3346 = vmatprep.mubr.msk.bf16.mxu1 %vm499_vm3, %v2985_v9  ;;  %v435_v35 = vshll.u32 %v4074_v62, 16  ;;  %v439_v60 = vshrl.u32 %v4074_v62, 16  ;;  %v445_v25 = vshll.u32 %v4078_v55, 16 }
  0x4a   : > { %v414_v33 = vsel %vm3884_vm4, %v409_v10, %v413_v53  ;;  %v431_v42 = vrot.slane %v429_v1, 5  ;;  %v3122_v45 = vrot.slane %v3114_v12, 9  ;;  %v1667_v43 = vrot.slane %v3953_v52, 5  ;;  %v3115_v10 = vld [vmem:[%s3845_s24 + $0x30] sm:$0xe] }
  0x4b   : > { %v419_v40 = vrot.slane %v418_v20, 4  ;;  %v437_v46 = vrot.slane %v435_v35, 5  ;;  %v441_v47 = vrot.slane %v439_v60, 4  ;;  %v447_v48 = vrot.slane %v445_v25, 5 }
  0x4c   : > { %v1670_v49 = vrot.slane %v3965_v61, 5  ;;  %3429 = vmatmul.mubr.msk.bf16.vlgmr.msra.gmra.mrb[0].mxu0 %vm499_vm3, %v3130_v22  ;;  %v432_v51 = vor.u32 %v431_v42, %v428_v24  ;;  %v1668_v16 = vsel %vm4039_vm7, %v3122_v45, %v1667_v43  ;;  %v1669_v53 = vrot.slane %v1667_v43, 4  ;;  %v4142_v42 = vld [vmem:[%s3845_s24 + $0x40] sm:$0xf]  ;;  %v4145_v45 = vld [vmem:[%s3845_s24 + $0x44] sm:$0x1] }
  0x4d   : > { %v424_v15 = vsel %vm3884_vm4, %v419_v40, %v423_v13  ;;  %3445 = vmatpush3.bf16.msra.mxu0 %v3896_v41  ;;  %v442_v52 = vor.u32 %v441_v47, %v437_v46  ;;  %v450_v61 = vshrl.u32 %v4096_v28, 16  ;;  %v453_v59 = vshll.u32 %v4096_v28, 16 }
  0x4e   : > { %v2986_v63 = vcombine.low %v414_v33, %v424_v15  ;;  %v433_v0 = vrot.slane %v432_v51, 4  ;;  %v1671_v2 = vsel %vm4039_vm7, %v1669_v53, %v1670_v49  ;;  %v459_v26 = vshll.u32 %v4112_v37, 16  ;;  %3636 = vmatprep.subr.msk.bf16.mxu0 %vm524_vm0, %v4107_v34  ;;  %v3116_v33 = vld [vmem:[%s3845_s24 + $0x3c] sm:$0xe] }
  0x4f   : > { %v463_v9 = vshrl.u32 %v4112_v37, 16  ;;  %v443_v41 = vrot.slane %v442_v52, 4  ;;  %v3131_v13 = vcombine.low %v1668_v16, %v1671_v2  ;;  %v452_v17 = vrot.slane %v450_v61, 4  ;;  %v3117_v2 = vld [vmem:[%s3845_s24 + $0x48] sm:$0xe] }
  0x50   : > { %3347 = vmatmul.mubr.msk.bf16.gmra.mrb[8].mxu1 %vm499_vm3, %v2986_v63  ;;  %v455_v12 = vrot.slane %v453_v59, 5  ;;  %v438_v20 = vsel %vm3884_vm4, %v433_v0, %v437_v46  ;;  %v461_v22 = vrot.slane %v459_v26, 5  ;;  %v469_v1 = vshll.u32 %v4121_v54, 16  ;;  %v4160_v59 = vld [vmem:[%s3845_s24 + $0x4c] sm:$0xf] }
  0x51   : > { %v465_v24 = vrot.slane %v463_v9, 4  ;;  %v448_v35 = vsel %vm3884_vm4, %v443_v41, %v447_v48  ;;  %3432 = vmatprep.mubr.msk.bf16.mxu0 %vm499_vm3, %v3131_v13  ;;  %v3123_v25 = vrot.slane %v3115_v10, 9  ;;  %v1674_v40 = vrot.slane %v3995_v50, 5  ;;  %v4163_v0 = vld [vmem:[%s3845_s24 + $0x50] sm:$0x1] }
  0x52   : > { %v456_v60 = vor.u32 %v455_v12, %v452_v17  ;;  %v2987_v43 = vcombine.low %v438_v20, %v448_v35  ;;  %v471_v47 = vrot.slane %v469_v1, 5  ;;  %v1677_v49 = vrot.slane %v4005_v58, 5  ;;  %v4171_v17 = vld [vmem:[%s3845_s24 + $0x58] sm:$0xf]  ;;  %v4174_v12 = vld [vmem:[%s3845_s24 + $0x5c] sm:$0x1] }
  0x53   : > { %v466_v46 = vor.u32 %v465_v24, %v461_v22  ;;  %v1675_v48 = vsel %vm4039_vm7, %v3123_v25, %v1674_v40  ;;  %v1676_v51 = vrot.slane %v1674_v40, 4  ;;  %v3124_v16 = vrot.slane %v3116_v33, 9  ;;  %4884 = vst [vmem:[#allocation2_spill] sm:$0xff] %v4174_v12  ;;  %v4184_v35 = vld [vmem:[%s3845_s24 + $0x64] sm:$0xf] }
  0x54   : > { %v457_v15 = vrot.slane %v456_v60, 4  ;;  %3350 = vmatprep.mubr.msk.bf16.mxu1 %vm499_vm3, %v2987_v43  ;;  %v1681_v53 = vrot.slane %v4142_v42, 5  ;;  %v1684_v63 = vrot.slane %v4145_v45, 5  ;;  %v2997_v61 = vcombine.low %v3848_v6, %v3851_v7  ;;  %v3118_v6 = vld [vmem:[%s3845_s24 + $0x54] sm:$0xe]  ;;  %4885 = vst [vmem:[#allocation3_spill] sm:$0xff] %v4184_v35 }
  0x55   : > { %v467_v50 = vrot.slane %v466_v46, 4  ;;  %v1678_v58 = vsel %vm4039_vm7, %v1676_v51, %v1677_v49  ;;  %v1688_v24 = vrot.slane %v4160_v59, 5  ;;  %v1691_v1 = vrot.slane %v4163_v0, 5  ;;  %v4187_v60 = vld [vmem:[%s3845_s24 + $0x68] sm:$0x1] }
  0x56   : > { %v462_v52 = vsel %vm3884_vm4, %v457_v15, %v461_v22  ;;  %v3132_v9 = vcombine.low %v1675_v48, %v1678_v58  ;;  %v1682_v10 = vsel %vm4039_vm7, %v3124_v16, %v1681_v53  ;;  %v1683_v41 = vrot.slane %v1681_v53, 4  ;;  %4886 = vst [vmem:[#allocation4_spill] sm:$0xff] %v4187_v60 }
  0x57   : > { %v472_v26 = vsel %vm3884_vm4, %v467_v50, %v471_v47  ;;  %v3125_v22 = vrot.slane %v3117_v2, 9  ;;  %v1690_v40 = vrot.slane %v1688_v24, 4  ;;  %v3126_v43 = vrot.slane %v3118_v6, 9  ;;  %v3119_v47 = vld [vmem:[%s3845_s24 + $0x60] sm:$0xe] }
  0x58   : > { %v2988_v13 = vcombine.low %v462_v52, %v472_v26  ;;  %3433 = vmatmul.mubr.msk.bf16.gmra.mrb[4].mxu0 %vm499_vm3, %v3132_v9  ;;  %v1685_v20 = vsel %vm4039_vm7, %v1683_v41, %v1684_v63  ;;  %v1695_v46 = vrot.slane %v4171_v17, 5  ;;  %v825_v49 = vrot.slane %v3889_v36, 5  ;;  %v791_v2 = vld [vmem:[%s3845_s24 + $0x18] sm:$0xe]  ;;  %v4219_v6 = vld [vmem:[%s4871_s1 + $0xc] sm:$0xf] }
  0x59   : > { %v3133_v33 = vcombine.low %v1682_v10, %v1685_v20  ;;  %v1689_v25 = vsel %vm4039_vm7, %v3125_v22, %v1688_v24  ;;  %v1698_v15 = vrot.slane %v4174_v12, 5  ;;  %v1692_v48 = vsel %vm4039_vm7, %v1690_v40, %v1691_v1  ;;  %v793_v1 = vld [vmem:[%s3845_s24 + $0x30] sm:$0xe] }
  0x5a   : > { %3351 = vmatmul.mubr.msk.bf16.gmra.mrb[12].mxu1 %vm499_vm3, %v2988_v13  ;;  %v1696_v51 = vsel %vm4039_vm7, %v3126_v43, %v1695_v46  ;;  %v1697_v16 = vrot.slane %v1695_v46, 4  ;;  %v1702_v50 = vrot.slane %v4184_v35, 5  ;;  %v2998_v53 = vcombine.low %v3880_v31, %v3889_v36  ;;  %v792_v36 = vld [vmem:[%s3845_s24 + $0x24] sm:$0xe]  ;;  %v4493_v12 = vld [vmem:[%s3845_s24 + $0x70] sm:$0xf] }
  0x5b   : > { %3356 = vmatprep.mubr.msk.bf16.mxu1 %vm499_vm3, %v2997_v61  ;;  %3436 = vmatprep.mubr.msk.bf16.mxu0 %vm499_vm3, %v3133_v33  ;;  %v3134_v63 = vcombine.low %v1689_v25, %v1692_v48  ;;  %v3127_v52 = vrot.slane %v3119_v47, 9  ;;  %v1705_v58 = vrot.slane %v4187_v60, 5  ;;  %v790_v61 = vld [vmem:[%s3845_s24 + $0xc] sm:$0xe]  ;;  %v828_v26 = vrot.slane %v3899_v44, 5 }
  0x5c   : > { %v2999_v9 = vcombine.low %v3928_v21, %v3935_v27  ;;  %v1699_v10 = vsel %vm4039_vm7, %v1697_v16, %v1698_v15  ;;  %v1704_v41 = vrot.slane %v1702_v50, 4  ;;  %v923_v13 = vsel %vm524_vm0, %v3959_v57, 0  ;;  %v3686_v16 = vld [vmem:[%s3845_s24 + $0x18] sm:$0xff]   ;;  %v4465_v60 = vld [vmem:[%s3845_s24 + $0x64] sm:$0xf] }
  0x5d   : > { %v3135_v31 = vcombine.low %v1696_v51, %v1699_v10  ;;  %v3014_v44 = vrot.slane %v790_v61, 9  ;;  %v827_v20 = vrot.slane %v825_v49, 4  ;;  %v3015_v21 = vrot.slane %v791_v2, 9  ;;  %4887 = vst [vmem:[#allocation5_spill] sm:$0xff] %v4465_v60 }
  0x5e   : > { %v1703_v22 = vsel %vm4039_vm7, %v3127_v52, %v1702_v50  ;;  %v1706_v57 = vsel %vm4039_vm7, %v1704_v41, %v1705_v58  ;;  %v832_v24 = vrot.slane %v3935_v27, 5  ;;  %v835_v40 = vrot.slane %v3943_v38, 5 }
  0x5f   : > { %v4232_v33 = vsel %vm4039_vm7, %v3014_v44, %v825_v49  ;;  %v4236_v25 = vsel %vm4039_vm7, %v827_v20, %v828_v26  ;;  %v3016_v43 = vrot.slane %v792_v36, 9  ;;  %v3136_v49 = vcombine.low %v1703_v22, %v1706_v57  ;;  %v3178_v26 = vld [vmem:[%s3845_s24 + $0x18] sm:$0xf]  ;;  %v3688_v57 = vld [vmem:[%s3845_s24 + $0x24] sm:$0xff]  }
  0x60   : > { %3437 = vmatmul.mubr.msk.bf16.gmra.mrb[8].mxu0 %vm499_vm3, %v3134_v63  ;;  %v3023_v27 = vcombine.low %v4232_v33, %v4236_v25  ;;  %v4245_v46 = vsel %vm4039_vm7, %v3015_v21, %v832_v24  ;;  %v834_v47 = vrot.slane %v832_v24, 4  ;;  %v839_v15 = vrot.slane %v3975_v19, 5 }
  0x61   : > { %3440 = vmatprep.mubr.msk.bf16.mxu0 %vm499_vm3, %v3135_v31  ;;  %v842_v48 = vrot.slane %v3985_v29, 5  ;;  %v3017_v38 = vrot.slane %v793_v1, 9  ;;  %v3000_v51 = vcombine.low %v3972_v11, %v3975_v19  ;;  %v849_v63 = vrot.slane %v4021_v39, 5  ;;  %v794_v19 = vld [vmem:[%s3845_s24 + $0x3c] sm:$0xe] }
  0x62   : > { %3357 = vmatmul.mubr.msk.bf16.vlgmr.msra.gmra.mrb[0].mxu1 %vm499_vm3, %v2998_v53  ;;  %v4254_v50 = vsel %vm4039_vm7, %v834_v47, %v835_v40  ;;  %v846_v53 = vrot.slane %v4016_v23, 5  ;;  %v3001_v52 = vcombine.low %v4010_v14, %v4016_v23  ;;  %v4264_v58 = vsel %vm4039_vm7, %v3016_v43, %v839_v15  ;;  %v789_v14 = vld [vmem:[%s3845_s24] sm:$0xe]  ;;  %v4292_v31 = vld [vmem:[%s3845_s24 + $0x1c] sm:$0xf] }
  0x63   : > { %3373 = vmatpush3.bf16.msra.mxu1 %v923_v13  ;;  %3360 = vmatprep.mubr.msk.bf16.mxu1 %vm499_vm3, %v2999_v9  ;;  %v3024_v29 = vcombine.low %v4245_v46, %v4254_v50  ;;  %v841_v11 = vrot.slane %v839_v15, 4  ;;  %v818_v61 = vrot.slane %v3851_v7, 5  ;;  %v3018_v10 = vrot.slane %v794_v19, 9  ;;  %v795_v1 = vld [vmem:[%s3845_s24 + $0x48] sm:$0xe] }
  0x64   : > { %3631 = vmatprep.subr.msk.bf16.mxu1 %vm524_vm0, %v4219_v6  ;;  %v4270_v2 = vsel %vm4039_vm7, %v3017_v38, %v846_v53  ;;  %v848_v39 = vrot.slane %v846_v53, 4  ;;  %v821_v41 = vrot.slane %v3854_v8, 5  ;;  %v3013_v36 = vrot.slane %v789_v14, 9  ;;  %v4318_v38 = vld [vmem:[%s4871_s1 + $0x20] sm:$0xf] }
  0x65   : > { %v4276_v23 = vsel %vm4039_vm7, %v841_v11, %v842_v48  ;;  %v820_v44 = vrot.slane %v818_v61, 4  ;;  %v853_v20 = vrot.slane %v4044_v4, 5  ;;  %v856_v21 = vrot.slane %v4047_v18, 5  ;;  %v4339_v14 = vld [vmem:[%s3845_s24 + $0x28] sm:$0xf] }
  0x66   : > { %v4285_v9 = vsel %vm4039_vm7, %v848_v39, %v849_v63  ;;  %v3002_v22 = vcombine.low %v4033_v56, %v4044_v4  ;;  %v2097_v24 = vshrl.u32 %v3178_v26, 16  ;;  %v2100_v8 = vshll.u32 %v3178_v26, 16  ;;  %v3690_v4 = vld [vmem:[%s3845_s24 + $0x30] sm:$0xff]   ;;  %v4441_v46 = vld [vmem:[%s3845_s24 + $0x44] sm:$0x1] }
  0x67   : > { %v2106_v40 = vshll.u32 %v4292_v31, 16  ;;  %v2110_v43 = vshrl.u32 %v4292_v31, 16  ;;  %v4304_v47 = vsel %vm4039_vm7, %v3018_v10, %v853_v20  ;;  %v2339_v18 = vsel %vm524_vm0, %v4107_v34, 0  ;;  %v3196_v7 = vld [vmem:[%s3845_s24 + $0x60] sm:$0xf] }
  0x68   : > { %3441 = vmatmul.mubr.msk.bf16.gmra.mrb[12].mxu0 %vm499_vm3, %v3136_v49  ;;  %v855_v49 = vrot.slane %v853_v20, 4  ;;  %v3003_v56 = vcombine.low %v4058_v30, %v4074_v62  ;;  %v819_v15 = vsel %vm4039_vm7, %v3013_v36, %v818_v61  ;;  %v822_v48 = vsel %vm4039_vm7, %v820_v44, %v821_v41  ;;  %v4326_v30 = vld [vmem:[%s3845_s24 + $0x20] sm:$0x1]  ;;  %v3181_v61 = vld [vmem:[%s3845_s24 + $0x24] sm:$0xf] }
  0x69   : > { %3446 = vmatprep.mubr.msk.bf16.mxu0 %vm499_vm3, %v3686_v16  ;;  %v3019_v34 = vrot.slane %v795_v1, 9  ;;  %v2099_v16 = vrot.slane %v2097_v24, 4  ;;  %v2102_v53 = vrot.slane %v2100_v8, 5  ;;  %v4332_v11 = vrot.slane %v2106_v40, 5  ;;  %v796_v44 = vld [vmem:[%s3845_s24 + $0x54] sm:$0xe] }
  0x6a   : > { %3361 = vmatmul.mubr.msk.bf16.gmra.mrb[4].mxu1 %vm499_vm3, %v3000_v51  ;;  %v4322_v51 = vsel %vm4039_vm7, %v855_v49, %v856_v21  ;;  %v2112_v19 = vrot.slane %v2110_v43, 4  ;;  %v863_v39 = vrot.slane %v4078_v55, 5  ;;  %v3004_v10 = vcombine.low %v4096_v28, %v4112_v37  ;;  %v3184_v55 = vld [vmem:[%s3845_s24 + $0x30] sm:$0xf]  ;;  %v3692_v20 = vld [vmem:[%s3845_s24 + $0x3c] sm:$0xff]   ;;  %v3693_v1 = vld [vmem:[%s3845_s24 + $0x48] sm:$0xff]  }
  0x6b   : > { %3364 = vmatprep.mubr.msk.bf16.mxu1 %vm499_vm3, %v3001_v52  ;;  %v860_v52 = vrot.slane %v4074_v62, 5  ;;  %v3022_v41 = vcombine.low %v819_v15, %v822_v48  ;;  %v2116_v36 = vshll.u32 %v4326_v30, 16  ;;  %v2103_v21 = vor.u32 %v2102_v53, %v2099_v16  ;;  %v4358_v8 = vld [vmem:[%s3845_s24 + $0x34] sm:$0xf] }
  0x6c   : > { %v2113_v28 = vor.u32 %v2112_v19, %v4332_v11  ;;  %v2130_v40 = vshll.u32 %v4339_v14, 16  ;;  %v2134_v43 = vshrl.u32 %v4339_v14, 16  ;;  %v867_v15 = vrot.slane %v4112_v37, 5 }
  0x6d   : > { %v4343_v62 = vsel %vm4039_vm7, %v3019_v34, %v860_v52  ;;  %v862_v26 = vrot.slane %v860_v52, 4  ;;  %v2154_v48 = vshll.u32 %v4358_v8, 16  ;;  %v2158_v34 = vshrl.u32 %v4358_v8, 16 }
  0x6e   : > { %v870_v16 = vrot.slane %v4121_v54, 5  ;;  %v2104_v53 = vrot.slane %v2103_v21, 4  ;;  %v2118_v52 = vrot.slane %v2116_v36, 5  ;;  %v2114_v37 = vrot.slane %v2113_v28, 4  ;;  %v4381_v36 = vld [vmem:[%s3845_s24 + $0x2c] sm:$0x1] }
  0x6f   : > { %v4355_v24 = vsel %vm4039_vm7, %v862_v26, %v863_v39  ;;  %v4377_v26 = vrot.slane %v2130_v40, 5  ;;  %v4388_v21 = vld [vmem:[%s3845_s24 + $0x38] sm:$0x1]  ;;  %v1122_v28 = vsel %vm524_vm0, %v4219_v6, 0 }
  0x70   : > { %3447 = vmatmul.mubr.msk.bf16.vlgmr.msra.gmra.mrb[0].mxu0 %vm499_vm3, %v3688_v57  ;;  %v2124_v57 = vshll.u32 %v3181_v61, 16  ;;  %v3694_v40 = vld [vmem:[%s3845_s24 + $0x54] sm:$0xff]  }
  0x71   : > { %3463 = vmatpush3.bf16.msra.mxu0 %v2339_v18  ;;  %3450 = vmatprep.mubr.msk.bf16.mxu0 %vm499_vm3, %v3690_v4  ;;  %v2145_v18 = vshrl.u32 %v3184_v55, 16  ;;  %v3020_v4 = vrot.slane %v796_v44, 9 }
  0x72   : > { %3365 = vmatmul.mubr.msk.bf16.gmra.mrb[8].mxu1 %vm499_vm3, %v3002_v22  ;;  %3637 = vmatprep.subr.msk.bf16.mxu0 %vm524_vm0, %v4318_v38  ;;  %v2121_v22 = vshrl.u32 %v3181_v61, 16  ;;  %v869_v61 = vrot.slane %v867_v15, 4  ;;  %v2126_v54 = vrot.slane %v2124_v57, 5  ;;  %v2160_v57 = vrot.slane %v2158_v34, 4  ;;  %v3190_v34 = vld [vmem:[%s3845_s24 + $0x48] sm:$0xf] }
  0x73   : > { %3368 = vmatprep.mubr.msk.bf16.mxu1 %vm499_vm3, %v3003_v56  ;;  %v2148_v56 = vshll.u32 %v3184_v55, 16  ;;  %v4373_v19 = vsel %vm4039_vm7, %v3020_v4, %v867_v15  ;;  %v2136_v55 = vrot.slane %v2134_v43, 4  ;;  %v2147_v44 = vrot.slane %v2145_v18, 4  ;;  %v4399_v43 = vld [vmem:[%s3845_s24 + $0x40] sm:$0xf] }
  0x74   : > { %v2123_v39 = vrot.slane %v2121_v22, 4  ;;  %v4390_v22 = vrot.slane %v2154_v48, 5  ;;  %v3695_v18 = vld [vmem:[%s3845_s24 + $0x60] sm:$0xff]   ;;  %v2119_v4 = vsel %vm3884_vm4, %v2114_v37, %v2118_v52  ;;  %v2140_v48 = vshll.u32 %v4381_v36, 16 }
  0x75   : > { %v2193_v52 = vshrl.u32 %v3190_v34, 16  ;;  %v2196_v37 = vshll.u32 %v3190_v34, 16 }
  0x76   : > { %v2127_v15 = vor.u32 %v2126_v54, %v2123_v39  ;;  %v2161_v63 = vor.u32 %v2160_v57, %v4390_v22  ;;  %v3193_v57 = vld [vmem:[%s3845_s24 + $0x54] sm:$0xf] }
  0x77   : > { %v2195_v50 = vrot.slane %v2193_v52, 4  ;;  %v2220_v34 = vshll.u32 %v3193_v57, 16 }
  0x78   : > { %3451 = vmatmul.mubr.msk.bf16.gmra.mrb[4].mxu0 %vm499_vm3, %v3692_v20  ;;  %v2150_v20 = vrot.slane %v2148_v56, 5  ;;  %v2109_v56 = vsel %vm3884_vm4, %v2104_v53, %v4332_v11  ;;  %v2178_v11 = vshll.u32 %v4399_v43, 16  ;;  %v2182_v53 = vshrl.u32 %v4399_v43, 16 }
  0x79   : > { %3454 = vmatprep.mubr.msk.bf16.mxu0 %vm499_vm3, %v3693_v1  ;;  %v2164_v1 = vshll.u32 %v4388_v21, 16  ;;  %v3203_v54 = vcombine.low %v2109_v56, %v2119_v4  ;;  %v2162_v56 = vrot.slane %v2161_v63, 4  ;;  %v4446_v63 = vld [vmem:[%s3845_s24 + $0x50] sm:$0x1] }
  0x7a   : > { %3369 = vmatmul.mubr.msk.bf16.gmra.mrb[12].mxu1 %vm499_vm3, %v3004_v10  ;;  %v4385_v10 = vsel %vm4039_vm7, %v869_v61, %v870_v16  ;;  %v4410_v16 = vld [vmem:[%s3845_s24 + $0x4c] sm:$0xf]  ;;  %v2137_v61 = vor.u32 %v2136_v55, %v4377_v26  ;;  %v2151_v6 = vor.u32 %v2150_v20, %v2147_v44  ;;  %v2128_v55 = vrot.slane %v2127_v15, 4 }
  0x7b   : > { %3374 = vmatprep.mubr.msk.bf16.mxu1 %vm499_vm3, %v3022_v41  ;;  %v3187_v41 = vld [vmem:[%s3845_s24 + $0x3c] sm:$0xf]  ;;  %v2202_v39 = vshll.u32 %v4410_v16, 16  ;;  %v2142_v44 = vrot.slane %v2140_v48, 5  ;;  %v2206_v20 = vshrl.u32 %v4410_v16, 16  ;;  %v2166_v33 = vrot.slane %v2164_v1, 5 }
  0x7c   : > { %v2169_v49 = vshrl.u32 %v3187_v41, 16  ;;  %v2172_v13 = vshll.u32 %v3187_v41, 16  ;;  %v2138_v41 = vrot.slane %v2137_v61, 4  ;;  %v4434_v15 = vrot.slane %v2178_v11, 5 }
  0x7d   : > { %v2184_v48 = vrot.slane %v2182_v53, 4  ;;  %v2217_v1 = vshrl.u32 %v3193_v57, 16  ;;  %v1391_v11 = vshll.u32 %v4160_v59, 16  ;;  %v2133_v53 = vsel %vm3884_vm4, %v2128_v55, %v4377_v26 }
  0x7e   : > { %v2171_v25 = vrot.slane %v2169_v49, 4  ;;  %v2174_v4 = vrot.slane %v2172_v13, 5  ;;  %v4443_v49 = vrot.slane %v2202_v39, 5  ;;  %v2208_v13 = vrot.slane %v2206_v20, 4 }
  0x7f   : > { %v2143_v52 = vsel %vm3884_vm4, %v2138_v41, %v2142_v44  ;;  %v2185_v57 = vor.u32 %v2184_v48, %v4434_v15  ;;  %v2167_v26 = vsel %vm3884_vm4, %v2162_v56, %v2166_v33  ;;  %v2219_v44 = vrot.slane %v2217_v1, 4  ;;  %v4484_v56 = vld [vmem:[%s3845_s24 + $0x5c] sm:$0x1] }
  0x80   : > { %3455 = vmatmul.mubr.msk.bf16.gmra.mrb[8].mxu0 %vm499_vm3, %v3694_v40  ;;  %v2152_v40 = vrot.slane %v2151_v6, 4  ;;  %v2175_v20 = vor.u32 %v2174_v4, %v2171_v25  ;;  %v2209_v41 = vor.u32 %v2208_v13, %v4443_v49  ;;  %v4889_v33 = vcombine.low %v4270_v2, %v4285_v9 }
  0x81   : > { %3458 = vmatprep.mubr.msk.bf16.mxu0 %vm499_vm3, %v3695_v18  ;;  %v3696_v18 = vld [vmem:[%s3845_s24 + $0x6c] sm:$0xff]   ;;  %v2241_v4 = vshrl.u32 %v3196_v7, 16  ;;  %v1395_v48 = vshrl.u32 %v4160_v59, 16  ;;  %v3204_v13 = vcombine.low %v2133_v53, %v2143_v52 }
  0x82   : > { %3375 = vmatmul.mubr.msk.bf16.vlgmr.msra.gmra.mrb[0].mxu1 %vm499_vm3, %v3023_v27  ;;  %v4431_v27 = vld [vmem:[%s3845_s24 + $0x58] sm:$0xf]  ;;  %v2157_v39 = vsel %vm3884_vm4, %v2152_v40, %v4390_v22  ;;  %v4888_v22 = vcombine.low %v4264_v58, %v4276_v23  ;;  %v2222_v40 = vrot.slane %v2220_v34, 5  ;;  %v2244_v58 = vshll.u32 %v3196_v7, 16 }
  0x83   : > { %3391 = vmatpush3.bf16.msra.mxu1 %v1122_v28  ;;  %3378 = vmatprep.mubr.msk.bf16.mxu1 %vm499_vm3, %v3024_v29  ;;  %v3705_v28 = vld [vmem:[%s4871_s1 + $0x10] sm:$0xf]  ;;  %v2198_v29 = vrot.slane %v2196_v37, 5  ;;  %v2226_v61 = vshll.u32 %v4431_v27, 16  ;;  %v2230_v6 = vshrl.u32 %v4431_v27, 16  ;;  %v2593_v37 = vsel %vm524_vm0, %v4318_v38, 0 }
  0x84   : > { %3633 = vmatprep.subr.msk.bf16.mxu1 %vm524_vm0, %v3705_v28  ;;  %v2188_v28 = vshll.u32 %v4441_v46, 16  ;;  %v2212_v38 = vshll.u32 %v4446_v63, 16  ;;  %v2250_v23 = vshll.u32 %v4465_v60, 16  ;;  %v3205_v34 = vcombine.low %v2157_v39, %v2167_v26 }
  0x85   : > { %v2199_v55 = vor.u32 %v2198_v29, %v2195_v50  ;;  %v4477_v25 = vrot.slane %v2226_v61, 5  ;;  %v2176_v50 = vrot.slane %v2175_v20, 4  ;;  %v2186_v29 = vrot.slane %v2185_v57, 4 }
  0x86   : > { %v2190_v1 = vrot.slane %v2188_v28, 5  ;;  %v2214_v9 = vrot.slane %v2212_v38, 5  ;;  %v2210_v61 = vrot.slane %v2209_v41, 4  ;;  %v2236_v7 = vshll.u32 %v4484_v56, 16  ;;  %v4505_v28 = vld [vmem:[%s3845_s24 + $0x68] sm:$0x1] }
  0x87   : > { %v2200_v2 = vrot.slane %v2199_v55, 4  ;;  %v2243_v35 = vrot.slane %v2241_v4, 4  ;;  %v4495_v59 = vrot.slane %v2250_v23, 5  ;;  %v4497_v57 = vrot.slane %v1391_v11, 5 }
  0x88   : > { %3459 = vmatmul.mubr.msk.bf16.gmra.mrb[12].mxu0 %vm499_vm3, %v3696_v18  ;;  %v2232_v18 = vrot.slane %v2230_v6, 4  ;;  %v2223_v6 = vor.u32 %v2222_v40, %v2219_v44  ;;  %v1397_v53 = vrot.slane %v1395_v48, 4  ;;  %v2181_v52 = vsel %vm3884_vm4, %v2176_v50, %v4434_v15 }
  0x89   : > { %3464 = vmatprep.mubr.msk.bf16.mxu0 %vm499_vm3, %v3203_v54  ;;  %v2254_v54 = vshrl.u32 %v4465_v60, 16  ;;  %v2246_v60 = vrot.slane %v2244_v58, 5  ;;  %v2191_v39 = vsel %vm3884_vm4, %v2186_v29, %v2190_v1  ;;  %v2274_v38 = vshll.u32 %v4493_v12, 16  ;;  %v3697_v1 = vld [vmem:[%s3845_s24 + $0xc] sm:$0xff]  }
  0x8a   : > { %3379 = vmatmul.mubr.msk.bf16.gmra.mrb[4].mxu1 %vm499_vm3, %v4888_v22  ;;  %v2233_v22 = vor.u32 %v2232_v18, %v4477_v25  ;;  %v2278_v44 = vshrl.u32 %v4493_v12, 16  ;;  %v4890_v11 = vcombine.low %v4304_v47, %v4322_v51  ;;  %v2205_v15 = vsel %vm3884_vm4, %v2200_v2, %v4443_v49 }
  0x8b   : > { %3382 = vmatprep.mubr.msk.bf16.mxu1 %vm499_vm3, %v4889_v33  ;;  %v3199_v33 = vld [vmem:[%s3845_s24 + $0x6c] sm:$0xf]  ;;  %v2256_v20 = vrot.slane %v2254_v54, 4  ;;  %v2215_v41 = vsel %vm3884_vm4, %v2210_v61, %v2214_v9  ;;  %v2224_v40 = vrot.slane %v2223_v6, 4  ;;  %v2238_v18 = vrot.slane %v2236_v7, 5 }
  0x8c   : > { %v2265_v26 = vshrl.u32 %v3199_v33, 16  ;;  %v2268_v55 = vshll.u32 %v3199_v33, 16  ;;  %v4891_v4 = vcombine.low %v4343_v62, %v4355_v24  ;;  %v2234_v47 = vrot.slane %v2233_v22, 4  ;;  %v3086_v22 = vld [vmem:[%s3845_s24 + $0x48] sm:$0xf] }
  0x8d   : > { %v2247_v51 = vor.u32 %v2246_v60, %v2243_v35  ;;  %v2260_v49 = vshll.u32 %v4505_v28, 16  ;;  %v1398_v58 = vor.u32 %v1397_v53, %v4497_v57  ;;  %v1401_v23 = vshll.u32 %v4163_v0, 16  ;;  %v4534_v60 = vld [vmem:[%s3845_s24 + $0x74] sm:$0x1] }
  0x8e   : > { %v3206_v54 = vcombine.low %v2181_v52, %v2191_v39  ;;  %v2267_v48 = vrot.slane %v2265_v26, 4  ;;  %v2270_v62 = vrot.slane %v2268_v55, 5  ;;  %v4528_v24 = vrot.slane %v2274_v38, 5 }
  0x8f   : > { %v2280_v50 = vrot.slane %v2278_v44, 4  ;;  %v3207_v29 = vcombine.low %v2205_v15, %v2215_v41  ;;  %v2229_v35 = vsel %vm3884_vm4, %v2224_v40, %v4477_v25  ;;  %v2248_v0 = vrot.slane %v2247_v51, 4  ;;  %v3699_v51 = vld [vmem:[%s3845_s24 + $0x24] sm:$0xff]  }
  0x90   : > { %3465 = vmatmul.mubr.msk.bf16.vlgmr.msra.gmra.mrb[0].mxu0 %vm499_vm3, %v3204_v13  ;;  %v2239_v13 = vsel %vm3884_vm4, %v2234_v47, %v2238_v18  ;;  %v2262_v2 = vrot.slane %v2260_v49, 5  ;;  %v1399_v9 = vrot.slane %v1398_v58, 4  ;;  %v1403_v61 = vrot.slane %v1401_v23, 5 }
  0x91   : > { %3481 = vmatpush3.bf16.msra.mxu0 %v2593_v37  ;;  %3468 = vmatprep.mubr.msk.bf16.mxu0 %vm499_vm3, %v3205_v34  ;;  %v2257_v37 = vor.u32 %v2256_v20, %v4495_v59  ;;  %v2488_v6 = vrot.slane %v4292_v31, 5  ;;  %v2271_v7 = vor.u32 %v2270_v62, %v2267_v48  ;;  %v2281_v33 = vor.u32 %v2280_v50, %v4528_v24  ;;  %v3219_v20 = vld [vmem:[%s3845_s24 + $0x18] sm:$0xe]  ;;  %v3221_v62 = vld [vmem:[%s3845_s24 + $0x30] sm:$0xe] }
  0x92   : > { %3383 = vmatmul.mubr.msk.bf16.gmra.mrb[8].mxu1 %vm499_vm3, %v4890_v11  ;;  %v2284_v25 = vshll.u32 %v4534_v60, 16  ;;  %v4892_v53 = vcombine.low %v4373_v19, %v4385_v10  ;;  %v3208_v52 = vcombine.low %v2229_v35, %v2239_v13  ;;  %v2253_v31 = vsel %vm3884_vm4, %v2248_v0, %v4495_v59  ;;  %v3698_v59 = vld [vmem:[%s3845_s24 + $0x18] sm:$0xff]  }
  0x93   : > { %3386 = vmatprep.mubr.msk.bf16.mxu1 %vm499_vm3, %v4891_v4  ;;  %v2258_v34 = vrot.slane %v2257_v37, 4  ;;  %v1382_v26 = vshrl.u32 %v3086_v22, 16  ;;  %v1385_v55 = vshll.u32 %v3086_v22, 16  ;;  %v3227_v19 = vrot.slane %v3219_v20, 9  ;;  %v3083_v4 = vld [vmem:[%s3845_s24 + $0x3c] sm:$0xf] }
  0x94   : > { %v2490_v10 = vrot.slane %v2488_v6, 4  ;;  %v2491_v38 = vrot.slane %v4326_v30, 5  ;;  %v1404_v44 = vsel %vm3884_vm4, %v1399_v9, %v1403_v61  ;;  %v2272_v11 = vrot.slane %v2271_v7, 4  ;;  %v3220_v30 = vld [vmem:[%s3845_s24 + $0x24] sm:$0xe]  ;;  %v3700_v22 = vld [vmem:[%s3845_s24 + $0x30] sm:$0xff]  }
  0x95   : > { %v2263_v39 = vsel %vm3884_vm4, %v2258_v34, %v2262_v2  ;;  %v2282_v15 = vrot.slane %v2281_v33, 4  ;;  %v2286_v41 = vrot.slane %v2284_v25, 5  ;;  %v1384_v40 = vrot.slane %v1382_v26, 4  ;;  %v3701_v20 = vld [vmem:[%s3845_s24 + $0x3c] sm:$0xff]   ;;  %v3089_v26 = vld [vmem:[%s3845_s24 + $0x54] sm:$0xf] }
  0x96   : > { %v3209_v18 = vcombine.low %v2253_v31, %v2263_v39  ;;  %v1387_v47 = vrot.slane %v1385_v55, 5  ;;  %v2489_v37 = vsel %vm4039_vm7, %v3227_v19, %v2488_v6  ;;  %v2492_v49 = vsel %vm4039_vm7, %v2490_v10, %v2491_v38  ;;  %v3223_v38 = vld [vmem:[%s3845_s24 + $0x48] sm:$0xe] }
  0x97   : > { %v2495_v58 = vrot.slane %v4339_v14, 5  ;;  %v2287_v48 = vsel %vm3884_vm4, %v2282_v15, %v2286_v41  ;;  %v2502_v50 = vrot.slane %v4358_v8, 5  ;;  %v1361_v35 = vshll.u32 %v3083_v4, 16 }
  0x98   : > { %3469 = vmatmul.mubr.msk.bf16.gmra.mrb[4].mxu0 %vm499_vm3, %v3206_v54  ;;  %v1388_v23 = vor.u32 %v1387_v47, %v1384_v40  ;;  %v2277_v54 = vsel %vm3884_vm4, %v2272_v11, %v4528_v24  ;;  %v1367_v14 = vshll.u32 %v4142_v42, 16  ;;  %v3228_v24 = vrot.slane %v3220_v30, 9 }
  0x99   : > { %3472 = vmatprep.mubr.msk.bf16.mxu0 %vm499_vm3, %v3207_v29  ;;  %v1358_v29 = vshrl.u32 %v3083_v4, 16  ;;  %v2498_v8 = vrot.slane %v4381_v36, 5  ;;  %v3236_v0 = vcombine.low %v2489_v37, %v2492_v49  ;;  %v2497_v34 = vrot.slane %v2495_v58, 4  ;;  %v3702_v37 = vld [vmem:[%s3845_s24 + $0x48] sm:$0xff]  }
  0x9a   : > { %3387 = vmatmul.mubr.msk.bf16.gmra.mrb[12].mxu1 %vm499_vm3, %v4892_v53  ;;  %v1389_v13 = vrot.slane %v1388_v23, 4  ;;  %v3229_v2 = vrot.slane %v3221_v62, 9  ;;  %v3210_v61 = vcombine.low %v2277_v54, %v2287_v48  ;;  %v2504_v6 = vrot.slane %v2502_v50, 4  ;;  %v3703_v23 = vld [vmem:[%s3845_s24 + $0x54] sm:$0xff]  }
  0x9b   : > { %3392 = vmatprep.mubr.msk.bf16.mxu1 %vm499_vm3, %v3697_v1  ;;  %v1371_v1 = vshrl.u32 %v4142_v42, 16  ;;  %v2505_v42 = vrot.slane %v4388_v21, 5  ;;  %v1360_v7 = vrot.slane %v1358_v29, 4  ;;  %v1363_v33 = vrot.slane %v1361_v35, 5 }
  0x9c   : > { %v1394_v9 = vsel %vm3884_vm4, %v1389_v13, %v4497_v57  ;;  %v4590_v25 = vrot.slane %v1367_v14, 5  ;;  %v2496_v53 = vsel %vm4039_vm7, %v3228_v24, %v2495_v58  ;;  %v2499_v57 = vsel %vm4039_vm7, %v2497_v34, %v2498_v8  ;;  %v3224_v24 = vld [vmem:[%s3845_s24 + $0x54] sm:$0xe]  ;;  %v4893_v8 = vld [vmem:[#allocation5_spill] sm:$0xff] }
  0x9d   : > { %v1373_v36 = vrot.slane %v1371_v1, 4  ;;  %v2503_v21 = vsel %vm4039_vm7, %v3229_v2, %v2502_v50  ;;  %v2509_v31 = vrot.slane %v4399_v43, 5  ;;  %v1377_v39 = vshll.u32 %v4145_v45, 16  ;;  %v3092_v50 = vld [vmem:[%s3845_s24 + $0x60] sm:$0xf] }
  0x9e   : > { %v2506_v55 = vsel %vm4039_vm7, %v2504_v6, %v2505_v42  ;;  %v1364_v19 = vor.u32 %v1363_v33, %v1360_v7  ;;  %v3237_v43 = vcombine.low %v2496_v53, %v2499_v57  ;;  %v2512_v11 = vrot.slane %v4441_v46, 5  ;;  %v4895_v33 = vld [vmem:[#allocation2_spill] sm:$0xff] }
  0x9f   : > { %v1374_v10 = vor.u32 %v1373_v36, %v4590_v25  ;;  %v1406_v15 = vshrl.u32 %v3089_v26, 16  ;;  %v1409_v41 = vshll.u32 %v3089_v26, 16  ;;  %v1415_v40 = vshll.u32 %v4171_v17, 16 }
  0xa0   : > { %3473 = vmatmul.mubr.msk.bf16.gmra.mrb[8].mxu0 %vm499_vm3, %v3208_v52  ;;  %v3222_v52 = vld [vmem:[%s3845_s24 + $0x3c] sm:$0xe]  ;;  %v2511_v4 = vrot.slane %v2509_v31, 4  ;;  %v1379_v47 = vrot.slane %v1377_v39, 5  ;;  %v2519_v58 = vrot.slane %v4446_v63, 5  ;;  %v2523_v63 = vrot.slane %v4431_v27, 5 }
  0xa1   : > { %3476 = vmatprep.mubr.msk.bf16.mxu0 %vm499_vm3, %v3209_v18  ;;  %v3230_v45 = vrot.slane %v3222_v52, 9  ;;  %v3238_v18 = vcombine.low %v2503_v21, %v2506_v55  ;;  %v1375_v49 = vrot.slane %v1374_v10, 4  ;;  %v1408_v46 = vrot.slane %v1406_v15, 4  ;;  %v3225_v27 = vld [vmem:[%s3845_s24 + $0x60] sm:$0xe] }
  0xa2   : > { %3393 = vmatmul.mubr.msk.bf16.vlgmr.msra.gmra.mrb[0].mxu1 %vm499_vm3, %v3698_v59  ;;  %v1419_v59 = vshrl.u32 %v4171_v17, 16  ;;  %v1411_v54 = vrot.slane %v1409_v41, 5  ;;  %v1417_v48 = vrot.slane %v1415_v40, 5  ;;  %v2513_v29 = vsel %vm4039_vm7, %v2511_v4, %v2512_v11  ;;  %v3704_v52 = vld [vmem:[%s3845_s24 + $0x60] sm:$0xff]  }
  0xa3   : > { %3499 = vmatpush3.bf16.msra.mxu1 %v3814_v3  ;;  %3396 = vmatprep.mubr.msk.bf16.mxu1 %vm499_vm3, %v3699_v51  ;;  %v4587_v3 = vcombine.low %v1394_v9, %v1404_v44  ;;  %v2516_v44 = vrot.slane %v4410_v16, 5  ;;  %v3231_v51 = vrot.slane %v3223_v38, 9  ;;  %v1365_v16 = vrot.slane %v1364_v19, 4  ;;  %v4894_v9 = vld [vmem:[#allocation3_spill] sm:$0xff] }
  0xa4   : > { %v1421_v62 = vrot.slane %v1419_v59, 4  ;;  %v2510_v17 = vsel %vm4039_vm7, %v3230_v45, %v2509_v31  ;;  %v1380_v1 = vsel %vm3884_vm4, %v1375_v49, %v1379_v47  ;;  %v1430_v34 = vshrl.u32 %v3092_v50, 16  ;;  %v3226_v47 = vld [vmem:[%s3845_s24 + $0x6c] sm:$0xe] }
  0xa5   : > { %v2518_v30 = vrot.slane %v2516_v44, 4  ;;  %v2517_v35 = vsel %vm4039_vm7, %v3231_v51, %v2516_v44  ;;  %v1370_v14 = vsel %vm3884_vm4, %v1365_v16, %v4590_v25  ;;  %v1433_v2 = vshll.u32 %v3092_v50, 16 }
  0xa6   : > { %v1443_v6 = vshrl.u32 %v4894_v9, 16  ;;  %v3239_v42 = vcombine.low %v2510_v17, %v2513_v29  ;;  %v1422_v7 = vor.u32 %v1421_v62, %v1417_v48  ;;  %v1425_v25 = vshll.u32 %v4895_v33, 16 }
  0xa7   : > { %v2520_v13 = vsel %vm4039_vm7, %v2518_v30, %v2519_v58  ;;  %v2525_v53 = vrot.slane %v2523_v63, 4  ;;  %v2526_v57 = vrot.slane %v4484_v56, 5  ;;  %v3100_v21 = vcombine.low %v1370_v14, %v1380_v1 }
  0xa8   : > { %3477 = vmatmul.mubr.msk.bf16.gmra.mrb[12].mxu0 %vm499_vm3, %v3210_v61  ;;  %v1439_v61 = vshll.u32 %v4894_v9, 16  ;;  %v3240_v36 = vcombine.low %v2517_v35, %v2520_v13  ;;  %v3233_v31 = vrot.slane %v3225_v27, 9  ;;  %v2533_v26 = vrot.slane %v4505_v28, 5 }
  0xa9   : > { %3482 = vmatprep.mubr.msk.bf16.mxu0 %vm499_vm3, %v3236_v0  ;;  %v2530_v0 = vrot.slane %v4893_v8, 5  ;;  %v1432_v55 = vrot.slane %v1430_v34, 4  ;;  %v1435_v19 = vrot.slane %v1433_v2, 5  ;;  %v1445_v38 = vrot.slane %v1443_v6, 4 }
  0xaa   : > { %3397 = vmatmul.mubr.msk.bf16.gmra.mrb[4].mxu1 %vm499_vm3, %v3700_v22  ;;  %v1412_v22 = vor.u32 %v1411_v54, %v1408_v46  ;;  %v1441_v10 = vrot.slane %v1439_v61, 5  ;;  %v1427_v45 = vrot.slane %v1425_v25, 5  ;;  %v2527_v28 = vsel %vm4039_vm7, %v2525_v53, %v2526_v57 }
  0xab   : > { %3400 = vmatprep.mubr.msk.bf16.mxu1 %vm499_vm3, %v3701_v20  ;;  %v3232_v20 = vrot.slane %v3224_v24, 9  ;;  %v2532_v39 = vrot.slane %v2530_v0, 4  ;;  %v2531_v11 = vsel %vm4039_vm7, %v3233_v31, %v2530_v0  ;;  %v2537_v15 = vrot.slane %v4493_v12, 5 }
  0xac   : > { %v1413_v44 = vrot.slane %v1412_v22, 4  ;;  %v1436_v40 = vor.u32 %v1435_v19, %v1432_v55  ;;  %v1446_v59 = vor.u32 %v1445_v38, %v1441_v10  ;;  %v3234_v30 = vrot.slane %v3226_v47, 9 }
  0xad   : > { %v2524_v56 = vsel %vm4039_vm7, %v3232_v20, %v2523_v63  ;;  %v2534_v41 = vsel %vm4039_vm7, %v2532_v39, %v2533_v26  ;;  %v2539_v12 = vrot.slane %v2537_v15, 4  ;;  %v2540_v58 = vrot.slane %v4534_v60, 5 }
  0xae   : > { %v1418_v51 = vsel %vm3884_vm4, %v1413_v44, %v1417_v48  ;;  %v3241_v16 = vcombine.low %v2524_v56, %v2527_v28  ;;  %v3242_v49 = vcombine.low %v2531_v11, %v2534_v41  ;;  %v1437_v46 = vrot.slane %v1436_v40, 4 }
  0xaf   : > { %v1447_v54 = vrot.slane %v1446_v59, 4  ;;  %v2538_v48 = vsel %vm4039_vm7, %v3234_v30, %v2537_v15  ;;  %v2541_v50 = vsel %vm4039_vm7, %v2539_v12, %v2540_v58 }
  0xb0   : > { %3483 = vmatmul.mubr.msk.bf16.vlgmr.msra.gmra.mrb[0].mxu0 %vm499_vm3, %v3237_v43  ;;  %v1423_v43 = vrot.slane %v1422_v7, 4  ;;  %v1442_v60 = vsel %vm3884_vm4, %v1437_v46, %v1441_v10  ;;  %v3243_v29 = vcombine.low %v2538_v48, %v2541_v50 }
  0xb1   : > { %3486 = vmatprep.mubr.msk.bf16.mxu0 %vm499_vm3, %v3238_v18  ;;  %v4896_v18 = vld [vmem:[#allocation4_spill] sm:$0xff] }
  0xb2   : > { %3401 = vmatmul.mubr.msk.bf16.gmra.mrb[8].mxu1 %vm499_vm3, %v3702_v37  ;;  %v1449_v4 = vshll.u32 %v4896_v18, 16  ;;  %v1428_v37 = vsel %vm3884_vm4, %v1423_v43, %v1427_v45 }
  0xb3   : > { %3404 = vmatprep.mubr.msk.bf16.mxu1 %vm499_vm3, %v3703_v23  ;;  %v3102_v23 = vcombine.low %v1418_v51, %v1428_v37  ;;  %v3746_v37 = vmov (!%p3252_p8), 0.0  }
  0xb4   : > { %v1451_v62 = vrot.slane %v1449_v4, 5  ;;  %2729 = vst.msk [vmem:[%s3833_s8] sm:$0x1] (!%p3252_p8), %vm2728_vm8, %v3746_v37  ;;  %2730 = vst.msk [vmem:[%s3840_s12] sm:$0x1] (!%p3252_p8), %vm2728_vm8, %v3746_v37 }
  0xb6   : > { %v1452_v17 = vsel %vm3884_vm4, %v1447_v54, %v1451_v62 }
  0xb7   : > { %v3103_v35 = vcombine.low %v1442_v60, %v1452_v17 }
  0xb8   : > { %3487 = vmatmul.mubr.msk.bf16.gmra.mrb[4].mxu0 %vm499_vm3, %v3239_v42 }
  0xb9   : > { %3490 = vmatprep.mubr.msk.bf16.mxu0 %vm499_vm3, %v3240_v36 }
  0xba   : > { %3405 = vmatmul.mubr.msk.bf16.gmra.mrb[12].mxu1 %vm499_vm3, %v3704_v52 }
  0xbb   : > { %3418 = vmatprep.mubr.msk.bf16.mxu1 %vm499_vm3, %v3100_v21 }
  0xc0   : > { %3491 = vmatmul.mubr.msk.bf16.gmra.mrb[8].mxu0 %vm499_vm3, %v3241_v16 }
  0xc1   : > { %3494 = vmatprep.mubr.msk.bf16.mxu0 %vm499_vm3, %v3242_v49 }
  0xc2   : > { %3419 = vmatmul.mubr.msk.bf16.vlgmr.msra.gmra.mrb[8].mxu1 %vm499_vm3, %v4587_v3 }
  0xc3   : > { %3422 = vmatprep.mubr.msk.bf16.mxu1 %vm499_vm3, %v3102_v23 }
  0xc8   : > { %3495 = vmatmul.mubr.msk.bf16.gmra.mrb[12].mxu0 %vm499_vm3, %v3243_v29 }
  0xca   : > { %3423 = vmatmul.mubr.msk.bf16.gmra.mrb[12].mxu1 %vm499_vm3, %v3103_v35 }
 0x175   : > { %v3394_v3 = vpop.f32.mrb[0].mxu1 }
 0x176   : > { %v1158_v63 = vpop.f32.mrb[1].mxu1 }
 0x177   : > { %v3395_v5 = vpop.f32.mrb[2].mxu1 }
 0x178   : > { %v1161_v14 = vpop.f32.mrb[3].mxu1 }
 0x17d   : > { %v3398_v1 = vpop.f32.mrb[4].mxu1 }
 0x17e   : > { %v1174_v13 = vpop.f32.mrb[5].mxu1 }
 0x17f   : > { %v3399_v24 = vpop.f32.mrb[6].mxu1 }
 0x180   : > { %v1177_v32 = vpop.f32.mrb[7].mxu1 }
 0x183   : > { %v3484_v8 = vpop.f32.mrb[0].mxu0 }
 0x184   : > { %v4688_v0 = vadd.f32 %v3484_v8, %v3394_v3  ;;  %v2629_v27 = vpop.f32.mrb[1].mxu0 }
 0x185   : > { %v4690_v34 = vadd.f32 %v2629_v27, %v1158_v63  ;;  %v3485_v2 = vpop.f32.mrb[2].mxu0 }
 0x186   : > { %2710 = vst.msk [vmem:[%s4686_s26 + $0x10] sm:$0xff] %vm499_vm3, %v4688_v0  ;;  %v4695_v9 = vadd.f32 %v3485_v2, %v3395_v5  ;;  %v2632_v61 = vpop.f32.mrb[3].mxu0 }
 0x187   : > { %2708 = vst.msk [vmem:[%s4686_s26] sm:$0xff] %vm499_vm3, %v4690_v34  ;;  %v4700_v6 = vadd.f32 %v2632_v61, %v1161_v14 }
 0x188   : > { %2711 = vst.msk [vmem:[%s4686_s26 + $0x18] sm:$0xff] %vm499_vm3, %v4695_v9 }
 0x189   : > { %2709 = vst.msk [vmem:[%s4686_s26 + $0x8] sm:$0xff] %vm499_vm3, %v4700_v6 }
 0x18b   : > { %v3488_v42 = vpop.f32.mrb[4].mxu0 }
 0x18c   : > { %v4708_v22 = vadd.f32 %v3488_v42, %v3398_v1  ;;  %v2645_v7 = vpop.f32.mrb[5].mxu0 }
 0x18d   : > { %v4710_v33 = vadd.f32 %v2645_v7, %v1174_v13  ;;  %v3489_v25 = vpop.f32.mrb[6].mxu0 }
 0x18e   : > { %2714 = vst.msk [vmem:[%s4686_s26 + $0x30] sm:$0xff] %vm499_vm3, %v4708_v22  ;;  %v4715_v36 = vadd.f32 %v3489_v25, %v3399_v24  ;;  %v2648_v20 = vpop.f32.mrb[7].mxu0 }
 0x18f   : > { %2712 = vst.msk [vmem:[%s4686_s26 + $0x20] sm:$0xff] %vm499_vm3, %v4710_v33  ;;  %v4720_v53 = vadd.f32 %v2648_v20, %v1177_v32 }
 0x190   : > { %2715 = vst.msk [vmem:[%s4686_s26 + $0x38] sm:$0xff] %vm499_vm3, %v4715_v36 }
 0x191   : > { %2713 = vst.msk [vmem:[%s4686_s26 + $0x28] sm:$0xff] %vm499_vm3, %v4720_v53 }
 0x193   : > { %v3492_v57 = vpop.f32.mrb[8].mxu0 }
 0x194   : > { %v2661_v21 = vpop.f32.mrb[9].mxu0 }
 0x195   : > { %v3420_v52 = vpop.f32.mrb[8].mxu1  ;;  %v3493_v26 = vpop.f32.mrb[10].mxu0 }
 0x196   : > { %v4728_v31 = vadd.f32 %v3492_v57, %v3420_v52  ;;  %v1572_v39 = vpop.f32.mrb[9].mxu1  ;;  %v2664_v10 = vpop.f32.mrb[11].mxu0 }
 0x197   : > { %v4730_v55 = vadd.f32 %v2661_v21, %v1572_v39  ;;  %v3421_v19 = vpop.f32.mrb[10].mxu1 }
 0x198   : > { %2718 = vst.msk [vmem:[%s4686_s26 + $0x50] sm:$0xff] %vm499_vm3, %v4728_v31  ;;  %v4735_v38 = vadd.f32 %v3493_v26, %v3421_v19  ;;  %v1575_v44 = vpop.f32.mrb[11].mxu1 }
 0x199   : > { %2716 = vst.msk [vmem:[%s4686_s26 + $0x40] sm:$0xff] %vm499_vm3, %v4730_v55  ;;  %v4740_v43 = vadd.f32 %v2664_v10, %v1575_v44 }
 0x19a   : > { %2719 = vst.msk [vmem:[%s4686_s26 + $0x58] sm:$0xff] %vm499_vm3, %v4735_v38 }
 0x19b   : > { %2717 = vst.msk [vmem:[%s4686_s26 + $0x48] sm:$0xff] %vm499_vm3, %v4740_v43  ;;  %v3496_v45 = vpop.f32.mrb[12].mxu0 }
 0x19c   : > { %v2677_v28 = vpop.f32.mrb[13].mxu0 }
 0x19d   : > { %v3424_v56 = vpop.f32.mrb[12].mxu1  ;;  %v3497_v41 = vpop.f32.mrb[14].mxu0  ;;  %2727 = sbr.rel (%p3252_p8) target bundleno = 420 (0x1a4), region = 32 }
 0x19e   : > { %v4748_v11 = vadd.f32 %v3496_v45, %v3424_v56  ;;  %v1588_v15 = vpop.f32.mrb[13].mxu1  ;;  %v2680_v18 = vpop.f32.mrb[15].mxu0 }
 0x19f   : > { %v4750_v40 = vadd.f32 %v2677_v28, %v1588_v15  ;;  %v3425_v59 = vpop.f32.mrb[14].mxu1 }
 0x1a0   : > { %2722 = vst.msk [vmem:[%s4686_s26 + $0x70] sm:$0xff] %vm499_vm3, %v4748_v11  ;;  %v4755_v4 = vadd.f32 %v3497_v41, %v3425_v59  ;;  %v1591_v47 = vpop.f32.mrb[15].mxu1 }
 0x1a1   : > { %2720 = vst.msk [vmem:[%s4686_s26 + $0x60] sm:$0xff] %vm499_vm3, %v4750_v40  ;;  %v4760_v51 = vadd.f32 %v2680_v18, %v1591_v47 }
 0x1a2   : > { %2723 = vst.msk [vmem:[%s4686_s26 + $0x78] sm:$0xff] %vm499_vm3, %v4755_v4 }
 0x1a3   : > { %2721 = vst.msk [vmem:[%s4686_s26 + $0x68] sm:$0xff] %vm499_vm3, %v4760_v51 }
 0x1a4 PF: > { %v2732_v16 = vsel %vm499_vm3, %v4690_v34, 0.0  ;;  %v2733_v49 = vsel %vm499_vm3, %v4700_v6, 0.0  ;;  %v2735_v30 = vsel %vm499_vm3, %v4688_v0, 0.0  ;;  %v2737_v58 = vsel %vm499_vm3, %v4695_v9, 0.0 }
 0x1a5   : > { %v2734_v12 = vadd.f32 %v2733_v49, %v2732_v16  ;;  %v2739_v46 = vsel %vm499_vm3, %v4710_v33, 0.0  ;;  %v2773_v62 = vmul.f32 %v4690_v34, %v4690_v34  ;;  %v2774_v48 = vmul.f32 %v4700_v6, %v4700_v6 }
 0x1a6   : > { %v2741_v50 = vsel %vm499_vm3, %v4720_v53, 0.0  ;;  %v2775_v60 = vmul.f32 %v4688_v0, %v4688_v0  ;;  %v2776_v29 = vmul.f32 %v4695_v9, %v4695_v9  ;;  %v2743_v35 = vsel %vm499_vm3, %v4708_v22, 0.0 }
 0x1a7   : > { %v2736_v23 = vadd.f32 %v2735_v30, %v2734_v12  ;;  %v2777_v63 = vmul.f32 %v4710_v33, %v4710_v33  ;;  %v2789_v5 = vsel %vm499_vm3, %v2773_v62, 0.0  ;;  %v2790_v14 = vsel %vm499_vm3, %v2774_v48, 0.0 }
 0x1a8   : > { %v2745_v1 = vsel %vm499_vm3, %v4715_v36, 0.0  ;;  %v2791_v13 = vadd.f32 %v2790_v14, %v2789_v5  ;;  %v2792_v24 = vsel %vm499_vm3, %v2775_v60, 0.0  ;;  %v2778_v8 = vmul.f32 %v4720_v53, %v4720_v53 }
 0x1a9   : > { %v2738_v54 = vadd.f32 %v2737_v58, %v2736_v23  ;;  %v2794_v0 = vsel %vm499_vm3, %v2776_v29, 0.0  ;;  %v2747_v27 = vsel %vm499_vm3, %v4730_v55, 0.0  ;;  %v2779_v9 = vmul.f32 %v4708_v22, %v4708_v22 }
 0x1aa   : > { %v2793_v34 = vadd.f32 %v2792_v24, %v2791_v13  ;;  %v2796_v61 = vsel %vm499_vm3, %v2777_v63, 0.0  ;;  %v2749_v6 = vsel %vm499_vm3, %v4740_v43, 0.0  ;;  %v2780_v33 = vmul.f32 %v4715_v36, %v4715_v36  ;;  %v2731_v13 = vld [vmem:[%s3833_s8] sm:$0x1] }
 0x1ab   : > { %v2740_v17 = vadd.f32 %v2739_v46, %v2738_v54  ;;  %v2798_v25 = vsel %vm499_vm3, %v2778_v8, 0.0  ;;  %v2751_v20 = vsel %vm499_vm3, %v4728_v31, 0.0  ;;  %v2781_v22 = vmul.f32 %v4730_v55, %v4730_v55 }
 0x1ac   : > { %v2795_v42 = vadd.f32 %v2794_v0, %v2793_v34  ;;  %v2800_v52 = vsel %vm499_vm3, %v2779_v9, 0.0  ;;  %v2753_v21 = vsel %vm499_vm3, %v4735_v38, 0.0  ;;  %v2782_v36 = vmul.f32 %v4740_v43, %v4740_v43 }
 0x1ad   : > { %v2742_v3 = vadd.f32 %v2741_v50, %v2740_v17  ;;  %v2802_v19 = vsel %vm499_vm3, %v2780_v33, 0.0  ;;  %v2755_v10 = vsel %vm499_vm3, %v4750_v40, 0.0  ;;  %v2783_v55 = vmul.f32 %v4728_v31, %v4728_v31 }
 0x1ae   : > { %v2797_v53 = vadd.f32 %v2796_v61, %v2795_v42  ;;  %v2804_v56 = vsel %vm499_vm3, %v2781_v22, 0.0  ;;  %v2757_v28 = vsel %vm499_vm3, %v4760_v51, 0.0  ;;  %v2784_v43 = vmul.f32 %v4735_v38, %v4735_v38 }
 0x1af   : > { %v2744_v32 = vadd.f32 %v2743_v35, %v2742_v3  ;;  %v2806_v59 = vsel %vm499_vm3, %v2782_v36, 0.0  ;;  %v2759_v18 = vsel %vm499_vm3, %v4748_v11, 0.0  ;;  %v2785_v31 = vmul.f32 %v4750_v40, %v4750_v40 }
 0x1b0   : > { %v2799_v39 = vadd.f32 %v2798_v25, %v2797_v53  ;;  %v2808_v16 = vsel %vm499_vm3, %v2783_v55, 0.0  ;;  %v2761_v49 = vsel %vm499_vm3, %v4755_v4, 0.0  ;;  %v2786_v38 = vmul.f32 %v4760_v51, %v4760_v51 }
 0x1b1   : > { %v2746_v2 = vadd.f32 %v2745_v1, %v2744_v32  ;;  %v2810_v58 = vsel %vm499_vm3, %v2784_v43, 0.0  ;;  %v2787_v54 = vmul.f32 %v4748_v11, %v4748_v11  ;;  %v2812_v40 = vsel %vm499_vm3, %v2785_v31, 0.0 }
 0x1b2   : > { %v2801_v44 = vadd.f32 %v2800_v52, %v2799_v39  ;;  %v2788_v50 = vmul.f32 %v4755_v4, %v4755_v4  ;;  %v2814_v60 = vsel %vm499_vm3, %v2786_v38, 0.0  ;;  %vm2770_vm9 = vcmask 57344  }
 0x1b3   : > { %v2748_v7 = vadd.f32 %v2747_v27, %v2746_v2  ;;  %v2816_v51 = vsel %vm499_vm3, %v2787_v54, 0.0  ;;  %v2772_v2 = vld [vmem:[%s3840_s12] sm:$0x1] }
 0x1b4   : > { %v2803_v15 = vadd.f32 %v2802_v19, %v2801_v44  ;;  %v2818_v11 = vsel %vm499_vm3, %v2788_v50, 0.0 }
 0x1b5   : > { %v2750_v57 = vadd.f32 %v2749_v6, %v2748_v7 }
 0x1b6   : > { %v2805_v47 = vadd.f32 %v2804_v56, %v2803_v15 }
 0x1b7   : > { %v2752_v26 = vadd.f32 %v2751_v20, %v2750_v57 }
 0x1b8   : > { %v2807_v30 = vadd.f32 %v2806_v59, %v2805_v47 }
 0x1b9   : > { %v2754_v45 = vadd.f32 %v2753_v21, %v2752_v26 }
 0x1ba   : > { %v2809_v23 = vadd.f32 %v2808_v16, %v2807_v30 }
 0x1bb   : > { %v2756_v41 = vadd.f32 %v2755_v10, %v2754_v45 }
 0x1bc   : > { %v2811_v62 = vadd.f32 %v2810_v58, %v2809_v23 }
 0x1bd   : > { %v2758_v37 = vadd.f32 %v2757_v28, %v2756_v41 }
 0x1be   : > { %v2813_v17 = vadd.f32 %v2812_v40, %v2811_v62 }
 0x1bf   : > { %v2760_v12 = vadd.f32 %v2759_v18, %v2758_v37 }
 0x1c0   : > { %v2815_v35 = vadd.f32 %v2814_v60, %v2813_v17 }
 0x1c1   : > { %v2762_v46 = vadd.f32 %v2761_v49, %v2760_v12 }
 0x1c2   : > { %v2817_v63 = vadd.f32 %v2816_v51, %v2815_v35 }
 0x1c3   : > { %v2763_v48 = vrot.slane %v2762_v46, 4 }
 0x1c4   : > { %v2819_v14 = vadd.f32 %v2818_v11, %v2817_v63 }
 0x1c5   : > { %v2764_v29 = vadd.f32 %v2763_v48, %v2762_v46 }
 0x1c6   : > { %v2820_v24 = vrot.slane %v2819_v14, 4 }
 0x1c7   : > { %v2765_v3 = vrot.slane %v2764_v29, 2 }
 0x1c8   : > { %v2821_v32 = vadd.f32 %v2820_v24, %v2819_v14 }
 0x1c9   : > { %v2766_v5 = vadd.f32 %v2765_v3, %v2764_v29 }
 0x1ca   : > { %v2822_v0 = vrot.slane %v2821_v32, 2 }
 0x1cb   : > { %v2767_v1 = vrot.slane %v2766_v5, 1 }
 0x1cc   : > { %v2823_v27 = vadd.f32 %v2822_v0, %v2821_v32 }
 0x1cd   : > { %v2768_v4 = vadd.f32 %v2767_v1, %v2766_v5 }
 0x1ce   : > { %v2824_v34 = vrot.slane %v2823_v27, 1 }
 0x1cf   : > { %v2769_v8 = vadd.f32 %v2768_v4, %v2731_v13 }
 0x1d0   : > { %v2825_v9 = vadd.f32 %v2824_v34, %v2823_v27 }
 0x1d1   : > { %2771 = vst.msk [vmem:[%s3833_s8] sm:$0x1] %vm2770_vm9, %v2769_v8 }
 0x1d2   : > { %v2826_v61 = vadd.f32 %v2825_v9, %v2772_v2 }
 0x1d4   : > { %2827 = vst.msk [vmem:[%s3840_s12] sm:$0x1] %vm2770_vm9, %v2826_v61 }
 0x1d5 PF: > { %s15_s19 = sadd.s32 1, %s3744_s19   ;;  %s4897_s15 = smov %s3736_s17 }
 0x1d6   : > { %p12_p9 = scmp.ge.s32.totalorder %s15_s19, 6   ;;  %s4898_s16 = smov %s3740_s18 }
 0x1d7   : > { %s4899_s17 = smov %s4902_s20  ;;  %s4900_s18 = smov %s4906_s21 }
 0x1d8   :  { %14 = sbr.rel (!%p12_p9) target bundleno = 3 (0x3), region = 96 }

</bundles_post_ra>
